<compile_context>
chip_gen: v6e
topology: v6e:2x2x1
jax: 0.10.0
libtpu: 0.0.40
codegen_flags: <defaults>
</compile_context>

<pallas_src>
import functools

import jax
import jax.numpy as jnp
from jax.experimental import pallas as pl
from jax.experimental.pallas import tpu as pltpu


def _round_up(x, m):
    return ((x + m - 1) // m) * m


def _vmem_limit_bytes():
    """Per-generation VMEM budget: ~3/4 of physical, capped at 96 MiB."""
    cap = None
    try:
        cap = getattr(pltpu.get_tpu_info(), "vmem_capacity_bytes", None)
    except Exception:
        cap = None
    if not cap:
        cap = 64 * 1024 * 1024          # conservative (v7x-sized) fallback
    return int(min(cap * 3 // 4, 96 * 1024 * 1024))


def _pick_b_tile(n, hw, cin, planes, cout, vmem_limit):
    """Largest batch tile (divisor of n) whose live slabs fit the VMEM budget."""
    # Coarse bytes/row: double-buffered bf16 input + f32 output blocks, the
    # f32 padded conv1 scratch, ~5 live full-slab f32 temporaries, the wrap
    # masks and the concatenated conv2 operand.
    per_row = 4 * cin + 24 * cout + 36 * planes
    budget_rows = max(hw, (vmem_limit // 2) // max(per_row, 1))
    cands = [b for b in range(1, n + 1) if n % b == 0 and (b * hw) % 8 == 0]
    if not cands:
        raise ValueError(f"b_tile*H*W must be a multiple of 8 (H*W={hw}, N={n})")
    fitting = [b for b in cands if b * hw <= budget_rows]
    return max(fitting) if fitting else min(cands)


# ----------------------------------------------------------------------------
# GroupNorm helpers.
# ----------------------------------------------------------------------------
def _group_selectors(c, groups):
    """One-hot channel->group (C, G) and group->channel (G, C) matrices."""
    cg = c // groups
    ch = jnp.arange(c, dtype=jnp.int32) // cg
    gi = jnp.arange(groups, dtype=jnp.int32)
    A = (ch[:, None] == gi[None, :]).astype(jnp.float32)      # (C, G)
    return A, A.T                                             # (C, G), (G, C)


def _group_norm(y2d, gamma, beta, A, AT, *, b_tile, hw, groups, eps=1e-5):
    """Per-sample GroupNorm on a packed (b_tile*hw, C) slab.

    Stats are batched: one (2*b_tile, C) x (C, G) dot for the sums and one
    (2*b_tile, G) x (G, C) dot for the expansion; the affine is folded into a
    single mul + add over the slab.
    """
    f32 = jnp.float32
    c = y2d.shape[-1]
    cnt = float(hw * (c // groups))
    y3 = y2d.reshape(b_tile, hw, c)
    ch_sum = jnp.sum(y3, axis=1)                              # (B, C)
    ch_sq = jnp.sum(y3 * y3, axis=1)                          # (B, C)
    stats = jnp.concatenate([ch_sum, ch_sq], axis=0)          # (2B, C)
    g_stats = jnp.dot(stats, A, preferred_element_type=f32) / cnt   # (2B, G)
    g_mean = g_stats[:b_tile]
    g_var = jnp.maximum(g_stats[b_tile:] - g_mean * g_mean, 0.0)    # clamp >= 0
    g_inv = jax.lax.rsqrt(g_var + eps)
    packed = jnp.concatenate([g_mean, g_inv], axis=0)         # (2B, G)
    per_c = jnp.dot(packed, AT, preferred_element_type=f32)   # (2B, C)
    mean_c = per_c[:b_tile]
    inv_c = per_c[b_tile:]
    scale = inv_c * gamma                                     # (B, C)
    shift = beta - mean_c * scale                             # (B, C)
    out = y3 * scale[:, None, :] + shift[:, None, :]
    return out.reshape(b_tile * hw, c)


# ----------------------------------------------------------------------------
# Fused kernel: conv1+GN+ReLU, conv2(3x3)+GN+ReLU, conv3+GN, shortcut(+GN),
#               residual add + ReLU — B_TILE samples per grid step.
# ----------------------------------------------------------------------------
def bottleneck_kernel(x_ref,
                      ap_ref, atp_ref, ac_ref, atc_ref,
                      w1_ref, b1_ref, g1_ref, be1_ref,
                      w2_ref, b2_ref, g2_ref, be2_ref,
                      w3_ref, b3_ref, g3_ref, be3_ref,
                      ws_ref, bs_ref, gs_ref, bes_ref,
                      out_ref, y1p_ref,
                      *, b_tile, height, width, planes, cout, groups,
                      pad_rows, with_projection):
    f32 = jnp.float32
    bf16 = jnp.bfloat16
    hw = height * width

    gn = functools.partial(_group_norm, b_tile=b_tile, hw=hw, groups=groups)

    x = x_ref[...]                       # (B*HW, Cin); bf16 unless identity shortcut
    xb = x.astype(bf16)                  # no-op when already bf16

    # ---- conv1 (1x1) + GN + ReLU --------------------------------------------
    y1 = jnp.dot(xb, w1_ref[...], preferred_element_type=f32) + b1_ref[...]
    y1 = gn(y1, g1_ref[...], be1_ref[...], ap_ref[...], atp_ref[...])
    y1 = jnp.maximum(y1, 0.0)

    # ---- stash conv1 output into the per-sample zero-padded scratch ----------
    # Only the top/bottom pad bands are zeroed; the interior rows are fully
    # overwritten every step (no full-slab zero-fill / single slab store).
    zpad = jnp.zeros((b_tile, pad_rows, planes), y1p_ref.dtype)
    y1p_ref[:, pl.ds(0, pad_rows), :] = zpad
    y1p_ref[:, pl.ds(pad_rows + hw, pad_rows), :] = zpad
    y1p_ref[:, pl.ds(pad_rows, hw), :] = y1.reshape(b_tile, hw, planes)

    # Wrap masks for the +-1 flattened row shift, hoisted out of the tap loop
    # and pre-broadcast once to full shape (multiplicative 0/1 masks: exact).
    col = jax.lax.broadcasted_iota(jnp.int32, (hw, 1), 0) % width     # (HW, 1)
    mask_l = jnp.broadcast_to((col >= 1).astype(f32)[None],
                              (b_tile, hw, planes))
    mask_r = jnp.broadcast_to((col < width - 1).astype(f32)[None],
                              (b_tile, hw, planes))

    # ---- conv2 (3x3, stride 1, pad 1): 3 fat matmuls, K = 3*planes -----------
    acc = jnp.zeros((b_tile * hw, planes), f32)
    for dy in range(3):
        start = pad_rows + (dy - 1) * width          # static Python int
        src_l = y1p_ref[:, pl.ds(start - 1, hw), :] * mask_l   # dx = -1
        src_c = y1p_ref[:, pl.ds(start, hw), :]                # dx =  0
        src_r = y1p_ref[:, pl.ds(start + 1, hw), :] * mask_r   # dx = +1
        cat = jnp.concatenate([src_l, src_c, src_r], axis=-1)  # (B, HW, 3*planes)
        cat = cat.reshape(b_tile * hw, 3 * planes).astype(bf16)
        acc = acc + jnp.dot(cat, w2_ref[dy], preferred_element_type=f32)
    y2 = acc + b2_ref[...]
    y2 = gn(y2, g2_ref[...], be2_ref[...], ap_ref[...], atp_ref[...])
    y2 = jnp.maximum(y2, 0.0)

    # ---- conv3 (1x1) + GN -----------------------------------------------------
    y3 = jnp.dot(y2.astype(bf16), w3_ref[...],
                 preferred_element_type=f32) + b3_ref[...]
    y3 = gn(y3, g3_ref[...], be3_ref[...], ac_ref[...], atc_ref[...])

    # ---- shortcut -------------------------------------------------------------
    if with_projection:
        ysc = jnp.dot(xb, ws_ref[...], preferred_element_type=f32) + bs_ref[...]
        ysc = gn(ysc, gs_ref[...], bes_ref[...], ac_ref[...], atc_ref[...])
    else:
        ysc = x.astype(f32)              # identity shortcut (in_planes == 4*planes)

    # ---- residual add + ReLU --------------------------------------------------
    out_ref[...] = jnp.maximum(y3 + ysc, 0.0)


# ----------------------------------------------------------------------------
# Wrapper: NCHW in, NCHW out (PyTorch convention).
# ----------------------------------------------------------------------------
def bottleneck_forward(x_nchw, params, *, groups=32, b_tile=None):
    x = jnp.transpose(x_nchw, (0, 2, 3, 1))                    # NHWC
    n, h, w, cin = x.shape
    hw = h * w
    planes = params["W1"].shape[1]
    cout = params["W3"].shape[1]
    with_projection = "Ws" in params
    assert planes % groups == 0 and cout % groups == 0
    assert not with_projection or params["Ws"].shape == (cin, cout)

    bf16 = jnp.bfloat16
    f32 = jnp.float32

    # x only feeds bf16 MXU matmuls when the projection shortcut is present,
    # so ship it to the kernel in bf16 (halves the input DMA).  With an
    # identity shortcut the residual needs the exact f32 x, so keep f32.
    x_dtype = bf16 if with_projection else f32
    x_flat = x.reshape(n * hw, cin).astype(x_dtype)

    w1 = params["W1"].astype(bf16)                                   # (Cin, planes)
    w2 = params["W2"].reshape(3, 3 * planes, planes).astype(bf16)    # (dy, 3*Cin, Cout)
    w3 = params["W3"].astype(bf16)                                   # (planes, cout)
    if with_projection:
        ws = params["Ws"].astype(bf16)
        bs, gs_, bes_ = params["bs"], params["gs"], params["bes"]
    else:  # tiny dummies; never read by the kernel (Python-level branch)
        ws = jnp.zeros((1, 128), bf16)
        bs = jnp.zeros((1, 128), f32)
        gs_ = jnp.ones((1, 128), f32)
        bes_ = jnp.zeros((1, 128), f32)

    ap, atp = _group_selectors(planes, groups)                       # constants
    ac, atc = _group_selectors(cout, groups)

    pad_rows = _round_up(w + 1, 8)      # >= w+1 zero rows each side, 8-aligned
    vmem_limit = _vmem_limit_bytes()
    if b_tile is None:
        b_tile = _pick_b_tile(n, hw, cin, planes, cout, vmem_limit)
    assert n % b_tile == 0 and (b_tile * hw) % 8 == 0, (n, b_tile, hw)

    def const_spec(a):
        zeros = (0,) * a.ndim
        # TODO(synk): pipeline_mode=pl.Buffered(1) would single-buffer these
        #             resident constants; left at the default pending lowering
        #             verification across generations.
        return pl.BlockSpec(a.shape, lambda i, _z=zeros: _z)

    operands = (
        x_flat,
        ap, atp, ac, atc,
        w1, params["b1"], params["g1"], params["be1"],
        w2, params["b2"], params["g2"], params["be2"],
        w3, params["b3"], params["g3"], params["be3"],
        ws, bs, gs_, bes_,
    )
    in_specs = [pl.BlockSpec((b_tile * hw, cin), lambda i: (i, 0))]
    in_specs += [const_spec(a) for a in operands[1:]]

    kernel = functools.partial(
        bottleneck_kernel, b_tile=b_tile, height=h, width=w, planes=planes,
        cout=cout, groups=groups, pad_rows=pad_rows,
        with_projection=with_projection)

    out_flat = pl.pallas_call(
        kernel,
        out_shape=jax.ShapeDtypeStruct((n * hw, cout), jnp.float32),
        grid_spec=pltpu.PrefetchScalarGridSpec(
            num_scalar_prefetch=0,
            grid=(n // b_tile,),
            in_specs=in_specs,
            out_specs=pl.BlockSpec((b_tile * hw, cout), lambda i: (i, 0)),
            scratch_shapes=[
                # TODO(synk): a bf16 scratch would halve tap-read bandwidth but
                #             needs packed sublane-offset loads; kept f32 for
                #             lowering robustness.
                pltpu.VMEM((b_tile, hw + 2 * pad_rows, planes), jnp.float32)],
        ),
        compiler_params=pltpu.CompilerParams(
            dimension_semantics=("parallel",),
            vmem_limit_bytes=vmem_limit,
        ),
    )(*operands)

    out = out_flat.reshape(n, h, w, cout)
    return jnp.transpose(out, (0, 3, 1, 2))                          # back to NCHW


# ----------------------------------------------------------------------------
# Pure-JAX reference (mirrors the PyTorch forward).  `matmul_dtype` lets us
# match the kernel's bf16 MXU operands for a tight correctness check.
# ----------------------------------------------------------------------------
def bottleneck_reference(x_nchw, params, *, groups=32, eps=1e-5,
                         matmul_dtype=jnp.float32):
    x = jnp.transpose(x_nchw, (0, 2, 3, 1)).astype(jnp.float32)
    md = matmul_dtype

    def conv1x1(y, wmat, b):
        return jnp.einsum("nhwc,cd->nhwd", y.astype(md), wmat.astype(md),
                          preferred_element_type=jnp.float32) + b

    def conv3x3(y, wmat, b):
        z = jax.lax.conv_general_dilated(
            y.astype(md), wmat.astype(md), window_strides=(1, 1),
            padding=((1, 1), (1, 1)),
            dimension_numbers=("NHWC", "HWIO", "NHWC"),
            preferred_element_type=jnp.float32)
        return z + b

    def gn(y, gamma, beta):
        n_, hh, ww, cc = y.shape
        yr = y.reshape(n_, hh * ww, groups, cc // groups)
        m = yr.mean(axis=(1, 3), keepdims=True)
        v = ((yr - m) ** 2).mean(axis=(1, 3), keepdims=True)
        yn = ((yr - m) / jnp.sqrt(v + eps)).reshape(n_, hh, ww, cc)
        return yn * gamma + beta

    out = jax.nn.relu(gn(conv1x1(x, params["W1"], params["b1"]),
                         params["g1"], params["be1"]))
    out = jax.nn.relu(gn(conv3x3(out, params["W2"], params["b2"]),
                         params["g2"], params["be2"]))
    out = gn(conv1x1(out, params["W3"], params["b3"]), params["g3"], params["be3"])
    if "Ws" in params:
        sc = gn(conv1x1(x, params["Ws"], params["bs"]), params["gs"], params["bes"])
    else:
        sc = x
    out = jax.nn.relu(out + sc)
    return jnp.transpose(out, (0, 3, 1, 2))


def make_params(key, in_planes, planes, expansion=4):
    cout = expansion * planes
    ks = jax.random.split(key, 16)
    nrm = jax.random.normal

    def affine(kg, kb, c):
        return (1.0 + 0.1 * nrm(kg, (1, c), jnp.float32),
                0.1 * nrm(kb, (1, c), jnp.float32))

    g1, be1 = affine(ks[2], ks[3], planes)
    g2, be2 = affine(ks[6], ks[7], planes)
    g3, be3 = affine(ks[10], ks[11], cout)
    p = {
        # conv1: 1x1, in_planes -> planes          (stored as (Cin, Cout))
        "W1": nrm(ks[0], (in_planes, planes), jnp.float32) / jnp.sqrt(in_planes),
        "b1": 0.1 * nrm(ks[1], (1, planes), jnp.float32),
        "g1": g1, "be1": be1,
        # conv2: 3x3, planes -> planes             (stored HWIO: (3,3,Cin,Cout))
        "W2": nrm(ks[4], (3, 3, planes, planes), jnp.float32) / jnp.sqrt(9 * planes),
        "b2": 0.1 * nrm(ks[5], (1, planes), jnp.float32),
        "g2": g2, "be2": be2,
        # conv3: 1x1, planes -> 4*planes
        "W3": nrm(ks[8], (planes, cout), jnp.float32) / jnp.sqrt(planes),
        "b3": 0.1 * nrm(ks[9], (1, cout), jnp.float32),
        "g3": g3, "be3": be3,
    }
    if in_planes != cout:   # projection shortcut (stride=1 path)
        gs, bes = affine(ks[14], ks[15], cout)
        p.update({
            "Ws": nrm(ks[12], (in_planes, cout), jnp.float32) / jnp.sqrt(in_planes),
            "bs": 0.1 * nrm(ks[13], (1, cout), jnp.float32),
            "gs": gs, "bes": bes,
        })
    return p


if __name__ == "__main__":
    def check(n, in_planes, planes, h, w, tol=5e-3):
        key = jax.random.PRNGKey(0)
        kx, kp = jax.random.split(key)
        x = jax.random.normal(kx, (n, in_planes, h, w), jnp.float32)   # NCHW
        params = make_params(kp, in_planes, planes)
        out = jax.jit(lambda a: bottleneck_forward(a, params))(x)
        out = jax.block_until_ready(out)
        # Reference with matched MXU precision (bf16 operands, f32 accumulation);
        # all GroupNorm / residual math stays f32 in both.
        ref = bottleneck_reference(x, params, matmul_dtype=jnp.bfloat16)
        err = float(jnp.max(jnp.abs(out - ref)))
        assert out.shape == (n, 4 * planes, h, w), out.shape
        assert err < tol, f"mismatch vs reference, max abs err = {err}"

    # GroupNorm(32, C) requires C % 32 == 0.
    # projection shortcut (in_planes != 4*planes), stride=1 (module default)
    check(2, 64, 32, 8, 8)
    # identity shortcut (in_planes == 4*planes), stride=1
    check(2, 128, 32, 8, 8)

    print("KERNEL_OK")
</pallas_src>

<mosaic_0001>
module attributes {stable_mosaic.version = 11 : i64} {
  func.func @bottleneck_kernel(%arg0: i32, %arg1: memref<128x64xbf16, #tpu.memory_space<vmem>>, %arg2: memref<32x32xf32, #tpu.memory_space<vmem>>, %arg3: memref<32x32xf32, #tpu.memory_space<vmem>>, %arg4: memref<128x32xf32, #tpu.memory_space<vmem>>, %arg5: memref<32x128xf32, #tpu.memory_space<vmem>>, %arg6: memref<64x32xbf16, #tpu.memory_space<vmem>>, %arg7: memref<1x32xf32, #tpu.memory_space<vmem>>, %arg8: memref<1x32xf32, #tpu.memory_space<vmem>>, %arg9: memref<1x32xf32, #tpu.memory_space<vmem>>, %arg10: memref<3x96x32xbf16, #tpu.memory_space<vmem>>, %arg11: memref<1x32xf32, #tpu.memory_space<vmem>>, %arg12: memref<1x32xf32, #tpu.memory_space<vmem>>, %arg13: memref<1x32xf32, #tpu.memory_space<vmem>>, %arg14: memref<32x128xbf16, #tpu.memory_space<vmem>>, %arg15: memref<1x128xf32, #tpu.memory_space<vmem>>, %arg16: memref<1x128xf32, #tpu.memory_space<vmem>>, %arg17: memref<1x128xf32, #tpu.memory_space<vmem>>, %arg18: memref<64x128xbf16, #tpu.memory_space<vmem>>, %arg19: memref<1x128xf32, #tpu.memory_space<vmem>>, %arg20: memref<1x128xf32, #tpu.memory_space<vmem>>, %arg21: memref<1x128xf32, #tpu.memory_space<vmem>>, %arg22: memref<128x128xf32, #tpu.memory_space<vmem>>, %arg23: memref<2x96x32xf32, #tpu.memory_space<vmem>>) attributes {dimension_semantics = [#tpu.dimension_semantics<parallel>], iteration_bounds = array<i64: 1>, scalar_prefetch = 0 : i64, scratch_operands = 1 : i64, tpu.core_type = #tpu.core_type<tc>, window_params = [{transform_indices = @transform_0, window_bounds = array<i64: 128, 64>}, {pipeline_mode = #tpu.pipeline_mode<synchronous>, transform_indices = @transform_1, window_bounds = array<i64: 32, 32>}, {pipeline_mode = #tpu.pipeline_mode<synchronous>, transform_indices = @transform_2, window_bounds = array<i64: 32, 32>}, {pipeline_mode = #tpu.pipeline_mode<synchronous>, transform_indices = @transform_3, window_bounds = array<i64: 128, 32>}, {pipeline_mode = #tpu.pipeline_mode<synchronous>, transform_indices = @transform_4, window_bounds = array<i64: 32, 128>}, {pipeline_mode = #tpu.pipeline_mode<synchronous>, transform_indices = @transform_5, window_bounds = array<i64: 64, 32>}, {pipeline_mode = #tpu.pipeline_mode<synchronous>, transform_indices = @transform_6, window_bounds = array<i64: 1, 32>}, {pipeline_mode = #tpu.pipeline_mode<synchronous>, transform_indices = @transform_7, window_bounds = array<i64: 1, 32>}, {pipeline_mode = #tpu.pipeline_mode<synchronous>, transform_indices = @transform_8, window_bounds = array<i64: 1, 32>}, {pipeline_mode = #tpu.pipeline_mode<synchronous>, transform_indices = @transform_9, window_bounds = array<i64: 3, 96, 32>}, {pipeline_mode = #tpu.pipeline_mode<synchronous>, transform_indices = @transform_10, window_bounds = array<i64: 1, 32>}, {pipeline_mode = #tpu.pipeline_mode<synchronous>, transform_indices = @transform_11, window_bounds = array<i64: 1, 32>}, {pipeline_mode = #tpu.pipeline_mode<synchronous>, transform_indices = @transform_12, window_bounds = array<i64: 1, 32>}, {pipeline_mode = #tpu.pipeline_mode<synchronous>, transform_indices = @transform_13, window_bounds = array<i64: 32, 128>}, {pipeline_mode = #tpu.pipeline_mode<synchronous>, transform_indices = @transform_14, window_bounds = array<i64: 1, 128>}, {pipeline_mode = #tpu.pipeline_mode<synchronous>, transform_indices = @transform_15, window_bounds = array<i64: 1, 128>}, {pipeline_mode = #tpu.pipeline_mode<synchronous>, transform_indices = @transform_16, window_bounds = array<i64: 1, 128>}, {pipeline_mode = #tpu.pipeline_mode<synchronous>, transform_indices = @transform_17, window_bounds = array<i64: 64, 128>}, {pipeline_mode = #tpu.pipeline_mode<synchronous>, transform_indices = @transform_18, window_bounds = array<i64: 1, 128>}, {pipeline_mode = #tpu.pipeline_mode<synchronous>, transform_indices = @transform_19, window_bounds = array<i64: 1, 128>}, {pipeline_mode = #tpu.pipeline_mode<synchronous>, transform_indices = @transform_20, window_bounds = array<i64: 1, 128>}, {transform_indices = @transform_21, window_bounds = array<i64: 128, 128>}]} {
    %c0 = arith.constant 0 : index
    %c0_0 = arith.constant 0 : index
    %0 = vector.load %arg1[%c0, %c0_0] : memref<128x64xbf16, #tpu.memory_space<vmem>>, vector<128x64xbf16>
    %c0_1 = arith.constant 0 : index
    %c0_2 = arith.constant 0 : index
    %1 = vector.load %arg6[%c0_1, %c0_2] : memref<64x32xbf16, #tpu.memory_space<vmem>>, vector<64x32xbf16>
    %cst = arith.constant dense<0.000000e+00> : vector<128x32xf32>
    %2 = tpu.matmul %0, %1, %cst {dimension_numbers = #tpu.dot_dimension_numbers<[1], [0], [0], [1], [0, 0, 1, 1], [], []>} : vector<128x64xbf16>, vector<64x32xbf16>, vector<128x32xf32> -> vector<128x32xf32>
    %c0_3 = arith.constant 0 : index
    %c0_4 = arith.constant 0 : index
    %3 = vector.load %arg7[%c0_3, %c0_4] : memref<1x32xf32, #tpu.memory_space<vmem>>, vector<1x32xf32>
    %4 = vector.broadcast %3 : vector<1x32xf32> to vector<128x32xf32>
    %5 = arith.addf %2, %4 : vector<128x32xf32>
    %c0_5 = arith.constant 0 : index
    %c0_6 = arith.constant 0 : index
    %6 = vector.load %arg8[%c0_5, %c0_6] : memref<1x32xf32, #tpu.memory_space<vmem>>, vector<1x32xf32>
    %c0_7 = arith.constant 0 : index
    %c0_8 = arith.constant 0 : index
    %7 = vector.load %arg9[%c0_7, %c0_8] : memref<1x32xf32, #tpu.memory_space<vmem>>, vector<1x32xf32>
    %c0_9 = arith.constant 0 : index
    %c0_10 = arith.constant 0 : index
    %8 = vector.load %arg2[%c0_9, %c0_10] : memref<32x32xf32, #tpu.memory_space<vmem>>, vector<32x32xf32>
    %c0_11 = arith.constant 0 : index
    %c0_12 = arith.constant 0 : index
    %9 = vector.load %arg3[%c0_11, %c0_12] : memref<32x32xf32, #tpu.memory_space<vmem>>, vector<32x32xf32>
    %10 = vector.shape_cast %5 : vector<128x32xf32> to vector<2x64x32xf32>
    %cst_13 = arith.constant dense<0.000000e+00> : vector<2x32xf32>
    %11 = vector.multi_reduction <add>, %10, %cst_13 [1] : vector<2x64x32xf32> to vector<2x32xf32>
    %12 = arith.mulf %10, %10 : vector<2x64x32xf32>
    %cst_14 = arith.constant dense<0.000000e+00> : vector<2x32xf32>
    %13 = vector.multi_reduction <add>, %12, %cst_14 [1] : vector<2x64x32xf32> to vector<2x32xf32>
    %14 = tpu.concatenate %11, %13 in 0 : vector<2x32xf32>, vector<2x32xf32> -> vector<4x32xf32>
    %cst_15 = arith.constant dense<0.000000e+00> : vector<4x32xf32>
    %15 = tpu.matmul %14, %8, %cst_15 {dimension_numbers = #tpu.dot_dimension_numbers<[1], [0], [0], [1], [0, 0, 1, 1], [], []>} : vector<4x32xf32>, vector<32x32xf32>, vector<4x32xf32> -> vector<4x32xf32>
    %cst_16 = arith.constant 6.400000e+01 : f32
    %16 = vector.broadcast %cst_16 : f32 to vector<4x32xf32>
    %17 = arith.divf %15, %16 : vector<4x32xf32>
    %18 = vector.extract_strided_slice %17 {offsets = [0, 0], sizes = [2, 32], strides = [1, 1]} : vector<4x32xf32> to vector<2x32xf32>
    %19 = vector.extract_strided_slice %17 {offsets = [2, 0], sizes = [2, 32], strides = [1, 1]} : vector<4x32xf32> to vector<2x32xf32>
    %20 = arith.mulf %18, %18 : vector<2x32xf32>
    %21 = arith.subf %19, %20 : vector<2x32xf32>
    %cst_17 = arith.constant 0.000000e+00 : f32
    %22 = vector.broadcast %cst_17 : f32 to vector<2x32xf32>
    %23 = arith.maximumf %21, %22 : vector<2x32xf32>
    %cst_18 = arith.constant 9.99999974E-6 : f32
    %24 = vector.broadcast %cst_18 : f32 to vector<2x32xf32>
    %25 = arith.addf %23, %24 : vector<2x32xf32>
    %26 = math.rsqrt %25 : vector<2x32xf32>
    %27 = tpu.concatenate %18, %26 in 0 : vector<2x32xf32>, vector<2x32xf32> -> vector<4x32xf32>
    %cst_19 = arith.constant dense<0.000000e+00> : vector<4x32xf32>
    %28 = tpu.matmul %27, %9, %cst_19 {dimension_numbers = #tpu.dot_dimension_numbers<[1], [0], [0], [1], [0, 0, 1, 1], [], []>} : vector<4x32xf32>, vector<32x32xf32>, vector<4x32xf32> -> vector<4x32xf32>
    %29 = vector.extract_strided_slice %28 {offsets = [0, 0], sizes = [2, 32], strides = [1, 1]} : vector<4x32xf32> to vector<2x32xf32>
    %30 = vector.extract_strided_slice %28 {offsets = [2, 0], sizes = [2, 32], strides = [1, 1]} : vector<4x32xf32> to vector<2x32xf32>
    %31 = vector.broadcast %6 : vector<1x32xf32> to vector<2x32xf32>
    %32 = arith.mulf %30, %31 : vector<2x32xf32>
    %33 = arith.mulf %29, %32 : vector<2x32xf32>
    %34 = vector.broadcast %7 : vector<1x32xf32> to vector<2x32xf32>
    %35 = arith.subf %34, %33 : vector<2x32xf32>
    %36 = vector.shape_cast %32 : vector<2x32xf32> to vector<2x1x32xf32>
    %37 = vector.broadcast %36 : vector<2x1x32xf32> to vector<2x64x32xf32>
    %38 = arith.mulf %10, %37 : vector<2x64x32xf32>
    %39 = vector.shape_cast %35 : vector<2x32xf32> to vector<2x1x32xf32>
    %40 = vector.broadcast %39 : vector<2x1x32xf32> to vector<2x64x32xf32>
    %41 = arith.addf %38, %40 : vector<2x64x32xf32>
    %42 = vector.shape_cast %41 : vector<2x64x32xf32> to vector<128x32xf32>
    %cst_20 = arith.constant 0.000000e+00 : f32
    %43 = vector.broadcast %cst_20 : f32 to vector<128x32xf32>
    %44 = arith.maximumf %42, %43 : vector<128x32xf32>
    %cst_21 = arith.constant 0.000000e+00 : f32
    %45 = vector.broadcast %cst_21 : f32 to vector<2x16x32xf32>
    %c0_22 = arith.constant 0 : index
    %c0_23 = arith.constant 0 : index
    %c0_24 = arith.constant 0 : index
    %46 = vector.load %arg23[%c0_22, %c0_23, %c0_24] : memref<2x96x32xf32, #tpu.memory_space<vmem>>, vector<2x16x32xf32>
    tpu.vector_store %arg23[%c0_22, %c0_23, %c0_24], %45 {strides = array<i32>} : memref<2x96x32xf32, #tpu.memory_space<vmem>>, vector<2x16x32xf32>,
    %c0_25 = arith.constant 0 : index
    %c80 = arith.constant 80 : index
    %c0_26 = arith.constant 0 : index
    %47 = vector.load %arg23[%c0_25, %c80, %c0_26] : memref<2x96x32xf32, #tpu.memory_space<vmem>>, vector<2x16x32xf32>
    tpu.vector_store %arg23[%c0_25, %c80, %c0_26], %45 {strides = array<i32>} : memref<2x96x32xf32, #tpu.memory_space<vmem>>, vector<2x16x32xf32>,
    %48 = vector.shape_cast %44 : vector<128x32xf32> to vector<2x64x32xf32>
    %c0_27 = arith.constant 0 : index
    %c16 = arith.constant 16 : index
    %c0_28 = arith.constant 0 : index
    %49 = vector.load %arg23[%c0_27, %c16, %c0_28] : memref<2x96x32xf32, #tpu.memory_space<vmem>>, vector<2x64x32xf32>
    tpu.vector_store %arg23[%c0_27, %c16, %c0_28], %48 {strides = array<i32>} : memref<2x96x32xf32, #tpu.memory_space<vmem>>, vector<2x64x32xf32>,
    %50 = tpu.iota {dimensions = array<i32: 0>} : vector<64x1xi32>
    %c8_i32 = arith.constant 8 : i32
    %c0_i32 = arith.constant 0 : i32
    %51 = arith.cmpi eq, %c8_i32, %c0_i32 : i32
    %c1_i32 = arith.constant 1 : i32
    %52 = arith.select %51, %c1_i32, %c8_i32 : i32
    %53 = vector.broadcast %52 : i32 to vector<64x1xi32>
    %54 = arith.remsi %50, %53 : vector<64x1xi32>
    %c0_i32_29 = arith.constant 0 : i32
    %55 = vector.broadcast %c0_i32_29 : i32 to vector<64x1xi32>
    %56 = arith.cmpi ne, %54, %55 : vector<64x1xi32>
    %c0_i32_30 = arith.constant 0 : i32
    %57 = vector.broadcast %c0_i32_30 : i32 to vector<64x1xi32>
    %58 = arith.cmpi slt, %54, %57 : vector<64x1xi32>
    %c0_i32_31 = arith.constant 0 : i32
    %59 = arith.cmpi slt, %52, %c0_i32_31 : i32
    %60 = vector.broadcast %59 : i1 to vector<64x1xi1>
    %61 = vector.broadcast %60 : vector<64x1xi1> to vector<64x1xi1>
    %62 = arith.xori %58, %61 : vector<64x1xi1>
    %63 = arith.andi %62, %56 : vector<64x1xi1>
    %64 = vector.broadcast %52 : i32 to vector<64x1xi32>
    %65 = arith.addi %54, %64 : vector<64x1xi32>
    %66 = arith.select %63, %65, %54 : vector<64x1xi1>, vector<64x1xi32>
    %c1_i32_32 = arith.constant 1 : i32
    %67 = vector.broadcast %c1_i32_32 : i32 to vector<64x1xi32>
    %68 = arith.cmpi sge, %66, %67 : vector<64x1xi32>
    %69 = arith.extui %68 : vector<64x1xi1> to vector<64x1xi32>
    %70 = arith.sitofp %69 : vector<64x1xi32> to vector<64x1xf32>
    %71 = vector.shape_cast %70 : vector<64x1xf32> to vector<1x64x1xf32>
    %72 = vector.shape_cast %71 : vector<1x64x1xf32> to vector<1x64x1xf32>
    %73 = vector.broadcast %72 : vector<1x64x1xf32> to vector<2x64x32xf32>
    %c7_i32 = arith.constant 7 : i32
    %74 = vector.broadcast %c7_i32 : i32 to vector<64x1xi32>
    %75 = arith.cmpi slt, %66, %74 : vector<64x1xi32>
    %76 = arith.extui %75 : vector<64x1xi1> to vector<64x1xi32>
    %77 = arith.sitofp %76 : vector<64x1xi32> to vector<64x1xf32>
    %78 = vector.shape_cast %77 : vector<64x1xf32> to vector<1x64x1xf32>
    %79 = vector.shape_cast %78 : vector<1x64x1xf32> to vector<1x64x1xf32>
    %80 = vector.broadcast %79 : vector<1x64x1xf32> to vector<2x64x32xf32>
    %cst_33 = arith.constant 0.000000e+00 : f32
    %81 = vector.broadcast %cst_33 : f32 to vector<128x32xf32>
    %c0_34 = arith.constant 0 : index
    %c7 = arith.constant 7 : index
    %c0_35 = arith.constant 0 : index
    %82 = vector.load %arg23[%c0_34, %c7, %c0_35] : memref<2x96x32xf32, #tpu.memory_space<vmem>>, vector<2x64x32xf32>
    %83 = arith.mulf %82, %73 : vector<2x64x32xf32>
    %c0_36 = arith.constant 0 : index
    %c8 = arith.constant 8 : index
    %c0_37 = arith.constant 0 : index
    %84 = vector.load %arg23[%c0_36, %c8, %c0_37] : memref<2x96x32xf32, #tpu.memory_space<vmem>>, vector<2x64x32xf32>
    %c0_38 = arith.constant 0 : index
    %c9 = arith.constant 9 : index
    %c0_39 = arith.constant 0 : index
    %85 = vector.load %arg23[%c0_38, %c9, %c0_39] : memref<2x96x32xf32, #tpu.memory_space<vmem>>, vector<2x64x32xf32>
    %86 = arith.mulf %85, %80 : vector<2x64x32xf32>
    %87 = tpu.concatenate %83, %84, %86 in 2 : vector<2x64x32xf32>, vector<2x64x32xf32>, vector<2x64x32xf32> -> vector<2x64x96xf32>
    %88 = vector.shape_cast %87 : vector<2x64x96xf32> to vector<128x96xf32>
    %89 = arith.truncf %88 : vector<128x96xf32> to vector<128x96xbf16>
    %c0_40 = arith.constant 0 : index
    %c0_41 = arith.constant 0 : index
    %c0_42 = arith.constant 0 : index
    %90 = vector.load %arg10[%c0_40, %c0_41, %c0_42] : memref<3x96x32xbf16, #tpu.memory_space<vmem>>, vector<1x96x32xbf16>
    %91 = vector.shape_cast %90 : vector<1x96x32xbf16> to vector<96x32xbf16>
    %cst_43 = arith.constant dense<0.000000e+00> : vector<128x32xf32>
    %92 = tpu.matmul %89, %91, %cst_43 {dimension_numbers = #tpu.dot_dimension_numbers<[1], [0], [0], [1], [0, 0, 1, 1], [], []>} : vector<128x96xbf16>, vector<96x32xbf16>, vector<128x32xf32> -> vector<128x32xf32>
    %93 = arith.addf %81, %92 : vector<128x32xf32>
    %c0_44 = arith.constant 0 : index
    %c15 = arith.constant 15 : index
    %c0_45 = arith.constant 0 : index
    %94 = vector.load %arg23[%c0_44, %c15, %c0_45] : memref<2x96x32xf32, #tpu.memory_space<vmem>>, vector<2x64x32xf32>
    %95 = arith.mulf %94, %73 : vector<2x64x32xf32>
    %c0_46 = arith.constant 0 : index
    %c16_47 = arith.constant 16 : index
    %c0_48 = arith.constant 0 : index
    %96 = vector.load %arg23[%c0_46, %c16_47, %c0_48] : memref<2x96x32xf32, #tpu.memory_space<vmem>>, vector<2x64x32xf32>
    %c0_49 = arith.constant 0 : index
    %c17 = arith.constant 17 : index
    %c0_50 = arith.constant 0 : index
    %97 = vector.load %arg23[%c0_49, %c17, %c0_50] : memref<2x96x32xf32, #tpu.memory_space<vmem>>, vector<2x64x32xf32>
    %98 = arith.mulf %97, %80 : vector<2x64x32xf32>
    %99 = tpu.concatenate %95, %96, %98 in 2 : vector<2x64x32xf32>, vector<2x64x32xf32>, vector<2x64x32xf32> -> vector<2x64x96xf32>
    %100 = vector.shape_cast %99 : vector<2x64x96xf32> to vector<128x96xf32>
    %101 = arith.truncf %100 : vector<128x96xf32> to vector<128x96xbf16>
    %c1 = arith.constant 1 : index
    %c0_51 = arith.constant 0 : index
    %c0_52 = arith.constant 0 : index
    %102 = vector.load %arg10[%c1, %c0_51, %c0_52] : memref<3x96x32xbf16, #tpu.memory_space<vmem>>, vector<1x96x32xbf16>
    %103 = vector.shape_cast %102 : vector<1x96x32xbf16> to vector<96x32xbf16>
    %cst_53 = arith.constant dense<0.000000e+00> : vector<128x32xf32>
    %104 = tpu.matmul %101, %103, %cst_53 {dimension_numbers = #tpu.dot_dimension_numbers<[1], [0], [0], [1], [0, 0, 1, 1], [], []>} : vector<128x96xbf16>, vector<96x32xbf16>, vector<128x32xf32> -> vector<128x32xf32>
    %105 = arith.addf %93, %104 : vector<128x32xf32>
    %c0_54 = arith.constant 0 : index
    %c23 = arith.constant 23 : index
    %c0_55 = arith.constant 0 : index
    %106 = vector.load %arg23[%c0_54, %c23, %c0_55] : memref<2x96x32xf32, #tpu.memory_space<vmem>>, vector<2x64x32xf32>
    %107 = arith.mulf %106, %73 : vector<2x64x32xf32>
    %c0_56 = arith.constant 0 : index
    %c24 = arith.constant 24 : index
    %c0_57 = arith.constant 0 : index
    %108 = vector.load %arg23[%c0_56, %c24, %c0_57] : memref<2x96x32xf32, #tpu.memory_space<vmem>>, vector<2x64x32xf32>
    %c0_58 = arith.constant 0 : index
    %c25 = arith.constant 25 : index
    %c0_59 = arith.constant 0 : index
    %109 = vector.load %arg23[%c0_58, %c25, %c0_59] : memref<2x96x32xf32, #tpu.memory_space<vmem>>, vector<2x64x32xf32>
    %110 = arith.mulf %109, %80 : vector<2x64x32xf32>
    %111 = tpu.concatenate %107, %108, %110 in 2 : vector<2x64x32xf32>, vector<2x64x32xf32>, vector<2x64x32xf32> -> vector<2x64x96xf32>
    %112 = vector.shape_cast %111 : vector<2x64x96xf32> to vector<128x96xf32>
    %113 = arith.truncf %112 : vector<128x96xf32> to vector<128x96xbf16>
    %c2 = arith.constant 2 : index
    %c0_60 = arith.constant 0 : index
    %c0_61 = arith.constant 0 : index
    %114 = vector.load %arg10[%c2, %c0_60, %c0_61] : memref<3x96x32xbf16, #tpu.memory_space<vmem>>, vector<1x96x32xbf16>
    %115 = vector.shape_cast %114 : vector<1x96x32xbf16> to vector<96x32xbf16>
    %cst_62 = arith.constant dense<0.000000e+00> : vector<128x32xf32>
    %116 = tpu.matmul %113, %115, %cst_62 {dimension_numbers = #tpu.dot_dimension_numbers<[1], [0], [0], [1], [0, 0, 1, 1], [], []>} : vector<128x96xbf16>, vector<96x32xbf16>, vector<128x32xf32> -> vector<128x32xf32>
    %117 = arith.addf %105, %116 : vector<128x32xf32>
    %c0_63 = arith.constant 0 : index
    %c0_64 = arith.constant 0 : index
    %118 = vector.load %arg11[%c0_63, %c0_64] : memref<1x32xf32, #tpu.memory_space<vmem>>, vector<1x32xf32>
    %119 = vector.broadcast %118 : vector<1x32xf32> to vector<128x32xf32>
    %120 = arith.addf %117, %119 : vector<128x32xf32>
    %c0_65 = arith.constant 0 : index
    %c0_66 = arith.constant 0 : index
    %121 = vector.load %arg12[%c0_65, %c0_66] : memref<1x32xf32, #tpu.memory_space<vmem>>, vector<1x32xf32>
    %c0_67 = arith.constant 0 : index
    %c0_68 = arith.constant 0 : index
    %122 = vector.load %arg13[%c0_67, %c0_68] : memref<1x32xf32, #tpu.memory_space<vmem>>, vector<1x32xf32>
    %c0_69 = arith.constant 0 : index
    %c0_70 = arith.constant 0 : index
    %123 = vector.load %arg2[%c0_69, %c0_70] : memref<32x32xf32, #tpu.memory_space<vmem>>, vector<32x32xf32>
    %c0_71 = arith.constant 0 : index
    %c0_72 = arith.constant 0 : index
    %124 = vector.load %arg3[%c0_71, %c0_72] : memref<32x32xf32, #tpu.memory_space<vmem>>, vector<32x32xf32>
    %125 = vector.shape_cast %120 : vector<128x32xf32> to vector<2x64x32xf32>
    %cst_73 = arith.constant dense<0.000000e+00> : vector<2x32xf32>
    %126 = vector.multi_reduction <add>, %125, %cst_73 [1] : vector<2x64x32xf32> to vector<2x32xf32>
    %127 = arith.mulf %125, %125 : vector<2x64x32xf32>
    %cst_74 = arith.constant dense<0.000000e+00> : vector<2x32xf32>
    %128 = vector.multi_reduction <add>, %127, %cst_74 [1] : vector<2x64x32xf32> to vector<2x32xf32>
    %129 = tpu.concatenate %126, %128 in 0 : vector<2x32xf32>, vector<2x32xf32> -> vector<4x32xf32>
    %cst_75 = arith.constant dense<0.000000e+00> : vector<4x32xf32>
    %130 = tpu.matmul %129, %123, %cst_75 {dimension_numbers = #tpu.dot_dimension_numbers<[1], [0], [0], [1], [0, 0, 1, 1], [], []>} : vector<4x32xf32>, vector<32x32xf32>, vector<4x32xf32> -> vector<4x32xf32>
    %cst_76 = arith.constant 6.400000e+01 : f32
    %131 = vector.broadcast %cst_76 : f32 to vector<4x32xf32>
    %132 = arith.divf %130, %131 : vector<4x32xf32>
    %133 = vector.extract_strided_slice %132 {offsets = [0, 0], sizes = [2, 32], strides = [1, 1]} : vector<4x32xf32> to vector<2x32xf32>
    %134 = vector.extract_strided_slice %132 {offsets = [2, 0], sizes = [2, 32], strides = [1, 1]} : vector<4x32xf32> to vector<2x32xf32>
    %135 = arith.mulf %133, %133 : vector<2x32xf32>
    %136 = arith.subf %134, %135 : vector<2x32xf32>
    %cst_77 = arith.constant 0.000000e+00 : f32
    %137 = vector.broadcast %cst_77 : f32 to vector<2x32xf32>
    %138 = arith.maximumf %136, %137 : vector<2x32xf32>
    %cst_78 = arith.constant 9.99999974E-6 : f32
    %139 = vector.broadcast %cst_78 : f32 to vector<2x32xf32>
    %140 = arith.addf %138, %139 : vector<2x32xf32>
    %141 = math.rsqrt %140 : vector<2x32xf32>
    %142 = tpu.concatenate %133, %141 in 0 : vector<2x32xf32>, vector<2x32xf32> -> vector<4x32xf32>
    %cst_79 = arith.constant dense<0.000000e+00> : vector<4x32xf32>
    %143 = tpu.matmul %142, %124, %cst_79 {dimension_numbers = #tpu.dot_dimension_numbers<[1], [0], [0], [1], [0, 0, 1, 1], [], []>} : vector<4x32xf32>, vector<32x32xf32>, vector<4x32xf32> -> vector<4x32xf32>
    %144 = vector.extract_strided_slice %143 {offsets = [0, 0], sizes = [2, 32], strides = [1, 1]} : vector<4x32xf32> to vector<2x32xf32>
    %145 = vector.extract_strided_slice %143 {offsets = [2, 0], sizes = [2, 32], strides = [1, 1]} : vector<4x32xf32> to vector<2x32xf32>
    %146 = vector.broadcast %121 : vector<1x32xf32> to vector<2x32xf32>
    %147 = arith.mulf %145, %146 : vector<2x32xf32>
    %148 = arith.mulf %144, %147 : vector<2x32xf32>
    %149 = vector.broadcast %122 : vector<1x32xf32> to vector<2x32xf32>
    %150 = arith.subf %149, %148 : vector<2x32xf32>
    %151 = vector.shape_cast %147 : vector<2x32xf32> to vector<2x1x32xf32>
    %152 = vector.broadcast %151 : vector<2x1x32xf32> to vector<2x64x32xf32>
    %153 = arith.mulf %125, %152 : vector<2x64x32xf32>
    %154 = vector.shape_cast %150 : vector<2x32xf32> to vector<2x1x32xf32>
    %155 = vector.broadcast %154 : vector<2x1x32xf32> to vector<2x64x32xf32>
    %156 = arith.addf %153, %155 : vector<2x64x32xf32>
    %157 = vector.shape_cast %156 : vector<2x64x32xf32> to vector<128x32xf32>
    %cst_80 = arith.constant 0.000000e+00 : f32
    %158 = vector.broadcast %cst_80 : f32 to vector<128x32xf32>
    %159 = arith.maximumf %157, %158 : vector<128x32xf32>
    %160 = arith.truncf %159 : vector<128x32xf32> to vector<128x32xbf16>
    %c0_81 = arith.constant 0 : index
    %c0_82 = arith.constant 0 : index
    %161 = vector.load %arg14[%c0_81, %c0_82] : memref<32x128xbf16, #tpu.memory_space<vmem>>, vector<32x128xbf16>
    %cst_83 = arith.constant dense<0.000000e+00> : vector<128x128xf32>
    %162 = tpu.matmul %160, %161, %cst_83 {dimension_numbers = #tpu.dot_dimension_numbers<[1], [0], [0], [1], [0, 0, 1, 1], [], []>} : vector<128x32xbf16>, vector<32x128xbf16>, vector<128x128xf32> -> vector<128x128xf32>
    %c0_84 = arith.constant 0 : index
    %c0_85 = arith.constant 0 : index
    %163 = vector.load %arg15[%c0_84, %c0_85] : memref<1x128xf32, #tpu.memory_space<vmem>>, vector<1x128xf32>
    %164 = vector.broadcast %163 : vector<1x128xf32> to vector<128x128xf32>
    %165 = arith.addf %162, %164 : vector<128x128xf32>
    %c0_86 = arith.constant 0 : index
    %c0_87 = arith.constant 0 : index
    %166 = vector.load %arg16[%c0_86, %c0_87] : memref<1x128xf32, #tpu.memory_space<vmem>>, vector<1x128xf32>
    %c0_88 = arith.constant 0 : index
    %c0_89 = arith.constant 0 : index
    %167 = vector.load %arg17[%c0_88, %c0_89] : memref<1x128xf32, #tpu.memory_space<vmem>>, vector<1x128xf32>
    %c0_90 = arith.constant 0 : index
    %c0_91 = arith.constant 0 : index
    %168 = vector.load %arg4[%c0_90, %c0_91] : memref<128x32xf32, #tpu.memory_space<vmem>>, vector<128x32xf32>
    %c0_92 = arith.constant 0 : index
    %c0_93 = arith.constant 0 : index
    %169 = vector.load %arg5[%c0_92, %c0_93] : memref<32x128xf32, #tpu.memory_space<vmem>>, vector<32x128xf32>
    %170 = vector.shape_cast %165 : vector<128x128xf32> to vector<2x64x128xf32>
    %cst_94 = arith.constant dense<0.000000e+00> : vector<2x128xf32>
    %171 = vector.multi_reduction <add>, %170, %cst_94 [1] : vector<2x64x128xf32> to vector<2x128xf32>
    %172 = arith.mulf %170, %170 : vector<2x64x128xf32>
    %cst_95 = arith.constant dense<0.000000e+00> : vector<2x128xf32>
    %173 = vector.multi_reduction <add>, %172, %cst_95 [1] : vector<2x64x128xf32> to vector<2x128xf32>
    %174 = tpu.concatenate %171, %173 in 0 : vector<2x128xf32>, vector<2x128xf32> -> vector<4x128xf32>
    %cst_96 = arith.constant dense<0.000000e+00> : vector<4x32xf32>
    %175 = tpu.matmul %174, %168, %cst_96 {dimension_numbers = #tpu.dot_dimension_numbers<[1], [0], [0], [1], [0, 0, 1, 1], [], []>} : vector<4x128xf32>, vector<128x32xf32>, vector<4x32xf32> -> vector<4x32xf32>
    %cst_97 = arith.constant 2.560000e+02 : f32
    %176 = vector.broadcast %cst_97 : f32 to vector<4x32xf32>
    %177 = arith.divf %175, %176 : vector<4x32xf32>
    %178 = vector.extract_strided_slice %177 {offsets = [0, 0], sizes = [2, 32], strides = [1, 1]} : vector<4x32xf32> to vector<2x32xf32>
    %179 = vector.extract_strided_slice %177 {offsets = [2, 0], sizes = [2, 32], strides = [1, 1]} : vector<4x32xf32> to vector<2x32xf32>
    %180 = arith.mulf %178, %178 : vector<2x32xf32>
    %181 = arith.subf %179, %180 : vector<2x32xf32>
    %cst_98 = arith.constant 0.000000e+00 : f32
    %182 = vector.broadcast %cst_98 : f32 to vector<2x32xf32>
    %183 = arith.maximumf %181, %182 : vector<2x32xf32>
    %cst_99 = arith.constant 9.99999974E-6 : f32
    %184 = vector.broadcast %cst_99 : f32 to vector<2x32xf32>
    %185 = arith.addf %183, %184 : vector<2x32xf32>
    %186 = math.rsqrt %185 : vector<2x32xf32>
    %187 = tpu.concatenate %178, %186 in 0 : vector<2x32xf32>, vector<2x32xf32> -> vector<4x32xf32>
    %cst_100 = arith.constant dense<0.000000e+00> : vector<4x128xf32>
    %188 = tpu.matmul %187, %169, %cst_100 {dimension_numbers = #tpu.dot_dimension_numbers<[1], [0], [0], [1], [0, 0, 1, 1], [], []>} : vector<4x32xf32>, vector<32x128xf32>, vector<4x128xf32> -> vector<4x128xf32>
    %189 = vector.extract_strided_slice %188 {offsets = [0, 0], sizes = [2, 128], strides = [1, 1]} : vector<4x128xf32> to vector<2x128xf32>
    %190 = vector.extract_strided_slice %188 {offsets = [2, 0], sizes = [2, 128], strides = [1, 1]} : vector<4x128xf32> to vector<2x128xf32>
    %191 = vector.broadcast %166 : vector<1x128xf32> to vector<2x128xf32>
    %192 = arith.mulf %190, %191 : vector<2x128xf32>
    %193 = arith.mulf %189, %192 : vector<2x128xf32>
    %194 = vector.broadcast %167 : vector<1x128xf32> to vector<2x128xf32>
    %195 = arith.subf %194, %193 : vector<2x128xf32>
    %196 = vector.shape_cast %192 : vector<2x128xf32> to vector<2x1x128xf32>
    %197 = vector.broadcast %196 : vector<2x1x128xf32> to vector<2x64x128xf32>
    %198 = arith.mulf %170, %197 : vector<2x64x128xf32>
    %199 = vector.shape_cast %195 : vector<2x128xf32> to vector<2x1x128xf32>
    %200 = vector.broadcast %199 : vector<2x1x128xf32> to vector<2x64x128xf32>
    %201 = arith.addf %198, %200 : vector<2x64x128xf32>
    %202 = vector.shape_cast %201 : vector<2x64x128xf32> to vector<128x128xf32>
    %c0_101 = arith.constant 0 : index
    %c0_102 = arith.constant 0 : index
    %203 = vector.load %arg18[%c0_101, %c0_102] : memref<64x128xbf16, #tpu.memory_space<vmem>>, vector<64x128xbf16>
    %cst_103 = arith.constant dense<0.000000e+00> : vector<128x128xf32>
    %204 = tpu.matmul %0, %203, %cst_103 {dimension_numbers = #tpu.dot_dimension_numbers<[1], [0], [0], [1], [0, 0, 1, 1], [], []>} : vector<128x64xbf16>, vector<64x128xbf16>, vector<128x128xf32> -> vector<128x128xf32>
    %c0_104 = arith.constant 0 : index
    %c0_105 = arith.constant 0 : index
    %205 = vector.load %arg19[%c0_104, %c0_105] : memref<1x128xf32, #tpu.memory_space<vmem>>, vector<1x128xf32>
    %206 = vector.broadcast %205 : vector<1x128xf32> to vector<128x128xf32>
    %207 = arith.addf %204, %206 : vector<128x128xf32>
    %c0_106 = arith.constant 0 : index
    %c0_107 = arith.constant 0 : index
    %208 = vector.load %arg20[%c0_106, %c0_107] : memref<1x128xf32, #tpu.memory_space<vmem>>, vector<1x128xf32>
    %c0_108 = arith.constant 0 : index
    %c0_109 = arith.constant 0 : index
    %209 = vector.load %arg21[%c0_108, %c0_109] : memref<1x128xf32, #tpu.memory_space<vmem>>, vector<1x128xf32>
    %c0_110 = arith.constant 0 : index
    %c0_111 = arith.constant 0 : index
    %210 = vector.load %arg4[%c0_110, %c0_111] : memref<128x32xf32, #tpu.memory_space<vmem>>, vector<128x32xf32>
    %c0_112 = arith.constant 0 : index
    %c0_113 = arith.constant 0 : index
    %211 = vector.load %arg5[%c0_112, %c0_113] : memref<32x128xf32, #tpu.memory_space<vmem>>, vector<32x128xf32>
    %212 = vector.shape_cast %207 : vector<128x128xf32> to vector<2x64x128xf32>
    %cst_114 = arith.constant dense<0.000000e+00> : vector<2x128xf32>
    %213 = vector.multi_reduction <add>, %212, %cst_114 [1] : vector<2x64x128xf32> to vector<2x128xf32>
    %214 = arith.mulf %212, %212 : vector<2x64x128xf32>
    %cst_115 = arith.constant dense<0.000000e+00> : vector<2x128xf32>
    %215 = vector.multi_reduction <add>, %214, %cst_115 [1] : vector<2x64x128xf32> to vector<2x128xf32>
    %216 = tpu.concatenate %213, %215 in 0 : vector<2x128xf32>, vector<2x128xf32> -> vector<4x128xf32>
    %cst_116 = arith.constant dense<0.000000e+00> : vector<4x32xf32>
    %217 = tpu.matmul %216, %210, %cst_116 {dimension_numbers = #tpu.dot_dimension_numbers<[1], [0], [0], [1], [0, 0, 1, 1], [], []>} : vector<4x128xf32>, vector<128x32xf32>, vector<4x32xf32> -> vector<4x32xf32>
    %cst_117 = arith.constant 2.560000e+02 : f32
    %218 = vector.broadcast %cst_117 : f32 to vector<4x32xf32>
    %219 = arith.divf %217, %218 : vector<4x32xf32>
    %220 = vector.extract_strided_slice %219 {offsets = [0, 0], sizes = [2, 32], strides = [1, 1]} : vector<4x32xf32> to vector<2x32xf32>
    %221 = vector.extract_strided_slice %219 {offsets = [2, 0], sizes = [2, 32], strides = [1, 1]} : vector<4x32xf32> to vector<2x32xf32>
    %222 = arith.mulf %220, %220 : vector<2x32xf32>
    %223 = arith.subf %221, %222 : vector<2x32xf32>
    %cst_118 = arith.constant 0.000000e+00 : f32
    %224 = vector.broadcast %cst_118 : f32 to vector<2x32xf32>
    %225 = arith.maximumf %223, %224 : vector<2x32xf32>
    %cst_119 = arith.constant 9.99999974E-6 : f32
    %226 = vector.broadcast %cst_119 : f32 to vector<2x32xf32>
    %227 = arith.addf %225, %226 : vector<2x32xf32>
    %228 = math.rsqrt %227 : vector<2x32xf32>
    %229 = tpu.concatenate %220, %228 in 0 : vector<2x32xf32>, vector<2x32xf32> -> vector<4x32xf32>
    %cst_120 = arith.constant dense<0.000000e+00> : vector<4x128xf32>
    %230 = tpu.matmul %229, %211, %cst_120 {dimension_numbers = #tpu.dot_dimension_numbers<[1], [0], [0], [1], [0, 0, 1, 1], [], []>} : vector<4x32xf32>, vector<32x128xf32>, vector<4x128xf32> -> vector<4x128xf32>
    %231 = vector.extract_strided_slice %230 {offsets = [0, 0], sizes = [2, 128], strides = [1, 1]} : vector<4x128xf32> to vector<2x128xf32>
    %232 = vector.extract_strided_slice %230 {offsets = [2, 0], sizes = [2, 128], strides = [1, 1]} : vector<4x128xf32> to vector<2x128xf32>
    %233 = vector.broadcast %208 : vector<1x128xf32> to vector<2x128xf32>
    %234 = arith.mulf %232, %233 : vector<2x128xf32>
    %235 = arith.mulf %231, %234 : vector<2x128xf32>
    %236 = vector.broadcast %209 : vector<1x128xf32> to vector<2x128xf32>
    %237 = arith.subf %236, %235 : vector<2x128xf32>
    %238 = vector.shape_cast %234 : vector<2x128xf32> to vector<2x1x128xf32>
    %239 = vector.broadcast %238 : vector<2x1x128xf32> to vector<2x64x128xf32>
    %240 = arith.mulf %212, %239 : vector<2x64x128xf32>
    %241 = vector.shape_cast %237 : vector<2x128xf32> to vector<2x1x128xf32>
    %242 = vector.broadcast %241 : vector<2x1x128xf32> to vector<2x64x128xf32>
    %243 = arith.addf %240, %242 : vector<2x64x128xf32>
    %244 = vector.shape_cast %243 : vector<2x64x128xf32> to vector<128x128xf32>
    %245 = arith.addf %202, %244 : vector<128x128xf32>
    %cst_121 = arith.constant 0.000000e+00 : f32
    %246 = vector.broadcast %cst_121 : f32 to vector<128x128xf32>
    %247 = arith.maximumf %245, %246 : vector<128x128xf32>
    %c0_122 = arith.constant 0 : index
    %c0_123 = arith.constant 0 : index
    %248 = vector.load %arg22[%c0_122, %c0_123] : memref<128x128xf32, #tpu.memory_space<vmem>>, vector<128x128xf32>
    tpu.vector_store %arg22[%c0_122, %c0_123], %247 {strides = array<i32>} : memref<128x128xf32, #tpu.memory_space<vmem>>, vector<128x128xf32>,
    return
  }
  func.func @transform_0(%arg0: i32) -> (i32, i32) {
    %c0_i32 = arith.constant 0 : i32
    %c0_i32_0 = arith.constant 0 : i32
    return %arg0, %c0_i32 : i32, i32
  }
  func.func @transform_1(%arg0: i32) -> (i32, i32) {
    %c0_i32 = arith.constant 0 : i32
    %c0_i32_0 = arith.constant 0 : i32
    %c0_i32_1 = arith.constant 0 : i32
    return %c0_i32, %c0_i32_0 : i32, i32
  }
  func.func @transform_2(%arg0: i32) -> (i32, i32) {
    %c0_i32 = arith.constant 0 : i32
    %c0_i32_0 = arith.constant 0 : i32
    %c0_i32_1 = arith.constant 0 : i32
    return %c0_i32, %c0_i32_0 : i32, i32
  }
  func.func @transform_3(%arg0: i32) -> (i32, i32) {
    %c0_i32 = arith.constant 0 : i32
    %c0_i32_0 = arith.constant 0 : i32
    %c0_i32_1 = arith.constant 0 : i32
    return %c0_i32, %c0_i32_0 : i32, i32
  }
  func.func @transform_4(%arg0: i32) -> (i32, i32) {
    %c0_i32 = arith.constant 0 : i32
    %c0_i32_0 = arith.constant 0 : i32
    %c0_i32_1 = arith.constant 0 : i32
    return %c0_i32, %c0_i32_0 : i32, i32
  }
  func.func @transform_5(%arg0: i32) -> (i32, i32) {
    %c0_i32 = arith.constant 0 : i32
    %c0_i32_0 = arith.constant 0 : i32
    %c0_i32_1 = arith.constant 0 : i32
    return %c0_i32, %c0_i32_0 : i32, i32
  }
  func.func @transform_6(%arg0: i32) -> (i32, i32) {
    %c0_i32 = arith.constant 0 : i32
    %c0_i32_0 = arith.constant 0 : i32
    %c0_i32_1 = arith.constant 0 : i32
    return %c0_i32, %c0_i32_0 : i32, i32
  }
  func.func @transform_7(%arg0: i32) -> (i32, i32) {
    %c0_i32 = arith.constant 0 : i32
    %c0_i32_0 = arith.constant 0 : i32
    %c0_i32_1 = arith.constant 0 : i32
    return %c0_i32, %c0_i32_0 : i32, i32
  }
  func.func @transform_8(%arg0: i32) -> (i32, i32) {
    %c0_i32 = arith.constant 0 : i32
    %c0_i32_0 = arith.constant 0 : i32
    %c0_i32_1 = arith.constant 0 : i32
    return %c0_i32, %c0_i32_0 : i32, i32
  }
  func.func @transform_9(%arg0: i32) -> (i32, i32, i32) {
    %c0_i32 = arith.constant 0 : i32
    %c0_i32_0 = arith.constant 0 : i32
    %c0_i32_1 = arith.constant 0 : i32
    %c0_i32_2 = arith.constant 0 : i32
    return %c0_i32, %c0_i32_0, %c0_i32_1 : i32, i32, i32
  }
  func.func @transform_10(%arg0: i32) -> (i32, i32) {
    %c0_i32 = arith.constant 0 : i32
    %c0_i32_0 = arith.constant 0 : i32
    %c0_i32_1 = arith.constant 0 : i32
    return %c0_i32, %c0_i32_0 : i32, i32
  }
  func.func @transform_11(%arg0: i32) -> (i32, i32) {
    %c0_i32 = arith.constant 0 : i32
    %c0_i32_0 = arith.constant 0 : i32
    %c0_i32_1 = arith.constant 0 : i32
    return %c0_i32, %c0_i32_0 : i32, i32
  }
  func.func @transform_12(%arg0: i32) -> (i32, i32) {
    %c0_i32 = arith.constant 0 : i32
    %c0_i32_0 = arith.constant 0 : i32
    %c0_i32_1 = arith.constant 0 : i32
    return %c0_i32, %c0_i32_0 : i32, i32
  }
  func.func @transform_13(%arg0: i32) -> (i32, i32) {
    %c0_i32 = arith.constant 0 : i32
    %c0_i32_0 = arith.constant 0 : i32
    %c0_i32_1 = arith.constant 0 : i32
    return %c0_i32, %c0_i32_0 : i32, i32
  }
  func.func @transform_14(%arg0: i32) -> (i32, i32) {
    %c0_i32 = arith.constant 0 : i32
    %c0_i32_0 = arith.constant 0 : i32
    %c0_i32_1 = arith.constant 0 : i32
    return %c0_i32, %c0_i32_0 : i32, i32
  }
  func.func @transform_15(%arg0: i32) -> (i32, i32) {
    %c0_i32 = arith.constant 0 : i32
    %c0_i32_0 = arith.constant 0 : i32
    %c0_i32_1 = arith.constant 0 : i32
    return %c0_i32, %c0_i32_0 : i32, i32
  }
  func.func @transform_16(%arg0: i32) -> (i32, i32) {
    %c0_i32 = arith.constant 0 : i32
    %c0_i32_0 = arith.constant 0 : i32
    %c0_i32_1 = arith.constant 0 : i32
    return %c0_i32, %c0_i32_0 : i32, i32
  }
  func.func @transform_17(%arg0: i32) -> (i32, i32) {
    %c0_i32 = arith.constant 0 : i32
    %c0_i32_0 = arith.constant 0 : i32
    %c0_i32_1 = arith.constant 0 : i32
    return %c0_i32, %c0_i32_0 : i32, i32
  }
  func.func @transform_18(%arg0: i32) -> (i32, i32) {
    %c0_i32 = arith.constant 0 : i32
    %c0_i32_0 = arith.constant 0 : i32
    %c0_i32_1 = arith.constant 0 : i32
    return %c0_i32, %c0_i32_0 : i32, i32
  }
  func.func @transform_19(%arg0: i32) -> (i32, i32) {
    %c0_i32 = arith.constant 0 : i32
    %c0_i32_0 = arith.constant 0 : i32
    %c0_i32_1 = arith.constant 0 : i32
    return %c0_i32, %c0_i32_0 : i32, i32
  }
  func.func @transform_20(%arg0: i32) -> (i32, i32) {
    %c0_i32 = arith.constant 0 : i32
    %c0_i32_0 = arith.constant 0 : i32
    %c0_i32_1 = arith.constant 0 : i32
    return %c0_i32, %c0_i32_0 : i32, i32
  }
  func.func @transform_21(%arg0: i32) -> (i32, i32) {
    %c0_i32 = arith.constant 0 : i32
    %c0_i32_0 = arith.constant 0 : i32
    return %arg0, %c0_i32 : i32, i32
  }
}

</mosaic_0001>

<bundles_post_ra>
// kernel: _lambda_.1
= control target key start
LH: loop header
LB: loop body
LE: loop exit
PB: predicated region body
PF: predicated region fallthrough
CT: control target
= control target key end

     0   :  { %s6318_s0 = inlined_call_operand.vmem [shape: bf16[128,64], index: 0, kind: input, shape index: {}]   ;;  %s6319_s1 = inlined_call_operand.vmem [shape: f32[32,32], index: 1, kind: input, shape index: {}]   ;;  %s6320_s2 = inlined_call_operand.vmem [shape: f32[32,32], index: 2, kind: input, shape index: {}]   ;;  %s6321_s3 = inlined_call_operand.vmem [shape: f32[128,32], index: 3, kind: input, shape index: {}]   ;;  %s6322_s4 = inlined_call_operand.vmem [shape: f32[32,128], index: 4, kind: input, shape index: {}]   ;;  %s6323_s5 = inlined_call_operand.vmem [shape: bf16[64,32], index: 5, kind: input, shape index: {}]   ;;  %s6324_s6 = inlined_call_operand.vmem [shape: f32[1,32], index: 6, kind: input, shape index: {}]   ;;  %s6325_s7 = inlined_call_operand.vmem [shape: f32[1,32], index: 7, kind: input, shape index: {}]   ;;  %s6326_s8 = inlined_call_operand.vmem [shape: f32[1,32], index: 8, kind: input, shape index: {}]   ;;  %s6327_s9 = inlined_call_operand.vmem [shape: bf16[3,96,32], index: 9, kind: input, shape index: {}]   ;;  %s6328_s10 = inlined_call_operand.vmem [shape: f32[1,32], index: 10, kind: input, shape index: {}]   ;;  %s6329_s11 = inlined_call_operand.vmem [shape: f32[1,32], index: 11, kind: input, shape index: {}]   ;;  %s6330_s12 = inlined_call_operand.vmem [shape: f32[1,32], index: 12, kind: input, shape index: {}]   ;;  %s6331_s13 = inlined_call_operand.vmem [shape: bf16[32,128], index: 13, kind: input, shape index: {}]   ;;  %s6332_s14 = inlined_call_operand.vmem [shape: f32[1,128], index: 14, kind: input, shape index: {}]   ;;  %s6333_s15 = inlined_call_operand.vmem [shape: f32[1,128], index: 15, kind: input, shape index: {}]   ;;  %s6334_s16 = inlined_call_operand.vmem [shape: f32[1,128], index: 16, kind: input, shape index: {}]   ;;  %s6335_s17 = inlined_call_operand.vmem [shape: bf16[64,128], index: 17, kind: input, shape index: {}]   ;;  %s6336_s18 = inlined_call_operand.vmem [shape: f32[1,128], index: 18, kind: input, shape index: {}]   ;;  %s6337_s19 = inlined_call_operand.vmem [shape: f32[1,128], index: 19, kind: input, shape index: {}]   ;;  %s6338_s20 = inlined_call_operand.vmem [shape: f32[1,128], index: 20, kind: input, shape index: {}]   ;;  %s6339_s21 = inlined_call_operand.hbm [shape: f32[128,128], index: 21, kind: output, shape index: {}]  }
   0x1   :  { %6360 = sst [smem:[#allocation17_spill]] %s6318_s0 }
   0x2   :  { %6361 = sst [smem:[#allocation18_spill]] %s6319_s1 }
   0x3   :  { %6362 = sst [smem:[#allocation19_spill]] %s6320_s2 }
   0x4   :  { %6363 = sst [smem:[#allocation20_spill]] %s6321_s3 }
   0x5   :  { %6364 = sst [smem:[#allocation21_spill]] %s6322_s4 }
   0x6   :  { %6365 = sst [smem:[#allocation22_spill]] %s6323_s5 }
   0x7   :  { %s6366_s26 = sld [smem:[#allocation22_spill]]  ;;  %vm165_vm0 = vcmask 523264  }
   0x8   :  { %s6367_s30 = sld [smem:[#allocation17_spill]] }
   0xd   :  { %v4334_v0 = vld [vmem:[%s6366_s26 + $0x18] sm:$0xff]   ;;  %v4335_v1 = vld [vmem:[%s6366_s26 + $0x10] sm:$0xff]   ;;  %v4336_v2 = vld [vmem:[%s6366_s26 + $0x8] sm:$0xff]  }
   0xe   :  { %3833 = vmatprep.subr.bf16.mxu0 %v4334_v0  ;;  %v4338_v3 = vld [vmem:[%s6367_s30] sm:$0xff]   ;;  %v4339_v5 = vld [vmem:[%s6367_s30 + $0x8] sm:$0xff]   ;;  %v4340_v6 = vld [vmem:[%s6367_s30 + $0x10] sm:$0xff]  }
   0xf   :  { %3834 = vmatpush3.bf16.msra.mxu0 %v4334_v0  ;;  %3841 = vmatprep.mubr.msk.bf16.mxu0 %vm165_vm0, %v4338_v3  ;;  %v4337_v4 = vld [vmem:[%s6366_s26] sm:$0xff]   ;;  %v4341_v7 = vld [vmem:[%s6367_s30 + $0x18] sm:$0xff]  }
  0x10   :  { %3835 = vmatprep.subr.bf16.mxu0 %v4335_v1  ;;  %v4342_v8 = vld [vmem:[%s6367_s30 + $0x20] sm:$0xff]  }
  0x13   :  { %3836 = vmatpush3.bf16.msra.mxu0 %v4335_v1 }
  0x14   :  { %3837 = vmatprep.subr.bf16.mxu0 %v4336_v2 }
  0x17   :  { %3838 = vmatpush3.bf16.msra.mxu0 %v4336_v2 }
  0x18   :  { %3839 = vmatprep.subr.bf16.mxu0 %v4337_v4 }
  0x1b   :  { %3840 = vmatpush3.bf16.msra.mxu0 %v4337_v4 }
  0x1e   :  { %3842 = vmatmul.mubr.msk.bf16.vlgmr.msra.gmra.mxu0 %vm165_vm0, %v4339_v5 }
  0x1f   :  { %3845 = vmatprep.mubr.msk.bf16.mxu0 %vm165_vm0, %v4340_v6 }
  0x26   :  { %3846 = vmatmul.mubr.msk.bf16.gmra.mxu0 %vm165_vm0, %v4341_v7 }
  0x27   :  { %3849 = vmatprep.mubr.msk.bf16.mxu0 %vm165_vm0, %v4342_v8 }
  0x28   :  { %26 = vsyncpa [#allocation4], 0  ;;  %v4343_v9 = vld [vmem:[%s6367_s30 + $0x28] sm:$0xff]   ;;  %v4344_v10 = vld [vmem:[%s6367_s30 + $0x30] sm:$0xff]   ;;  %vm297_vm1 = vcmask 261120   ;;  %s6368_s24 = sld [smem:[#allocation18_spill]] }
  0x29   :  { %v4345_v11 = vld [vmem:[%s6367_s30 + $0x38] sm:$0xff]   ;;  %v6347_v13 = vmov 0.0   ;;  %vm4409_vm2 = vmmov 0   ;;  %v4608_v18 = vld [vmem:[%s6324_s6] ss:$0 sm:$0xff]  ;;  %vm400_vm3 = vcmask 1041409  }
  0x2a   :  { %3857 = vmatprep.subr.mxu1 %v6347_v13  ;;  %700 = vst.msk [vmem:[#allocation2] sm:$0xff] %vm297_vm1, %v6347_v13  ;;  %701 = vst.msk [vmem:[#allocation2 + $0x8] sm:$0xff] %vm297_vm1, %v6347_v13  ;;  %3865 = vmatprep.mubr.msk.f32.mxu1 %vm4409_vm2, %v6347_v13  ;;  %vm405_vm4 = vcmask 1043459   ;;  %vm408_vm5 = vcmask 1041408   ;;  %s6369_s5 = sld [smem:[#allocation19_spill]]  ;;  %s4411_s2 = smov 32  }
  0x2b   :  { %702 = vst.msk [vmem:[#allocation2 + $0x60] sm:$0xff] %vm297_vm1, %v6347_v13  ;;  %703 = vst.msk [vmem:[#allocation2 + $0x68] sm:$0xff] %vm297_vm1, %v6347_v13  ;;  %s4412_s25 = smov 64   ;;  %s6379_s23 = sld [smem:[#allocation20_spill]] }
  0x2c   :  { %704 = vst.msk [vmem:[#allocation2 + $0x50] sm:$0xff] %vm297_vm1, %v6347_v13  ;;  %705 = vst.msk [vmem:[#allocation2 + $0x58] sm:$0xff] %vm297_vm1, %v6347_v13 }
  0x2d   :  { %706 = vst.msk [vmem:[#allocation2 + $0xb0] sm:$0xff] %vm297_vm1, %v6347_v13  ;;  %707 = vst.msk [vmem:[#allocation2 + $0xb8] sm:$0xff] %vm297_vm1, %v6347_v13 }
  0x2e   :  { %3850 = vmatmul.mubr.msk.bf16.gmra.mxu0 %vm165_vm0, %v4343_v9  ;;  %v292_v12 = vld [vmem:[%s6368_s24 + $0x18] sm:$0xff]  ;;  %v291_v14 = vld [vmem:[%s6368_s24 + $0x10] sm:$0xff]  ;;  %v290_v15 = vld [vmem:[%s6368_s24 + $0x8] sm:$0xff] }
  0x2f   :  { %3853 = vmatprep.mubr.msk.bf16.mxu0 %vm165_vm0, %v4344_v10  ;;  %3858 = vmatpush3.msra.mxu1 %v292_v12  ;;  %v289_v16 = vld [vmem:[%s6368_s24] sm:$0xff] }
  0x30   :  { %3859 = vmatprep.subr.mxu1 %v6347_v13 }
  0x31   :  { %3860 = vmatpush3.msra.mxu1 %v291_v14 }
  0x32   :  { %3861 = vmatprep.subr.mxu1 %v6347_v13 }
  0x33   :  { %3862 = vmatpush3.msra.mxu1 %v290_v15 }
  0x34   :  { %3863 = vmatprep.subr.mxu1 %v6347_v13 }
  0x35   :  { %3864 = vmatpush3.msra.mxu1 %v289_v16 }
  0x36   :  { %3854 = vmatmul.mubr.msk.bf16.gmra.mxu0 %vm165_vm0, %v4345_v11  ;;  %3868 = vmatprep.subr.mxu1 %v6347_v13 }
  0xde   :  { %v3843_v17 = vpop.f32.mrf.mxu0 }
  0xdf   :  { %v4614_v22 = vadd.f32 %v3843_v17, %v4608_v18 }
  0xe0   :  { %v224_v19 = vpop.f32.mrf.mxu0 }
  0xe1   :  { %v4611_v20 = vadd.f32 %v4608_v18, %v224_v19  ;;  %v342_v28 = vmul.f32 %v4614_v22, %v4614_v22  ;;  %v301_v32 = vsel %vm297_vm1, %v4614_v22, 0.0 }
  0xe2   :  { %v3844_v21 = vpop.f32.mrf.mxu0 }
  0xe3   :  { %v340_v24 = vmul.f32 %v4611_v20, %v4611_v20  ;;  %v4619_v25 = vadd.f32 %v3844_v21, %v4608_v18  ;;  %v298_v29 = vsel %vm297_vm1, %v4611_v20, 0.0  ;;  %v359_v42 = vsel %vm297_vm1, %v342_v28, 0.0 }
  0xe4   :  { %v227_v23 = vpop.f32.mrf.mxu0 }
  0xe5   :  { %v4622_v26 = vadd.f32 %v4608_v18, %v227_v23  ;;  %v356_v35 = vsel %vm297_vm1, %v340_v24, 0.0  ;;  %v343_v36 = vmul.f32 %v4619_v25, %v4619_v25  ;;  %v303_v43 = vsel %vm297_vm1, %v4619_v25, 0.0 }
  0xe6   :  { %v3847_v27 = vpop.f32.mrf.mxu0 }
  0xe7   :  { %v299_v30 = vsel %vm297_vm1, %v4622_v26, 0.0  ;;  %v341_v31 = vmul.f32 %v4622_v26, %v4622_v26  ;;  %v361_v48 = vsel %vm297_vm1, %v343_v36, 0.0  ;;  %v4648_v49 = vadd.f32 %v3847_v27, %v4608_v18 }
  0xe8   :  { %v300_v33 = vadd.f32 %v299_v30, %v298_v29  ;;  %v240_v34 = vpop.f32.mrf.mxu0 }
  0xe9   :  { %v357_v37 = vsel %vm297_vm1, %v341_v31, 0.0  ;;  %v4639_v38 = vadd.f32 %v4608_v18, %v240_v34  ;;  %v346_v61 = vmul.f32 %v4648_v49, %v4648_v49  ;;  %v309_v4 = vsel %vm297_vm1, %v4648_v49, 0.0 }
  0xea   :  { %v302_v39 = vadd.f32 %v301_v32, %v300_v33  ;;  %v358_v40 = vadd.f32 %v357_v37, %v356_v35  ;;  %v3848_v41 = vpop.f32.mrf.mxu0 }
  0xeb   :  { %v344_v44 = vmul.f32 %v4639_v38, %v4639_v38  ;;  %v305_v50 = vsel %vm297_vm1, %v4639_v38, 0.0  ;;  %v4661_v59 = vadd.f32 %v3848_v41, %v4608_v18  ;;  %v367_v7 = vsel %vm297_vm1, %v346_v61, 0.0 }
  0xec   :  { %v360_v45 = vadd.f32 %v359_v42, %v358_v40  ;;  %v304_v46 = vadd.f32 %v303_v43, %v302_v39  ;;  %v243_v47 = vpop.f32.mrf.mxu0 }
  0xed   :  { %v4653_v51 = vadd.f32 %v4608_v18, %v243_v47  ;;  %v363_v55 = vsel %vm297_vm1, %v344_v44, 0.0  ;;  %v347_v5 = vmul.f32 %v4661_v59, %v4661_v59  ;;  %v311_v21 = vsel %vm297_vm1, %v4661_v59, 0.0 }
  0xee   :  { %v306_v52 = vadd.f32 %v305_v50, %v304_v46  ;;  %v362_v53 = vadd.f32 %v361_v48, %v360_v45  ;;  %v3851_v54 = vpop.f32.mrf.mxu0 }
  0xef   :  { %v307_v56 = vsel %vm297_vm1, %v4653_v51, 0.0  ;;  %v345_v57 = vmul.f32 %v4653_v51, %v4653_v51  ;;  %v4670_v3 = vadd.f32 %v3851_v54, %v4608_v18  ;;  %v369_v23 = vsel %vm297_vm1, %v347_v5, 0.0 }
  0xf0   :  { %v364_v58 = vadd.f32 %v363_v55, %v362_v53  ;;  %v256_v60 = vpop.f32.mrf.mxu0  ;;  %v308_v0 = vadd.f32 %v307_v56, %v306_v52 }
  0xf1   :  { %v365_v62 = vsel %vm297_vm1, %v345_v57, 0.0  ;;  %v4667_v63 = vadd.f32 %v4608_v18, %v256_v60  ;;  %v350_v15 = vmul.f32 %v4670_v3, %v4670_v3  ;;  %v322_v24 = vsel %vm297_vm1, %v4670_v3, 0.0 }
  0xf2   :  { %v366_v1 = vadd.f32 %v365_v62, %v364_v58  ;;  %v3852_v2 = vpop.f32.mrf.mxu0  ;;  %v310_v11 = vadd.f32 %v309_v4, %v308_v0 }
  0xf3   :  { %v348_v8 = vmul.f32 %v4667_v63, %v4667_v63  ;;  %v4680_v9 = vadd.f32 %v3852_v2, %v4608_v18  ;;  %v319_v16 = vsel %vm297_vm1, %v4667_v63, 0.0  ;;  %v380_v39 = vsel %vm297_vm1, %v350_v15, 0.0 }
  0xf4   :  { %v259_v6 = vpop.f32.mrf.mxu0  ;;  %v368_v12 = vadd.f32 %v367_v7, %v366_v1  ;;  %v312_v33 = vadd.f32 %v311_v21, %v310_v11 }
  0xf5   :  { %v4683_v10 = vadd.f32 %v4608_v18, %v259_v6  ;;  %v377_v29 = vsel %vm297_vm1, %v348_v8, 0.0  ;;  %v351_v30 = vmul.f32 %v4680_v9, %v4680_v9  ;;  %v324_v40 = vsel %vm297_vm1, %v4680_v9, 0.0 }
  0xf6   :  { %v3855_v14 = vpop.f32.mrf.mxu0  ;;  %v370_v34 = vadd.f32 %v369_v23, %v368_v12  ;;  %v313_v52 = vrot.slane %v312_v33, 4 }
  0xf7   :  { %v320_v17 = vsel %vm297_vm1, %v4683_v10, 0.0  ;;  %v349_v19 = vmul.f32 %v4683_v10, %v4683_v10  ;;  %v4709_v41 = vadd.f32 %v3855_v14, %v4608_v18  ;;  %v382_v46 = vsel %vm297_vm1, %v351_v30, 0.0 }
  0xf8   :  { %v321_v27 = vadd.f32 %v320_v17, %v319_v16  ;;  %v272_v28 = vpop.f32.mrf.mxu0  ;;  %v371_v53 = vrot.slane %v370_v34, 4  ;;  %v314_v2 = vadd.f32 %v313_v52, %v312_v33  ;;  %v295_v52 = vld [vmem:[%s6369_s5 + $0x10] sm:$0xff] }
  0xf9   :  { %v378_v31 = vsel %vm297_vm1, %v349_v19, 0.0  ;;  %v4703_v32 = vadd.f32 %v4608_v18, %v272_v28  ;;  %v354_v56 = vmul.f32 %v4709_v41, %v4709_v41 }
  0xfa   :  { %v323_v35 = vadd.f32 %v322_v24, %v321_v27  ;;  %v379_v36 = vadd.f32 %v378_v31, %v377_v29  ;;  %v3856_v37 = vpop.f32.mrf.mxu0  ;;  %v372_v4 = vadd.f32 %v371_v53, %v370_v34  ;;  %v315_v15 = vrot.slane %v314_v2, 2  ;;  %v294_v53 = vld [vmem:[%s6369_s5 + $0x8] sm:$0xff] }
  0xfb   :  { %v352_v42 = vmul.f32 %v4703_v32, %v4703_v32  ;;  %v326_v47 = vsel %vm297_vm1, %v4703_v32, 0.0  ;;  %v4717_v48 = vadd.f32 %v3856_v37, %v4608_v18  ;;  %v388_v7 = vsel %vm297_vm1, %v354_v56, 0.0 }
  0xfc   :  { %v381_v43 = vadd.f32 %v380_v39, %v379_v36  ;;  %v325_v44 = vadd.f32 %v324_v40, %v323_v35  ;;  %v275_v45 = vpop.f32.mrf.mxu0  ;;  %v373_v19 = vrot.slane %v372_v4, 2  ;;  %v316_v28 = vadd.f32 %v315_v15, %v314_v2  ;;  %v4346_v2 = vld [vmem:[%s6327_s9 + $0x58] sm:$0xff]  }
  0xfd   :  { %v4720_v50 = vadd.f32 %v4608_v18, %v275_v45  ;;  %v384_v57 = vsel %vm297_vm1, %v352_v42, 0.0  ;;  %v330_v18 = vsel %vm297_vm1, %v4709_v41, 0.0  ;;  %v355_v0 = vmul.f32 %v4717_v48, %v4717_v48 }
  0xfe   :  { %v327_v54 = vadd.f32 %v326_v47, %v325_v44  ;;  %v383_v55 = vadd.f32 %v382_v46, %v381_v43  ;;  %v332_v8 = vsel %vm297_vm1, %v4717_v48, 0.0  ;;  %v374_v29 = vadd.f32 %v373_v19, %v372_v4  ;;  %v296_v47 = vld [vmem:[%s6369_s5 + $0x18] sm:$0xff]  ;;  %v4347_v4 = vld [vmem:[%s6327_s9 + $0x50] sm:$0xff]  }
  0xff   :  { %v328_v58 = vsel %vm297_vm1, %v4720_v50, 0.0  ;;  %v353_v60 = vmul.f32 %v4720_v50, %v4720_v50  ;;  %v390_v14 = vsel %vm297_vm1, %v355_v0, 0.0  ;;  %v317_v33 = vrot.slane %v316_v28, 1 }
 0x100   :  { %v385_v61 = vadd.f32 %v384_v57, %v383_v55  ;;  %v329_v62 = vadd.f32 %v328_v58, %v327_v54  ;;  %v375_v35 = vrot.slane %v374_v29, 1  ;;  %v293_v54 = vld [vmem:[%s6369_s5] sm:$0xff] }
 0x101   :  { %v386_v1 = vsel %vm297_vm1, %v353_v60, 0.0  ;;  %v318_v40 = vadd.f32 %v317_v33, %v316_v28 }
 0x102   :  { %v331_v5 = vadd.f32 %v330_v18, %v329_v62  ;;  %v387_v6 = vadd.f32 %v386_v1, %v385_v61  ;;  %v376_v42 = vadd.f32 %v375_v35, %v374_v29 }
 0x104   :  { %v333_v11 = vadd.f32 %v332_v8, %v331_v5  ;;  %v389_v12 = vadd.f32 %v388_v7, %v387_v6  ;;  %v4410_v5 = vmov 1966171168   ;;  %v588_v7 = vlaneseq }
 0x105   :  { %v586_v6 = vunpack.c.l.s4 %v4410_v5 }
 0x106   :  { %v334_v16 = vrot.slane %v333_v11, 4  ;;  %v391_v17 = vadd.f32 %v390_v14, %v389_v12  ;;  %v3574_v12 = vld [vmem:[%s6325_s7] ss:$0 sm:$0xff] }
 0x107   :  { %v587_v8 = vunpack.c.0.s8 %v586_v6 }
 0x108   :  { %v335_v21 = vadd.f32 %v334_v16, %v333_v11  ;;  %v392_v23 = vrot.slane %v391_v17, 4  ;;  %v4767_v11 = vshrl.u32 %v588_v7, 7 }
 0x10a   :  { %v336_v24 = vrot.slane %v335_v21, 2  ;;  %v393_v27 = vadd.f32 %v392_v23, %v391_v17  ;;  %v4773_v14 = vsub.s32 %v587_v8, %v4767_v11  ;;  %v3575_v23 = vld [vmem:[%s6326_s8] ss:$0 sm:$0xff]  ;;  %v4781_v29 = vsub.s32 0, %v4767_v11 }
 0x10c   :  { %v337_v30 = vadd.f32 %v336_v24, %v335_v21  ;;  %v394_v31 = vrot.slane %v393_v27, 2 }
 0x10e   :  { %v338_v34 = vrot.slane %v337_v30, 1  ;;  %v395_v36 = vadd.f32 %v394_v31, %v393_v27 }
 0x110   :  { %v339_v37 = vadd.f32 %v338_v34, %v337_v30  ;;  %v396_v39 = vrot.slane %v395_v36, 1  ;;  %v4784_v30 = vadd.s32 8, %v4767_v11 }
 0x112   :  { %v397_v43 = vadd.f32 %v396_v39, %v395_v36  ;;  %v401_v44 = vsel %vm400_vm3, %v339_v37, %v318_v40  ;;  %v737_v39 = vand.u32 7, %v4767_v11  ;;  %v744_v40 = vand.u32 7, %v4784_v30 }
 0x114   :  { %v406_v45 = vsel %vm405_vm4, %v397_v43, %v376_v42  ;;  %v4792_v42 = vadd.s32 16, %v4767_v11  ;;  %v4795_v43 = vadd.s32 24, %v4767_v11  ;;  %vm4846_vm6 = vcmp.lt.s32.totalorder %v737_v39, 7 }
 0x115   :  { %v409_v46 = vsel %vm408_vm5, %v401_v44, %v406_v45  ;;  %vm4852_vm7 = vcmp.lt.s32.totalorder %v744_v40, 7  ;;  %vm829_vm14 = vcmp.ge.s32.totalorder %v737_v39, 1  ;;  %vm830_vm15 = vcmp.ge.s32.totalorder %v744_v40, 1 }
 0x116   :  { %3866 = vmatmul.mubr.msk.f32.vlgmr.msra.gmra.mxu1 %vm297_vm1, %v409_v46 }
 0x117   :  { %3876 = vmatprep.mubr.msk.f32.mxu1 %vm4409_vm2, %v6347_v13  ;;  %3869 = vmatpush3.msra.mxu1 %v296_v47 }
 0x118   :  { %3870 = vmatprep.subr.mxu1 %v6347_v13 }
 0x119   :  { %3871 = vmatpush3.msra.mxu1 %v295_v52 }
 0x11a   :  { %3872 = vmatprep.subr.mxu1 %v6347_v13 }
 0x11b   :  { %3873 = vmatpush3.msra.mxu1 %v294_v53 }
 0x11c   :  { %3874 = vmatprep.subr.mxu1 %v6347_v13 }
 0x11d   :  { %3875 = vmatpush3.msra.mxu1 %v293_v54 }
 0x11e   :  { %3879 = vmatprep.subr.bf16.mxu1 %v4346_v2 }
 0x1d6   :  { %v479_v55 = vpop.f32.mrf.mxu1 }
 0x1d7   :  { %v484_v56 = vmul.f32 0.015625, %v479_v55 }
 0x1d8   :  { %v3867_v57 = vpop.f32.mrf.mxu1 }
 0x1d9   :  { %v485_v58 = vmul.f32 %v484_v56, %v484_v56 }
 0x1db   :  { %v487_v60 = vrot.slane %v485_v58, 6 }
 0x1dd   :  { %v489_v61 = vsub.f32 %v484_v56, %v487_v60 }
 0x1df   :  { %v490_v62 = vmax.f32 %v489_v61, 0.0 }
 0x1e1   :  { %v491_v18 = vadd.f32 1e-05, %v490_v62 }
 0x1e3   :  { %4370 = vrsqrt.f32 %v491_v18 }
 0x1f0   :  { %v4371_v0 = vpop.eup %4370 }
 0x1f1   :  { %v493_v1 = vsel %vm408_vm5, %v484_v56, %v4371_v0 }
 0x1f2   :  { %3877 = vmatmul.mubr.msk.f32.vlgmr.msra.gmra.mxu1 %vm297_vm1, %v493_v1 }
 0x1f3   :  { %3880 = vmatpush3.bf16.msra.mxu1 %v4346_v2 }
 0x1f4   :  { %3881 = vmatprep.subr.bf16.mxu1 %v4347_v4 }
 0x1f7   :  { %3882 = vmatpush3.bf16.msra.mxu1 %v4347_v4 }
 0x2b2   :  { %v563_v15 = vpop.f32.mrf.mxu1 }
 0x2b3   :  { %v573_v16 = vmul.f32 %v3574_v12, %v563_v15 }
 0x2b4   :  { %v3878_v17 = vpop.f32.mrf.mxu1 }
 0x2b5   :  { %v575_v19 = vrot.slane %v573_v16, 2  ;;  %v591_v21 = vrot.slane %v573_v16, %v4773_v14  ;;  %v4348_v16 = vld [vmem:[%s6327_s9 + $0x48] sm:$0xff]  }
 0x2b6   :  { %3883 = vmatprep.subr.bf16.mxu1 %v4348_v16 }
 0x2b7   :  { %v577_v24 = vmul.f32 %v575_v19, %v563_v15  ;;  %v592_v27 = vcombine.high %v591_v21, %v591_v21  ;;  %v599_v28 = vrot.slane %v591_v21, %v4773_v14  ;;  %3884 = vmatpush3.bf16.msra.mxu1 %v4348_v16 }
 0x2b9   :  { %v584_v31 = vsub.f32 %v3575_v23, %v577_v24  ;;  %v606_v33 = vrot.slane %v592_v27, %v4773_v14  ;;  %v607_v34 = vcombine.high %v599_v28, %v599_v28 }
 0x2bb   :  { %v608_v35 = vcombine.high %v606_v33, %v606_v33  ;;  %v612_v36 = vrot.slane %v607_v34, %v4781_v29  ;;  %v642_v37 = vrot.slane %v584_v31, %v4773_v14 }
 0x2bd   :  { %v616_v44 = vrot.slane %v608_v35, %v4781_v29  ;;  %v621_v45 = vmul.f32 %v612_v36, %v4614_v22  ;;  %v622_v46 = vmul.f32 %v612_v36, %v4619_v25  ;;  %v623_v47 = vmul.f32 %v612_v36, %v4639_v38 }
 0x2be   :  { %v624_v52 = vmul.f32 %v612_v36, %v4653_v51  ;;  %v643_v53 = vcombine.high %v642_v37, %v642_v37  ;;  %v650_v54 = vrot.slane %v642_v37, %v4773_v14  ;;  %v625_v55 = vmul.f32 %v612_v36, %v4648_v49 }
 0x2bf   :  { %v626_v56 = vmul.f32 %v612_v36, %v4661_v59  ;;  %v619_v57 = vmul.f32 %v612_v36, %v4611_v20  ;;  %v620_v58 = vmul.f32 %v612_v36, %v4622_v26  ;;  %v629_v60 = vmul.f32 %v616_v44, %v4670_v3 }
 0x2c0   :  { %v657_v22 = vrot.slane %v643_v53, %v4773_v14  ;;  %v661_v25 = vrot.slane %v650_v54, %v4781_v29  ;;  %v630_v38 = vmul.f32 %v616_v44, %v4680_v9  ;;  %v633_v51 = vmul.f32 %v616_v44, %v4709_v41 }
 0x2c1   :  { %v634_v61 = vmul.f32 %v616_v44, %v4717_v48  ;;  %v627_v49 = vmul.f32 %v616_v44, %v4667_v63  ;;  %v628_v59 = vmul.f32 %v616_v44, %v4683_v10  ;;  %v631_v20 = vmul.f32 %v616_v44, %v4703_v32 }
 0x2c2   :  { %v665_v26 = vrot.slane %v657_v22, %v4781_v29  ;;  %v674_v62 = vadd.f32 %v661_v25, %v625_v55  ;;  %v675_v3 = vadd.f32 %v661_v25, %v626_v56  ;;  %v668_v18 = vadd.f32 %v661_v25, %v619_v57 }
 0x2c3   :  { %v669_v0 = vadd.f32 %v661_v25, %v620_v58  ;;  %v670_v1 = vadd.f32 %v661_v25, %v621_v45  ;;  %v671_v2 = vadd.f32 %v661_v25, %v622_v46  ;;  %v672_v4 = vadd.f32 %v661_v25, %v623_v47 }
 0x2c4   :  { %v690_v9 = vmax.f32 %v674_v62, 0.0  ;;  %v691_v5 = vmax.f32 %v675_v3, 0.0  ;;  %v684_v41 = vmax.f32 %v668_v18, 0.0  ;;  %v673_v6 = vadd.f32 %v661_v25, %v624_v52 }
 0x2c5   :  { %v685_v48 = vmax.f32 %v669_v0, 0.0  ;;  %v686_v7 = vmax.f32 %v670_v1, 0.0  ;;  %v687_v63 = vmax.f32 %v671_v2, 0.0  ;;  %v688_v8 = vmax.f32 %v672_v4, 0.0 }
 0x2c6   :  { %714 = vst.msk [vmem:[#allocation2 + $0x40] sm:$0xff] %vm297_vm1, %v690_v9  ;;  %715 = vst.msk [vmem:[#allocation2 + $0x48] sm:$0xff] %vm297_vm1, %v691_v5  ;;  %v689_v10 = vmax.f32 %v673_v6, 0.0  ;;  %v678_v32 = vadd.f32 %v665_v26, %v629_v60  ;;  %v679_v12 = vadd.f32 %v665_v26, %v630_v38  ;;  %v682_v15 = vadd.f32 %v665_v26, %v633_v51 }
 0x2c7   :  { %708 = vst.msk [vmem:[#allocation2 + $0x10] sm:$0xff] %vm297_vm1, %v684_v41  ;;  %709 = vst.msk [vmem:[#allocation2 + $0x18] sm:$0xff] %vm297_vm1, %v685_v48  ;;  %v683_v17 = vadd.f32 %v665_v26, %v634_v61  ;;  %v676_v19 = vadd.f32 %v665_v26, %v627_v49  ;;  %v677_v21 = vadd.f32 %v665_v26, %v628_v59  ;;  %v4839_v45 = vadd.s32 56, %v4767_v11 }
 0x2c8   :  { %710 = vst.msk [vmem:[#allocation2 + $0x20] sm:$0xff] %vm297_vm1, %v686_v7  ;;  %711 = vst.msk [vmem:[#allocation2 + $0x28] sm:$0xff] %vm297_vm1, %v687_v63  ;;  %v632_v23 = vmul.f32 %v616_v44, %v4720_v50  ;;  %v694_v24 = vmax.f32 %v678_v32, 0.0  ;;  %v695_v27 = vmax.f32 %v679_v12, 0.0  ;;  %v698_v28 = vmax.f32 %v682_v15, 0.0  ;;  %v4349_v50 = vld [vmem:[%s6327_s9 + $0x40] sm:$0xff]  }
 0x2c9   :  { %712 = vst.msk [vmem:[#allocation2 + $0x30] sm:$0xff] %vm297_vm1, %v688_v8  ;;  %713 = vst.msk [vmem:[#allocation2 + $0x38] sm:$0xff] %vm297_vm1, %v689_v10  ;;  %v680_v31 = vadd.f32 %v665_v26, %v631_v20  ;;  %v699_v33 = vmax.f32 %v683_v17, 0.0  ;;  %v692_v34 = vmax.f32 %v676_v19, 0.0  ;;  %v693_v35 = vmax.f32 %v677_v21, 0.0  ;;  %3885 = vmatprep.subr.bf16.mxu1 %v4349_v50  ;;  %v909_v19 = vld [vmem:[#allocation2 + $0x8] sm:$0xff] }
 0x2ca   :  { %v681_v36 = vadd.f32 %v665_v26, %v632_v23  ;;  %718 = vst.msk [vmem:[#allocation2 + $0x80] sm:$0xff] %vm297_vm1, %v694_v24  ;;  %719 = vst.msk [vmem:[#allocation2 + $0x88] sm:$0xff] %vm297_vm1, %v695_v27  ;;  %v4836_v44 = vadd.s32 48, %v4767_v11  ;;  %v751_v53 = vand.u32 7, %v4792_v42  ;;  %v758_v54 = vand.u32 7, %v4795_v43  ;;  %3886 = vmatpush3.bf16.msra.mxu1 %v4349_v50 }
 0x2cb   :  { %722 = vst.msk [vmem:[#allocation2 + $0xa0] sm:$0xff] %vm297_vm1, %v698_v28  ;;  %v696_v37 = vmax.f32 %v680_v31, 0.0  ;;  %723 = vst.msk [vmem:[#allocation2 + $0xa8] sm:$0xff] %vm297_vm1, %v699_v33  ;;  %v4865_v51 = vsel %vm4846_vm6, 1.0, %v6347_v13  ;;  %v4870_v61 = vsel %vm4852_vm7, 1.0, %v6347_v13  ;;  %v786_v26 = vand.u32 7, %v4839_v45 }
 0x2cc   :  { %716 = vst.msk [vmem:[#allocation2 + $0x70] sm:$0xff] %vm297_vm1, %v692_v34  ;;  %717 = vst.msk [vmem:[#allocation2 + $0x78] sm:$0xff] %vm297_vm1, %v693_v35  ;;  %v697_v46 = vmax.f32 %v681_v36, 0.0  ;;  %vm855_vm8 = vcmp.lt.s32.totalorder %v751_v53, 7  ;;  %vm856_vm9 = vcmp.lt.s32.totalorder %v758_v54, 7  ;;  %v779_v20 = vand.u32 7, %v4836_v44 }
 0x2cd   :  { %720 = vst.msk [vmem:[#allocation2 + $0x90] sm:$0xff] %vm297_vm1, %v696_v37  ;;  %v916_v55 = vld [vmem:[#allocation2 + $0x40] sm:$0xff]  ;;  %v1155_v56 = vld [vmem:[#allocation2 + $0x48] sm:$0xff]  ;;  %v4886_v62 = vadd.s32 32, %v4767_v11  ;;  %v4889_v3 = vadd.s32 40, %v4767_v11  ;;  %v4896_v2 = vsel %vm855_vm8, 1.0, %v6347_v13 }
 0x2ce   :  { %v910_v57 = vld [vmem:[#allocation2 + $0x10] sm:$0xff]  ;;  %721 = vst.msk [vmem:[#allocation2 + $0x98] sm:$0xff] %vm297_vm1, %v697_v46  ;;  %v4860_v58 = vpack.i.bf16 %v1155_v56, %v916_v55  ;;  %v911_v60 = vld [vmem:[#allocation2 + $0x18] sm:$0xff]  ;;  %v4899_v4 = vsel %vm856_vm9, 1.0, %v6347_v13  ;;  %vm859_vm10 = vcmp.lt.s32.totalorder %v779_v20, 7  ;;  %vm860_vm11 = vcmp.lt.s32.totalorder %v786_v26, 7 }
 0x2cf   :  { %v1648_v22 = vld [vmem:[#allocation2 + $0x20] sm:$0xff]  ;;  %v4129_v25 = vpack.i.bf16 %v911_v60, %v910_v57  ;;  %v1649_v38 = vld [vmem:[#allocation2 + $0x28] sm:$0xff]  ;;  %v4872_v49 = vld [vmem:[#allocation2 + $0x11] sm:$0xff]  ;;  %v765_v48 = vand.u32 7, %v4886_v62  ;;  %v772_v7 = vand.u32 7, %v4889_v3  ;;  %v4918_v12 = vsel %vm859_vm10, 1.0, %v6347_v13 }
 0x2d0   :  { %v4874_v59 = vld [vmem:[#allocation2 + $0x19] sm:$0xff]  ;;  %4145 = vrot.lane.b32.xlu1 %v4860_v58, %s4411_s2  ;;  %v4154_v18 = vpack.i.bf16 %v1649_v38, %v1648_v22  ;;  %v1159_v0 = vmul.f32 %v4865_v51, %v4872_v49  ;;  %v4901_v9 = vld [vmem:[#allocation2 + $0x21] sm:$0xff]  ;;  %v4903_v5 = vld [vmem:[#allocation2 + $0x29] sm:$0xff]  ;;  %v4921_v15 = vsel %vm860_vm11, 1.0, %v6347_v13  ;;  %v4149_v27 = vpack.i.bf16 %v911_v60, %v909_v19 }
 0x2d1   :  { %4130 = vrot.lane.b32.xlu0 %v4129_v25, %s4411_s2  ;;  %v1160_v1 = vmul.f32 %v4870_v61, %v4874_v59  ;;  %v914_v41 = vld [vmem:[#allocation2 + $0x30] sm:$0xff]  ;;  %v915_v6 = vld [vmem:[#allocation2 + $0x38] sm:$0xff]  ;;  %v1161_v8 = vmul.f32 %v4896_v2, %v4901_v9  ;;  %v1162_v10 = vmul.f32 %v4899_v4, %v4903_v5  ;;  %v4923_v16 = vld [vmem:[#allocation2 + $0x41] sm:$0xff]  ;;  %vm857_vm12 = vcmp.lt.s32.totalorder %v765_v48, 7 }
 0x2d2   :  { %v4139_v32 = vpack.i.bf16 %v915_v6, %v914_v41  ;;  %v4925_v17 = vld [vmem:[#allocation2 + $0x49] sm:$0xff]  ;;  %vm858_vm13 = vcmp.lt.s32.totalorder %v772_v7, 7  ;;  %v1165_v23 = vmul.f32 %v4918_v12, %v4923_v16  ;;  %v4350_v28 = vld [vmem:[%s6327_s9 + $0x38] sm:$0xff]   ;;  %v4942_v31 = vsel %vm857_vm12, 1.0, %v6347_v13  ;;  %v4959_v47 = vld [vmem:[#allocation2 + $0x80] sm:$0xff] }
 0x2d3   :  { %v4164_v63 = vpack.i.bf16 %v1160_v1, %v1159_v0  ;;  %v4169_v21 = vpack.i.bf16 %v1162_v10, %v1161_v8  ;;  %v1166_v24 = vmul.f32 %v4921_v15, %v4925_v17  ;;  %v4945_v33 = vsel %vm858_vm13, 1.0, %v6347_v13  ;;  %v4947_v34 = vld [vmem:[#allocation2 + $0x31] sm:$0xff]  ;;  %v4949_v35 = vld [vmem:[#allocation2 + $0x39] sm:$0xff]  ;;  %3887 = vmatprep.subr.bf16.mxu1 %v4350_v28  ;;  %v4961_v52 = vld [vmem:[#allocation2 + $0x88] sm:$0xff] }
 0x2d4   :  { %4155 = vrot.lane.b32.xlu1 %v4154_v18, %s4411_s2  ;;  %v4351_v37 = vld [vmem:[%s6327_s9 + $0x30] sm:$0xff]   ;;  %v1163_v50 = vmul.f32 %v4942_v31, %v4947_v34  ;;  %v1164_v46 = vmul.f32 %v4945_v33, %v4949_v35  ;;  %3888 = vmatpush3.bf16.msra.mxu1 %v4350_v28  ;;  %v4352_v55 = vld [vmem:[%s6327_s9 + $0x28] sm:$0xff]   ;;  %v4189_v56 = vpack.i.bf16 %v4961_v52, %v4959_v47  ;;  %v4970_v60 = vld [vmem:[#allocation2 + $0xa0] sm:$0xff]  ;;  %vm831_vm6 = vcmp.ge.s32.totalorder %v751_v53, 1 }
 0x2d5   :  { %4135 = vrot.lane.b32.xlu0 %v4154_v18, %s4411_s2  ;;  %v4179_v36 = vpack.i.bf16 %v1166_v24, %v1165_v23  ;;  %3889 = vmatprep.subr.bf16.mxu1 %v4351_v37  ;;  %v4972_v22 = vld [vmem:[#allocation2 + $0xa8] sm:$0xff]  ;;  %v918_v38 = vld [vmem:[#allocation2 + $0x70] sm:$0xff]  ;;  %v4975_v18 = vld [vmem:[#allocation2 + $0x78] sm:$0xff]  ;;  %v942_v6 = vmul.f32 %v4870_v61, %v4872_v49  ;;  %v1680_v23 = vmul.f32 %v4870_v61, %v4901_v9  ;;  %vm832_vm7 = vcmp.ge.s32.totalorder %v758_v54, 1 }
 0x2d6   :  { %v4174_v57 = vpack.i.bf16 %v1164_v46, %v1163_v50  ;;  %v925_v25 = vld [vmem:[#allocation2 + $0x9] sm:$0xff]  ;;  %3907 = vmatprep.subr.bf16.mxu0 %v4352_v55  ;;  %v4353_v0 = vld [vmem:[%s6327_s9 + $0x20] sm:$0xff]   ;;  %v4199_v1 = vpack.i.bf16 %v4972_v22, %v4970_v60  ;;  %v4184_v8 = vpack.i.bf16 %v4975_v18, %v918_v38  ;;  %v4354_v49 = vld [vmem:[%s6327_s9 + $0x18] sm:$0xff]   ;;  %v944_v28 = vmul.f32 %v4899_v4, %v4901_v9 }
 0x2d7   :  { %v941_v41 = vmul.f32 %v4865_v51, %v925_v25  ;;  %3908 = vmatpush3.bf16.msra.mxu0 %v4352_v55  ;;  %v4993_v10 = vld [vmem:[#allocation2 + $0x90] sm:$0xff]  ;;  %v5019_v46 = vld [vmem:[#allocation2 + $0x79] sm:$0xff]  ;;  %vm5163_vm8 = vcmp.ge.s32.totalorder %v779_v20, 1  ;;  %vm5169_vm9 = vcmp.ge.s32.totalorder %v786_v26, 1  ;;  %v5178_v54 = vsel %vm831_vm6, 1.0, %v6347_v13  ;;  %v5182_v20 = vld [vmem:[#allocation2 + $0x27] sm:$0xff] }
 0x2d8   :  { %4165 = vrot.lane.b32.xlu1 %v4164_v63, %s4412_s25  ;;  %3890 = vmatpush3.bf16.msra.mxu1 %v4351_v37  ;;  %v4989_v63 = vld [vmem:[%s6327_s9 + $0x88] sm:$0xff]   ;;  %v5017_v50 = vld [vmem:[#allocation2 + $0x71] sm:$0xff]  ;;  %v1168_v38 = vmul.f32 %v4870_v61, %v5019_v46  ;;  %v5180_v44 = vld [vmem:[#allocation2 + $0x1f] sm:$0xff]  ;;  %v5185_v45 = vsel %vm832_vm7, 1.0, %v6347_v13  ;;  %vm1336_vm10 = vcmask 785408   ;;  %vm833_vm11 = vcmp.ge.s32.totalorder %v765_v48, 1 }
 0x2d9   :  { %4140 = vrot.lane.b32.xlu0 %v4139_v32, %s4411_s2  ;;  %3909 = vmatprep.subr.bf16.mxu0 %v4353_v0  ;;  %v4204_v19 = vpack.i.bf16 %v942_v6, %v941_v41  ;;  %v5014_v37 = vld [vmem:[#allocation2 + $0x89] sm:$0xff]  ;;  %v1167_v25 = vmul.f32 %v4865_v51, %v5017_v50  ;;  %v945_v41 = vmul.f32 %v4942_v31, %v4903_v5  ;;  %vm834_vm12 = vcmp.ge.s32.totalorder %v772_v7, 1  ;;  %v4359_v62 = vld [vmem:[%s6327_s9 + $0x80] sm:$0xff]  }
 0x2da   :  { %3935 = vmatprep.subr.bf16.mxu1 %v4989_v63  ;;  %v4355_v55 = vld [vmem:[%s6327_s9 + $0x10] sm:$0xff]   ;;  %v946_v6 = vmul.f32 %v4945_v33, %v4947_v34 }
 0x2db   :  { %3910 = vmatpush3.bf16.msra.mxu0 %v4353_v0  ;;  %v4357_v0 = vld [vmem:[%s6327_s9 + $0x8] sm:$0xff]  }
 0x2dc   :  { %4170 = vrot.lane.b32.xlu1 %v4169_v21, %s4412_s25  ;;  %v1679_v21 = vmul.f32 %v4865_v51, %v4874_v59  ;;  %3911 = vmatprep.subr.bf16.mxu0 %v4354_v49 }
 0x2dd   :  { %4150 = vrot.lane.b32.xlu0 %v4149_v27, %s4411_s2  ;;  %v943_v27 = vmul.f32 %v4896_v2, %v4874_v59 }
 0x2de   :  { %v4214_v59 = vpack.i.bf16 %v1680_v23, %v1679_v21  ;;  %v5046_v21 = vld [vmem:[#allocation2 + $0xa1] sm:$0xff]  ;;  %v5048_v23 = vld [vmem:[#allocation2 + $0xa9] sm:$0xff] }
 0x2df   :  { %3912 = vmatpush3.bf16.msra.mxu0 %v4354_v49  ;;  %v1681_v49 = vmul.f32 %v4896_v2, %v4903_v5  ;;  %v4234_v5 = vpack.i.bf16 %v946_v6, %v945_v41  ;;  %v1684_v41 = vmul.f32 %v4945_v33, %v4923_v16  ;;  %v917_v6 = vld [vmem:[#allocation2 + $0x68] sm:$0xff] }
 0x2e0   :  { %4180 = vrot.lane.b32.xlu1 %v4179_v36, %s4412_s25  ;;  %v5012_v36 = vld [vmem:[#allocation2 + $0x81] sm:$0xff]  ;;  %3913 = vmatprep.subr.bf16.mxu0 %v4355_v55 }
 0x2e1   :  { %4160 = vrot.lane.b32.xlu0 %v4139_v32, %s4411_s2  ;;  %v4995_v32 = vld [vmem:[#allocation2 + $0x98] sm:$0xff]  ;;  %v1169_v9 = vmul.f32 %v4896_v2, %v5012_v36 }
 0x2e2   :  { %v4194_v24 = vpack.i.bf16 %v4995_v32, %v4993_v10 }
 0x2e3   :  { %3914 = vmatpush3.bf16.msra.mxu0 %v4355_v55 }
 0x2e4   :  { %4190 = vrot.lane.b32.xlu1 %v4189_v56, %s4411_s2  ;;  %v1170_v56 = vmul.f32 %v4899_v4, %v5014_v37  ;;  %3915 = vmatprep.subr.bf16.mxu0 %v4357_v0 }
 0x2e5   :  { %4175 = vrot.lane.b32.xlu0 %v4174_v57, %s4412_s25  ;;  %v4209_v57 = vpack.i.bf16 %v944_v28, %v943_v27  ;;  %v5051_v27 = vld [vmem:[#allocation2 + $0x99] sm:$0xff] }
 0x2e6   :  { %v4358_v28 = vld [vmem:[%s6327_s9] sm:$0xff]  }
 0x2e7   :  { %3916 = vmatpush3.bf16.msra.mxu0 %v4357_v0  ;;  %v1683_v0 = vmul.f32 %v4942_v31, %v4949_v35 }
 0x2e8   :  { %4200 = vrot.lane.b32.xlu1 %v4199_v1, %s4411_s2  ;;  %v4229_v1 = vpack.i.bf16 %v1170_v56, %v1169_v9  ;;  %v1172_v56 = vmul.f32 %v4945_v33, %v5051_v27  ;;  %3917 = vmatprep.subr.bf16.mxu0 %v4358_v28 }
 0x2e9   :  { %4185 = vrot.lane.b32.xlu0 %v4184_v8, %s4411_s2  ;;  %v4219_v8 = vpack.i.bf16 %v1168_v38, %v1167_v25  ;;  %v947_v38 = vmul.f32 %v4918_v12, %v4949_v35 }
 0x2eb   :  { %3918 = vmatpush3.bf16.msra.mxu0 %v4358_v28 }
 0x2ec   :  { %4205 = vrot.lane.b32.xlu1 %v4204_v19, %s4412_s25  ;;  %v1682_v19 = vmul.f32 %v4899_v4, %v4947_v34  ;;  %v1173_v34 = vmul.f32 %v4918_v12, %v5046_v21  ;;  %3963 = vmatprep.subr.mxu0 %v6347_v13 }
 0x2ed   :  { %4195 = vrot.lane.b32.xlu0 %v4194_v24, %s4411_s2  ;;  %v938_v24 = vld [vmem:[#allocation2 + $0x91] sm:$0xff] }
 0x2ee   :  { %v4224_v55 = vpack.i.bf16 %v1682_v19, %v1681_v49  ;;  %v1171_v9 = vmul.f32 %v4942_v31, %v938_v24  ;;  %v1670_v19 = vld [vmem:[#allocation2 + $0x51] sm:$0xff] }
 0x2f0   :  { %4215 = vrot.lane.b32.xlu1 %v4214_v59, %s4412_s25  ;;  %v1174_v59 = vmul.f32 %v4921_v15, %v5048_v23  ;;  %v4239_v25 = vpack.i.bf16 %v1172_v56, %v1171_v9  ;;  %v950_v9 = vmul.f32 %v4870_v61, %v5017_v50  ;;  %v4279_v56 = vpack.i.bf16 %v4993_v10, %v4961_v52 }
 0x2f1   :  { %4210 = vrot.lane.b32.xlu0 %v4209_v57, %s4412_s25  ;;  %v951_v50 = vmul.f32 %v4896_v2, %v5019_v46  ;;  %v952_v52 = vmul.f32 %v4899_v4, %v5012_v36 }
 0x2f2   :  { %v4249_v57 = vpack.i.bf16 %v1174_v59, %v1173_v34  ;;  %v1685_v34 = vmul.f32 %v4918_v12, %v4925_v17  ;;  %v1686_v59 = vmul.f32 %v4921_v15, %v1670_v19 }
 0x2f4   :  { %4230 = vrot.lane.b32.xlu1 %v4229_v1, %s4412_s25  ;;  %v948_v1 = vmul.f32 %v4921_v15, %v4923_v16  ;;  %v4274_v16 = vpack.i.bf16 %v4959_v47, %v4975_v18  ;;  %v4269_v35 = vpack.i.bf16 %v1686_v59, %v1685_v34  ;;  %v1662_v47 = vld [vmem:[#allocation2 + $0xb0] sm:$0xff] }
 0x2f5   :  { %4220 = vrot.lane.b32.xlu0 %v4219_v8, %s4412_s25  ;;  %v1654_v8 = vld [vmem:[#allocation2 + $0x50] sm:$0xff] }
 0x2f6   :  { %v4244_v49 = vpack.i.bf16 %v948_v1, %v947_v38  ;;  %v4259_v28 = vpack.i.bf16 %v917_v6, %v1654_v8  ;;  %v4299_v38 = vpack.i.bf16 %v952_v52, %v951_v50  ;;  %v1692_v1 = vmul.f32 %v4945_v33, %v5046_v21  ;;  %v5149_v8 = vld [vmem:[#allocation2 + $0xf] sm:$0xff] }
 0x2f8   :  { %4235 = vrot.lane.b32.xlu1 %v4234_v5, %s4412_s25  ;;  %v4264_v5 = vpack.i.bf16 %v1684_v41, %v1683_v0  ;;  %v955_v41 = vmul.f32 %v4918_v12, %v5051_v27 }
 0x2f9   :  { %4225 = vrot.lane.b32.xlu0 %v4224_v55, %s4412_s25  ;;  %v933_v55 = vld [vmem:[#allocation2 + $0x69] sm:$0xff] }
 0x2fa   :  { %v949_v17 = vmul.f32 %v4865_v51, %v933_v55 }
 0x2fc   :  { %4250 = vrot.lane.b32.xlu1 %v4249_v57, %s4412_s25  ;;  %v4294_v18 = vpack.i.bf16 %v950_v9, %v949_v17  ;;  %v1687_v57 = vmul.f32 %v4865_v51, %v5019_v46  ;;  %v954_v51 = vmul.f32 %v4945_v33, %v938_v24  ;;  %v1691_v46 = vmul.f32 %v4942_v31, %v5051_v27 }
 0x2fd   :  { %4240 = vrot.lane.b32.xlu0 %v4239_v25, %s4412_s25  ;;  %v953_v25 = vmul.f32 %v4942_v31, %v5014_v37  ;;  %v1693_v31 = vmul.f32 %v4918_v12, %v5048_v23  ;;  %v5147_v23 = vsel %vm830_vm15, 1.0, %v6347_v13  ;;  %v1141_v17 = vmul.f32 %v5178_v54, %v5180_v44 }
 0x2fe   :  { %v1142_v9 = vmul.f32 %v5185_v45, %v5182_v20 }
 0x300   :  { %4255 = vrot.lane.b32.xlu1 %v4860_v58, %s4411_s2  ;;  %v4284_v58 = vpack.i.bf16 %v4970_v60, %v4995_v32  ;;  %v1688_v60 = vmul.f32 %v4870_v61, %v5012_v36  ;;  %v4289_v32 = vpack.i.bf16 %v1662_v47, %v4972_v22  ;;  %v1689_v61 = vmul.f32 %v4896_v2, %v5014_v37 }
 0x301   :  { %4245 = vrot.lane.b32.xlu0 %v4244_v49, %s4412_s25  ;;  %v1690_v22 = vmul.f32 %v4899_v4, %v938_v24  ;;  %v4314_v36 = vpack.i.bf16 %v954_v51, %v953_v25  ;;  %v956_v2 = vmul.f32 %v4921_v15, %v5046_v21  ;;  %v1678_v4 = vld [vmem:[#allocation2 + $0xb1] sm:$0xff]  ;;  %v4324_v37 = vpack.i.bf16 %v1692_v1, %v1691_v46 }
 0x302   :  { %v4304_v10 = vpack.i.bf16 %v1688_v60, %v1687_v57  ;;  %v1694_v6 = vmul.f32 %v4921_v15, %v1678_v4  ;;  %v5144_v15 = vsel %vm829_vm14, 1.0, %v6347_v13  ;;  %v5151_v49 = vld [vmem:[#allocation2 + $0x17] sm:$0xff]  ;;  %v5211_v57 = vsel %vm5169_vm9, 1.0, %v6347_v13  ;;  %v5213_v60 = vld [vmem:[#allocation2 + $0x47] sm:$0xff] }
 0x303   :  { %v4309_v0 = vpack.i.bf16 %v1690_v22, %v1689_v61  ;;  %v4319_v24 = vpack.i.bf16 %v956_v2, %v955_v41  ;;  %v1139_v42 = vmul.f32 %v5144_v15, %v5149_v8  ;;  %v1140_v43 = vmul.f32 %v5147_v23, %v5151_v49 }
 0x304   :  { %4265 = vrot.lane.b32.xlu1 %v4264_v5, %s4412_s25  ;;  %v4329_v33 = vpack.i.bf16 %v1694_v6, %v1693_v31  ;;  %v1146_v46 = vmul.f32 %v5211_v57, %v5213_v60  ;;  %v882_v31 = vld [vmem:[#allocation2 + $0x2f] sm:$0xff]  ;;  %v5253_v6 = vld [vmem:[#allocation2 + $0x37] sm:$0xff] }
 0x305   :  { %4260 = vrot.lane.b32.xlu0 %v4259_v28, %s4411_s2 }
 0x308   :  { %4275 = vrot.lane.b32.xlu1 %v4274_v16, %s4411_s2 }
 0x309   :  { %4270 = vrot.lane.b32.xlu0 %v4269_v35, %s4412_s25 }
 0x30c   :  { %4285 = vrot.lane.b32.xlu1 %v4284_v58, %s4411_s2 }
 0x30d   :  { %4280 = vrot.lane.b32.xlu0 %v4279_v56, %s4411_s2 }
 0x310   :  { %4295 = vrot.lane.b32.xlu1 %v4294_v18, %s4412_s25  ;;  %v5206_v18 = vsel %vm5163_vm8, 1.0, %v6347_v13 }
 0x311   :  { %4290 = vrot.lane.b32.xlu0 %v4289_v32, %s4411_s2  ;;  %v5215_v32 = vld [vmem:[#allocation2 + $0x3f] sm:$0xff] }
 0x312   :  { %v1145_v1 = vmul.f32 %v5206_v18, %v5215_v32 }
 0x314   :  { %4305 = vrot.lane.b32.xlu1 %v4304_v10, %s4412_s25 }
 0x315   :  { %4300 = vrot.lane.b32.xlu0 %v4299_v38, %s4412_s25 }
 0x318   :  { %4315 = vrot.lane.b32.xlu1 %v4314_v36, %s4412_s25 }
 0x319   :  { %4310 = vrot.lane.b32.xlu0 %v4309_v0, %s4412_s25 }
 0x31c   :  { %4325 = vrot.lane.b32.xlu1 %v4324_v37, %s4412_s25  ;;  %v5248_v37 = vsel %vm833_vm11, 1.0, %v6347_v13 }
 0x31d   :  { %4320 = vrot.lane.b32.xlu0 %v4319_v24, %s4412_s25  ;;  %v5251_v24 = vsel %vm834_vm12, 1.0, %v6347_v13 }
 0x321   :  { %4330 = vrot.lane.b32.xlu0 %v4329_v33, %s4412_s25 }
 0x342   :  { %v5133_v21 = vpop.permute.xlu1 %4145 }
 0x343   :  { %v5135_v27 = vpop.permute.xlu0 %4130  ;;  %v4148_v25 = vunpack.i.h.bf16 %v5133_v21  ;;  %v4147_v51 = vunpack.i.l.bf16 %v5133_v21 }
 0x344   :  { %v4133_v11 = vunpack.i.h.bf16 %v5135_v27  ;;  %v4132_v30 = vunpack.i.l.bf16 %v5135_v27 }
 0x345   :  { %v1254_v7 = vsel %vm297_vm1, %v1146_v46, %v4148_v25  ;;  %v1253_v4 = vsel %vm297_vm1, %v1145_v1, %v4147_v51  ;;  %v895_v25 = vmul.f32 %v5178_v54, %v5151_v49  ;;  %v4361_v1 = vld [vmem:[%s6327_s9 + $0x70] sm:$0xff]  }
 0x346   :  { %v5141_v12 = vpop.permute.xlu1 %4155  ;;  %v1247_v34 = vsel %vm297_vm1, %v1139_v42, %v4132_v30  ;;  %v1248_v59 = vsel %vm297_vm1, %v1140_v43, %v4133_v11 }
 0x347   :  { %v5153_v19 = vpop.permute.xlu0 %4135 }
 0x348   :  { %v4138_v16 = vunpack.i.h.bf16 %v5153_v19  ;;  %v4137_v35 = vunpack.i.l.bf16 %v5153_v19 }
 0x34a   :  { %v4166_v53 = vpop.permute.xlu1 %4165  ;;  %v1250_v38 = vsel %vm297_vm1, %v1142_v9, %v4138_v16  ;;  %v1249_v61 = vsel %vm297_vm1, %v1141_v17, %v4137_v35  ;;  %v877_v9 = vld [vmem:[#allocation2 + $0x7] sm:$0xff] }
 0x34b   :  { %v4168_v26 = vunpack.i.h.bf16 %v4166_v53  ;;  %v4167_v28 = vunpack.i.l.bf16 %v4166_v53  ;;  %v5187_v5 = vpop.permute.xlu0 %4140 }
 0x34c   :  { %v6346_v33 = vunpack.i.h.bf16 %v5187_v5  ;;  %v4142_v39 = vunpack.i.l.bf16 %v5187_v5 }
 0x34d   :  { %v1263_v55 = vsel %vm165_vm0, %v1247_v34, %v4167_v28  ;;  %v1264_v58 = vsel %vm165_vm0, %v1248_v59, %v4168_v26  ;;  %v4360_v26 = vld [vmem:[%s6327_s9 + $0x78] sm:$0xff]   ;;  %v1143_v28 = vmul.f32 %v5248_v37, %v882_v31  ;;  %v1144_v34 = vmul.f32 %v5251_v24, %v5253_v6 }
 0x34e   :  { %v1279_v56 = vpack.c.bf16 %v1264_v58, %v1263_v55  ;;  %v4171_v47 = vpop.permute.xlu1 %4170 }
 0x34f   :  { %v4173_v50 = vunpack.i.h.bf16 %v4171_v47  ;;  %v4172_v52 = vunpack.i.l.bf16 %v4171_v47  ;;  %v5217_v10 = vpop.permute.xlu0 %4150  ;;  %v1251_v17 = vsel %vm297_vm1, %v1143_v28, %v4142_v39  ;;  %v4157_v28 = vunpack.i.l.bf16 %v5141_v12 }
 0x350   :  { %3891 = vmatprep.mubr.msk.bf16.mxu1 %vm1336_vm10, %v1279_v56  ;;  %v894_v56 = vmul.f32 %v5147_v23, %v5149_v8  ;;  %v5289_v8 = vld [vmem:[#allocation2 + $0x87] sm:$0xff] }
 0x351   :  { %v1265_v22 = vsel %vm165_vm0, %v1249_v61, %v4172_v52  ;;  %v1266_v36 = vsel %vm165_vm0, %v1250_v38, %v4173_v50  ;;  %v1632_v38 = vmul.f32 %v5147_v23, %v5180_v44  ;;  %v1633_v61 = vmul.f32 %v5178_v54, %v5182_v20 }
 0x352   :  { %v1280_v0 = vpack.c.bf16 %v1266_v36, %v1265_v22  ;;  %v4181_v41 = vpop.permute.xlu1 %4180  ;;  %v5287_v36 = vld [vmem:[#allocation2 + $0x7f] sm:$0xff] }
 0x353   :  { %v4183_v48 = vunpack.i.h.bf16 %v4181_v41  ;;  %v4182_v2 = vunpack.i.l.bf16 %v4181_v41  ;;  %v5241_v3 = vpop.permute.xlu0 %4160  ;;  %v897_v41 = vmul.f32 %v5248_v37, %v5182_v20  ;;  %v4158_v20 = vunpack.i.h.bf16 %v5141_v12 }
 0x354   :  { %3892 = vmatmul.mubr.msk.bf16.vlgmr.msra.gmra.mxu1 %vm1336_vm10, %v1280_v0  ;;  %v896_v0 = vmul.f32 %v5185_v45, %v5180_v44  ;;  %v5314_v44 = vld [vmem:[#allocation2 + $0x6f] sm:$0xff] }
 0x355   :  { %v1270_v40 = vsel %vm165_vm0, %v1254_v7, %v4183_v48  ;;  %v1269_v42 = vsel %vm165_vm0, %v1253_v4, %v4182_v2  ;;  %3936 = vmatpush3.bf16.msra.mxu1 %v4989_v63  ;;  %v1252_v63 = vsel %vm297_vm1, %v1144_v34, %v6346_v33  ;;  %v4152_v48 = vunpack.i.l.bf16 %v5217_v10  ;;  %v5302_v2 = vld [vmem:[#allocation2 + $0x9f] sm:$0xff] }
 0x356   :  { %v1282_v43 = vpack.c.bf16 %v1270_v40, %v1269_v42  ;;  %v5261_v53 = vpop.permute.xlu1 %4190  ;;  %3937 = vmatprep.subr.bf16.mxu1 %v4359_v62  ;;  %v5305_v7 = vmul.f32 %v5251_v24, %v882_v31  ;;  %v1631_v4 = vmul.f32 %v5144_v15, %v5151_v49  ;;  %v5310_v40 = vmul.f32 %v5185_v45, %v882_v31  ;;  %v5312_v42 = vld [vmem:[#allocation2 + $0xa7] sm:$0xff] }
 0x357   :  { %v4176_v59 = vpop.permute.xlu0 %4175  ;;  %v1149_v34 = vmul.f32 %v5178_v54, %v5287_v36  ;;  %v1150_v49 = vmul.f32 %v5185_v45, %v5289_v8  ;;  %v5332_v12 = vmul.f32 %v5206_v18, %v5302_v2 }
 0x358   :  { %v4178_v55 = vunpack.i.h.bf16 %v4176_v59  ;;  %v4177_v58 = vunpack.i.l.bf16 %v4176_v59  ;;  %v5323_v59 = vld [vmem:[#allocation2 + $0x77] sm:$0xff] }
 0x359   :  { %3938 = vmatpush3.bf16.msra.mxu1 %v4359_v62  ;;  %v893_v62 = vmul.f32 %v5144_v15, %v877_v9 }
 0x35a   :  { %v1267_v47 = vsel %vm165_vm0, %v1251_v17, %v4177_v58  ;;  %v1268_v50 = vsel %vm165_vm0, %v1252_v63, %v4178_v55  ;;  %v5279_v52 = vpop.permute.xlu1 %4200  ;;  %3939 = vmatprep.subr.bf16.mxu1 %v4360_v26  ;;  %v4362_v55 = vld [vmem:[%s6327_s9 + $0x68] sm:$0xff]  }
 0x35b   :  { %v1281_v22 = vpack.c.bf16 %v1268_v50, %v1267_v47  ;;  %v5291_v46 = vpop.permute.xlu0 %4185  ;;  %v1085_v9 = vsel %vm297_vm1, %v893_v62, %v4152_v48  ;;  %v5342_v47 = vmul.f32 %v5211_v57, %v5312_v42  ;;  %v1087_v50 = vsel %vm297_vm1, %v895_v25, %v4133_v11  ;;  %v4363_v11 = vld [vmem:[%s6327_s9 + $0x60] sm:$0xff]   ;;  %s6388_s9 = sld [smem:[#allocation21_spill]] }
 0x35c   :  { %v5355_v62 = vsel %vm297_vm1, %v1633_v61, %v4158_v20  ;;  %v1089_v48 = vsel %vm297_vm1, %v897_v41, %v4138_v16  ;;  %v4193_v61 = vunpack.i.h.bf16 %v5261_v53  ;;  %v4187_v20 = vunpack.i.l.bf16 %v5291_v46 }
 0x35d   :  { %3895 = vmatprep.mubr.msk.bf16.mxu1 %vm1336_vm10, %v1281_v22  ;;  %3940 = vmatpush3.bf16.msra.mxu1 %v4360_v26  ;;  %v4153_v26 = vunpack.i.h.bf16 %v5217_v10  ;;  %v1147_v10 = vmul.f32 %v5144_v15, %v5314_v44  ;;  %v1148_v22 = vmul.f32 %v5147_v23, %v5323_v59  ;;  %v1088_v41 = vsel %vm297_vm1, %v896_v0, %v4137_v35 }
 0x35e   :  { %3896 = vmatmul.mubr.msk.bf16.gmra.mxu1 %vm1336_vm10, %v1282_v43  ;;  %v4206_v31 = vpop.permute.xlu1 %4205  ;;  %3941 = vmatprep.subr.bf16.mxu1 %v4361_v1  ;;  %v1086_v43 = vsel %vm297_vm1, %v894_v56, %v4132_v30  ;;  %v1824_v56 = vsel %vm297_vm1, %v1632_v38, %v4157_v28 }
 0x35f   :  { %v4208_v58 = vunpack.i.h.bf16 %v4206_v31  ;;  %v4207_v63 = vunpack.i.l.bf16 %v4206_v31  ;;  %v5334_v17 = vpop.permute.xlu0 %4195  ;;  %v1823_v25 = vsel %vm297_vm1, %v1631_v4, %v4153_v26  ;;  %v4162_v26 = vunpack.i.l.bf16 %v5241_v3 }
 0x361   :  { %v1102_v31 = vsel %vm165_vm0, %v1086_v43, %v4208_v58  ;;  %v1101_v30 = vsel %vm165_vm0, %v1085_v9, %v4207_v63  ;;  %3942 = vmatpush3.bf16.msra.mxu1 %v4361_v1  ;;  %v4192_v1 = vunpack.i.l.bf16 %v5261_v53  ;;  %v4188_v43 = vunpack.i.h.bf16 %v5291_v46 }
 0x362   :  { %v1117_v27 = vpack.c.bf16 %v1102_v31, %v1101_v30  ;;  %v4216_v33 = vpop.permute.xlu1 %4215  ;;  %3943 = vmatprep.subr.bf16.mxu1 %v4362_v55 }
 0x363   :  { %v4218_v58 = vunpack.i.h.bf16 %v4216_v33  ;;  %v4217_v38 = vunpack.i.l.bf16 %v4216_v33  ;;  %v4211_v28 = vpop.permute.xlu0 %4210  ;;  %v1257_v35 = vsel %vm297_vm1, %v1149_v34, %v4192_v1 }
 0x364   :  { %v4213_v63 = vunpack.i.h.bf16 %v4211_v28  ;;  %v4212_v16 = vunpack.i.l.bf16 %v4211_v28  ;;  %3919 = vmatprep.mubr.msk.bf16.mxu0 %vm1336_vm10, %v1117_v27  ;;  %v1256_v28 = vsel %vm297_vm1, %v1148_v22, %v4188_v43  ;;  %v1826_v22 = vsel %vm297_vm1, %v5310_v40, %v4162_v26 }
 0x365   :  { %v5373_v4 = vsel %vm165_vm0, %v1824_v56, %v4218_v58  ;;  %v5376_v33 = vsel %vm165_vm0, %v1823_v25, %v4217_v38  ;;  %3944 = vmatpush3.bf16.msra.mxu1 %v4362_v55  ;;  %v1258_v55 = vsel %vm297_vm1, %v1150_v49, %v4193_v61  ;;  %v1255_v58 = vsel %vm297_vm1, %v1147_v10, %v4187_v20 }
 0x366   :  { %v1855_v9 = vpack.c.bf16 %v5373_v4, %v5376_v33  ;;  %v1104_v31 = vsel %vm165_vm0, %v1088_v41, %v4213_v63  ;;  %v1103_v19 = vsel %vm165_vm0, %v1087_v50, %v4212_v16  ;;  %v4231_v30 = vpop.permute.xlu1 %4230  ;;  %3945 = vmatprep.subr.bf16.mxu1 %v4363_v11  ;;  %v1090_v49 = vsel %vm297_vm1, %v5305_v7, %v4142_v39  ;;  %v5411_v7 = vld [vmem:[#allocation2 + $0x97] sm:$0xff] }
 0x367   :  { %v1118_v0 = vpack.c.bf16 %v1104_v31, %v1103_v19  ;;  %v4233_v56 = vunpack.i.h.bf16 %v4231_v30  ;;  %v4232_v27 = vunpack.i.l.bf16 %v4231_v30  ;;  %v4221_v25 = vpop.permute.xlu0 %4220  ;;  %v5407_v19 = vld [vmem:[#allocation2 + $0x8f] sm:$0xff]  ;;  %v4202_v39 = vunpack.i.l.bf16 %v5279_v52 }
 0x368   :  { %v4223_v38 = vunpack.i.h.bf16 %v4221_v25  ;;  %v4222_v50 = vunpack.i.l.bf16 %v4221_v25  ;;  %v1637_v4 = vmul.f32 %v5206_v18, %v5213_v60 }
 0x369   :  { %v1273_v34 = vsel %vm165_vm0, %v1257_v35, %v4232_v27  ;;  %v1274_v63 = vsel %vm165_vm0, %v1258_v55, %v4233_v56  ;;  %3920 = vmatmul.mubr.msk.bf16.vlgmr.msra.gmra.mxu0 %vm1336_vm10, %v1118_v0  ;;  %3946 = vmatpush3.bf16.msra.mxu1 %v4363_v11  ;;  %v4203_v56 = vunpack.i.h.bf16 %v5279_v52  ;;  %v4198_v55 = vunpack.i.h.bf16 %v5334_v17 }
 0x36a   :  { %v1284_v16 = vpack.c.bf16 %v1274_v63, %v1273_v34  ;;  %v1271_v10 = vsel %vm165_vm0, %v1255_v58, %v4222_v50  ;;  %v1272_v41 = vsel %vm165_vm0, %v1256_v28, %v4223_v38  ;;  %v4236_v31 = vpop.permute.xlu1 %4235  ;;  %4005 = vmatprep.subr.mxu1 %v6347_v13  ;;  %v4197_v58 = vunpack.i.l.bf16 %v5334_v17 }
 0x36b   :  { %v1283_v30 = vpack.c.bf16 %v1272_v41, %v1271_v10  ;;  %v4238_v11 = vunpack.i.h.bf16 %v4236_v31  ;;  %v4237_v35 = vunpack.i.l.bf16 %v4236_v31  ;;  %v4226_v0 = vpop.permute.xlu0 %4225  ;;  %v1151_v38 = vmul.f32 %v5248_v37, %v5407_v19 }
 0x36c   :  { %v4228_v27 = vunpack.i.h.bf16 %v4226_v0  ;;  %v4227_v25 = vunpack.i.l.bf16 %v4226_v0 }
 0x36d   :  { %v1106_v40 = vsel %vm165_vm0, %v1090_v49, %v4238_v11  ;;  %v1105_v26 = vsel %vm165_vm0, %v1089_v48, %v4237_v35  ;;  %3899 = vmatprep.mubr.msk.bf16.mxu1 %vm1336_vm10, %v1283_v30  ;;  %v1152_v49 = vmul.f32 %v5251_v24, %v5411_v7  ;;  %v1259_v35 = vsel %vm297_vm1, %v1151_v38, %v4197_v58 }
 0x36e   :  { %v1119_v50 = vpack.c.bf16 %v1106_v40, %v1105_v26  ;;  %v5421_v28 = vsel %vm165_vm0, %v1826_v22, %v4228_v27  ;;  %v5425_v34 = vsel %vm165_vm0, %v5355_v62, %v4227_v25  ;;  %3900 = vmatmul.mubr.msk.bf16.gmra.mxu1 %vm1336_vm10, %v1284_v16  ;;  %v4251_v63 = vpop.permute.xlu1 %4250  ;;  %v1262_v22 = vsel %vm297_vm1, %v5342_v47, %v4203_v56 }
 0x36f   :  { %v1856_v48 = vpack.c.bf16 %v5421_v28, %v5425_v34  ;;  %v4253_v10 = vunpack.i.h.bf16 %v4251_v63  ;;  %v4252_v41 = vunpack.i.l.bf16 %v4251_v63  ;;  %v4241_v31 = vpop.permute.xlu0 %4240  ;;  %v1261_v62 = vsel %vm297_vm1, %v5332_v12, %v4202_v39 }
 0x370   :  { %v4243_v30 = vunpack.i.h.bf16 %v4241_v31  ;;  %v4242_v16 = vunpack.i.l.bf16 %v4241_v31  ;;  %3923 = vmatprep.mubr.msk.bf16.mxu0 %vm1336_vm10, %v1119_v50  ;;  %v1260_v11 = vsel %vm297_vm1, %v1152_v49, %v4198_v55  ;;  %v900_v40 = vmul.f32 %v5211_v57, %v5215_v32 }
 0x371   :  { %v1277_v0 = vsel %vm165_vm0, %v1261_v62, %v4252_v41  ;;  %v1278_v47 = vsel %vm165_vm0, %v1262_v22, %v4253_v10  ;;  %v899_v26 = vmul.f32 %v5206_v18, %v5253_v6  ;;  %v4163_v38 = vunpack.i.h.bf16 %v5241_v3 }
 0x372   :  { %v1286_v56 = vpack.c.bf16 %v1278_v47, %v1277_v0  ;;  %v1275_v27 = vsel %vm165_vm0, %v1259_v35, %v4242_v16  ;;  %v1276_v12 = vsel %vm165_vm0, %v1260_v11, %v4243_v30  ;;  %v4256_v25 = vpop.permute.xlu1 %4255  ;;  %v1092_v10 = vsel %vm297_vm1, %v900_v40, %v4147_v51  ;;  %v1622_v35 = vld [vmem:[#allocation2 + $0x4f] sm:$0xff] }
 0x373   :  { %v1285_v50 = vpack.c.bf16 %v1276_v12, %v1275_v27  ;;  %v4246_v28 = vpop.permute.xlu0 %4245  ;;  %v4257_v34 = vunpack.i.l.bf16 %v4256_v25  ;;  %v6378_v41 = vunpack.i.h.bf16 %v5187_v5  ;;  %v1635_v22 = vmul.f32 %v5248_v37, %v5253_v6 }
 0x374   :  { %v4248_v63 = vunpack.i.h.bf16 %v4246_v28  ;;  %v4247_v49 = vunpack.i.l.bf16 %v4246_v28  ;;  %v1636_v62 = vmul.f32 %v5251_v24, %v5215_v32  ;;  %v4258_v0 = vunpack.i.h.bf16 %v4256_v25  ;;  %v885_v25 = vld [vmem:[#allocation2 + $0x67] sm:$0xff] }
 0x375   :  { %v1091_v31 = vsel %vm297_vm1, %v899_v26, %v6378_v41  ;;  %3903 = vmatprep.mubr.msk.bf16.mxu1 %vm1336_vm10, %v1285_v50  ;;  %v1827_v6 = vsel %vm297_vm1, %v1635_v22, %v4163_v38  ;;  %v1638_v33 = vmul.f32 %v5211_v57, %v1622_v35  ;;  %v901_v41 = vmul.f32 %v5144_v15, %v885_v25 }
 0x376   :  { %v1108_v3 = vsel %vm165_vm0, %v1092_v10, %v4248_v63  ;;  %v1107_v30 = vsel %vm165_vm0, %v1091_v31, %v4247_v49  ;;  %3904 = vmatmul.mubr.msk.bf16.gmra.mxu1 %vm1336_vm10, %v1286_v56  ;;  %v4266_v21 = vpop.permute.xlu1 %4265  ;;  %v1828_v32 = vsel %vm297_vm1, %v1636_v62, %v4257_v34  ;;  %v1829_v28 = vsel %vm297_vm1, %v1637_v4, %v4258_v0 }
 0x377   :  { %v1120_v51 = vpack.c.bf16 %v1108_v3, %v1107_v30  ;;  %v4268_v16 = vunpack.i.h.bf16 %v4266_v21  ;;  %v4267_v5 = vunpack.i.l.bf16 %v4266_v21  ;;  %v4261_v11 = vpop.permute.xlu0 %4260  ;;  %3947 = vmatprep.mubr.msk.bf16.mxu1 %vm1336_vm10, %v1855_v9  ;;  %v904_v22 = vmul.f32 %v5185_v45, %v5287_v36 }
 0x378   :  { %v4262_v27 = vunpack.i.l.bf16 %v4261_v11  ;;  %v4263_v31 = vunpack.i.h.bf16 %v4261_v11  ;;  %v905_v62 = vmul.f32 %v5248_v37, %v5289_v8  ;;  %v908_v3 = vmul.f32 %v5211_v57, %v5302_v2 }
 0x379   :  { %v1843_v47 = vsel %vm165_vm0, %v1827_v6, %v4267_v5  ;;  %v1844_v56 = vsel %vm165_vm0, %v1828_v32, %v4268_v16  ;;  %3924 = vmatmul.mubr.msk.bf16.gmra.mxu0 %vm1336_vm10, %v1120_v51  ;;  %v903_v30 = vmul.f32 %v5178_v54, %v5323_v59  ;;  %v906_v21 = vmul.f32 %v5251_v24, %v5407_v19 }
 0x37a   :  { %v1857_v12 = vpack.c.bf16 %v1844_v56, %v1843_v47  ;;  %v4276_v40 = vpop.permute.xlu1 %4275  ;;  %v1830_v38 = vsel %vm297_vm1, %v1638_v33, %v4262_v27  ;;  %v907_v16 = vmul.f32 %v5206_v18, %v5411_v7  ;;  %v1639_v5 = vmul.f32 %v5144_v15, %v5323_v59 }
 0x37b   :  { %v4271_v9 = vpop.permute.xlu0 %4270  ;;  %v1093_v35 = vsel %vm297_vm1, %v901_v41, %v4263_v31  ;;  %v4278_v0 = vunpack.i.h.bf16 %v4276_v40  ;;  %v4277_v47 = vunpack.i.l.bf16 %v4276_v40  ;;  %v1640_v56 = vmul.f32 %v5147_v23, %v5287_v36 }
 0x37c   :  { %v4273_v26 = vunpack.i.h.bf16 %v4271_v9  ;;  %v4272_v50 = vunpack.i.l.bf16 %v4271_v9  ;;  %v1643_v27 = vmul.f32 %v5248_v37, %v5411_v7  ;;  %v1642_v4 = vmul.f32 %v5185_v45, %v5407_v19 }
 0x37d   :  { %v1096_v37 = vsel %vm297_vm1, %v904_v22, %v4192_v1  ;;  %v1095_v36 = vsel %vm297_vm1, %v903_v30, %v4188_v43  ;;  %v1097_v46 = vsel %vm297_vm1, %v905_v62, %v4193_v61  ;;  %v1100_v30 = vsel %vm297_vm1, %v908_v3, %v4202_v39 }
 0x37e   :  { %v1845_v34 = vsel %vm165_vm0, %v1829_v28, %v4272_v50  ;;  %v1846_v63 = vsel %vm165_vm0, %v1830_v38, %v4273_v26  ;;  %3948 = vmatmul.mubr.msk.bf16.vlgmr.msra.gmra.mxu1 %vm1336_vm10, %v1856_v48  ;;  %v5485_v49 = vpop.permute.xlu1 %4285  ;;  %v902_v48 = vmul.f32 %v5147_v23, %v5314_v44  ;;  %v1098_v38 = vsel %vm297_vm1, %v906_v21, %v4197_v58 }
 0x37f   :  { %v1858_v10 = vpack.c.bf16 %v1846_v63, %v1845_v34  ;;  %v4281_v60 = vpop.permute.xlu0 %4280  ;;  %3951 = vmatprep.mubr.msk.bf16.mxu1 %vm1336_vm10, %v1857_v12  ;;  %v1644_v12 = vmul.f32 %v5251_v24, %v5302_v2  ;;  %v4288_v41 = vunpack.i.h.bf16 %v5485_v49  ;;  %v4287_v53 = vunpack.i.l.bf16 %v5485_v49 }
 0x380   :  { %v1094_v44 = vsel %vm297_vm1, %v902_v48, %v4187_v20  ;;  %v1641_v20 = vmul.f32 %v5178_v54, %v5289_v8  ;;  %v1831_v54 = vsel %vm297_vm1, %v1639_v5, %v4277_v47  ;;  %v1832_v8 = vsel %vm297_vm1, %v1640_v56, %v4278_v0  ;;  %v1630_v56 = vld [vmem:[#allocation2 + $0xaf] sm:$0xff] }
 0x381   :  { %v4283_v33 = vunpack.i.h.bf16 %v4281_v60  ;;  %v4282_v9 = vunpack.i.l.bf16 %v4281_v60  ;;  %v1836_v47 = vsel %vm297_vm1, %v1644_v12, %v4288_v41  ;;  %v1835_v52 = vsel %vm297_vm1, %v1643_v27, %v4287_v53 }
 0x382   :  { %v4296_v51 = vpop.permute.xlu1 %4295 }
 0x383   :  { %v4298_v11 = vunpack.i.h.bf16 %v4296_v51  ;;  %v4297_v6 = vunpack.i.l.bf16 %v4296_v51  ;;  %v5505_v32 = vpop.permute.xlu0 %4290  ;;  %v1834_v22 = vsel %vm297_vm1, %v1642_v4, %v4283_v33  ;;  %v1833_v62 = vsel %vm297_vm1, %v1641_v20, %v4282_v9 }
 0x384   :  { %v1645_v20 = vmul.f32 %v5206_v18, %v5312_v42  ;;  %v1646_v4 = vmul.f32 %v5211_v57, %v1630_v56  ;;  %v2077_v57 = vld [vmem:[%s6368_s24 + $0x18] sm:$0xff]  ;;  %v2076_v42 = vld [vmem:[%s6368_s24 + $0x10] sm:$0xff] }
 0x385   :  { %v1109_v15 = vsel %vm165_vm0, %v1093_v35, %v4297_v6  ;;  %v1110_v59 = vsel %vm165_vm0, %v1094_v44, %v4298_v11  ;;  %v1099_v11 = vsel %vm297_vm1, %v907_v16, %v4198_v55  ;;  %3964 = vmatpush3.msra.mxu0 %v2077_v57 }
 0x386   :  { %v1121_v40 = vpack.c.bf16 %v1110_v59, %v1109_v15  ;;  %3952 = vmatmul.mubr.msk.bf16.gmra.mxu1 %vm1336_vm10, %v1858_v10  ;;  %v4306_v23 = vpop.permute.xlu1 %4305  ;;  %v4293_v15 = vunpack.i.h.bf16 %v5505_v32  ;;  %v4292_v59 = vunpack.i.l.bf16 %v5505_v32  ;;  %3965 = vmatprep.subr.mxu0 %v6347_v13 }
 0x387   :  { %v4308_v7 = vunpack.i.h.bf16 %v4306_v23  ;;  %v4307_v24 = vunpack.i.l.bf16 %v4306_v23  ;;  %v4301_v2 = vpop.permute.xlu0 %4300  ;;  %3966 = vmatpush3.msra.mxu0 %v2076_v42 }
 0x388   :  { %v4303_v45 = vunpack.i.h.bf16 %v4301_v2  ;;  %v4302_v19 = vunpack.i.l.bf16 %v4301_v2  ;;  %3927 = vmatprep.mubr.msk.bf16.mxu0 %vm1336_vm10, %v1121_v40  ;;  %3967 = vmatprep.subr.mxu0 %v6347_v13 }
 0x389   :  { %v1848_v26 = vsel %vm165_vm0, %v1832_v8, %v4308_v7  ;;  %v1847_v1 = vsel %vm165_vm0, %v1831_v54, %v4307_v24  ;;  %v1837_v7 = vsel %vm297_vm1, %v1645_v20, %v4292_v59  ;;  %v2075_v54 = vld [vmem:[%s6368_s24 + $0x8] sm:$0xff]  ;;  %v2074_v8 = vld [vmem:[%s6368_s24] sm:$0xff] }
 0x38a   :  { %v1859_v43 = vpack.c.bf16 %v1848_v26, %v1847_v1  ;;  %v1112_v50 = vsel %vm165_vm0, %v1096_v37, %v4303_v45  ;;  %v1111_v28 = vsel %vm165_vm0, %v1095_v36, %v4302_v19  ;;  %v4316_v25 = vpop.permute.xlu1 %4315  ;;  %v1838_v36 = vsel %vm297_vm1, %v1646_v4, %v4293_v15  ;;  %3968 = vmatpush3.msra.mxu0 %v2075_v54 }
 0x38b   :  { %v1122_v34 = vpack.c.bf16 %v1112_v50, %v1111_v28  ;;  %v4318_v63 = vunpack.i.h.bf16 %v4316_v25  ;;  %v4317_v10 = vunpack.i.l.bf16 %v4316_v25  ;;  %v4311_v60 = vpop.permute.xlu0 %4310  ;;  %3969 = vmatprep.subr.mxu0 %v6347_v13 }
 0x38c   :  { %v4313_v31 = vunpack.i.h.bf16 %v4311_v60  ;;  %v4312_v61 = vunpack.i.l.bf16 %v4311_v60  ;;  %3955 = vmatprep.mubr.msk.bf16.mxu1 %vm1336_vm10, %v1859_v43  ;;  %3970 = vmatpush3.msra.mxu0 %v2074_v8 }
 0x38d   :  { %v1113_v48 = vsel %vm165_vm0, %v1097_v46, %v4317_v10  ;;  %v1114_v58 = vsel %vm165_vm0, %v1098_v38, %v4318_v63  ;;  %3928 = vmatmul.mubr.msk.bf16.gmra.mxu0 %vm1336_vm10, %v1122_v34  ;;  %3974 = vmatprep.subr.mxu0 %v6347_v13 }
 0x38e   :  { %v1123_v21 = vpack.c.bf16 %v1114_v58, %v1113_v48  ;;  %v1849_v49 = vsel %vm165_vm0, %v1833_v62, %v4312_v61  ;;  %v1850_v51 = vsel %vm165_vm0, %v1834_v22, %v4313_v31  ;;  %v4326_v5 = vpop.permute.xlu1 %4325 }
 0x38f   :  { %v1860_v6 = vpack.c.bf16 %v1850_v51, %v1849_v49  ;;  %v4328_v44 = vunpack.i.h.bf16 %v4326_v5  ;;  %v4327_v35 = vunpack.i.l.bf16 %v4326_v5  ;;  %v4321_v0 = vpop.permute.xlu0 %4320 }
 0x390   :  { %v4323_v39 = vunpack.i.h.bf16 %v4321_v0  ;;  %v4322_v3 = vunpack.i.l.bf16 %v4321_v0  ;;  %3931 = vmatprep.mubr.msk.bf16.mxu0 %vm1336_vm10, %v1123_v21 }
 0x391   :  { %v1852_v17 = vsel %vm165_vm0, %v1836_v47, %v4328_v44  ;;  %v1851_v55 = vsel %vm165_vm0, %v1835_v52, %v4327_v35  ;;  %3956 = vmatmul.mubr.msk.bf16.gmra.mxu1 %vm1336_vm10, %v1860_v6  ;;  %v5618_v6 = vld [vmem:[%s6328_s10] ss:$0 sm:$0xff] }
 0x392   :  { %v1861_v16 = vpack.c.bf16 %v1852_v17, %v1851_v55  ;;  %v1116_v12 = vsel %vm165_vm0, %v1100_v30, %v4323_v39  ;;  %v1115_v27 = vsel %vm165_vm0, %v1099_v11, %v4322_v3 }
 0x393   :  { %v1124_v40 = vpack.c.bf16 %v1116_v12, %v1115_v27  ;;  %v4331_v23 = vpop.permute.xlu0 %4330 }
 0x394   :  { %v4333_v37 = vunpack.i.h.bf16 %v4331_v23  ;;  %v4332_v32 = vunpack.i.l.bf16 %v4331_v23  ;;  %3959 = vmatprep.mubr.msk.bf16.mxu1 %vm1336_vm10, %v1861_v16 }
 0x395   :  { %3932 = vmatmul.mubr.msk.bf16.gmra.mxu0 %vm1336_vm10, %v1124_v40 }
 0x396   :  { %v1853_v24 = vsel %vm165_vm0, %v1837_v7, %v4332_v32  ;;  %v1854_v2 = vsel %vm165_vm0, %v1838_v36, %v4333_v37  ;;  %3971 = vmatprep.mubr.msk.f32.mxu0 %vm4409_vm2, %v6347_v13 }
 0x397   :  { %v1862_v18 = vpack.c.bf16 %v1854_v2, %v1853_v24 }
 0x399   :  { %3960 = vmatmul.mubr.msk.bf16.gmra.mxu1 %vm1336_vm10, %v1862_v18 }
 0x39a   :  { %4037 = vmatprep.mubr.msk.f32.mxu1 %vm4409_vm2, %v6347_v13 }
 0x414   :  { %v3893_v45 = vpop.f32.mrf.mxu1 }
 0x416   :  { %v1395_v19 = vpop.f32.mrf.mxu1 }
 0x418   :  { %v3894_v33 = vpop.f32.mrf.mxu1 }
 0x41a   :  { %v1398_v9 = vpop.f32.mrf.mxu1 }
 0x41e   :  { %v3897_v26 = vpop.f32.mrf.mxu1 }
 0x420   :  { %v1411_v1 = vpop.f32.mrf.mxu1 }
 0x422   :  { %v3898_v46 = vpop.f32.mrf.mxu1 }
 0x424   :  { %v1414_v43 = vpop.f32.mrf.mxu1 }
 0x429   :  { %v3921_v50 = vpop.f32.mrf.mxu0 }
 0x42a   :  { %v1561_v58 = vadd.f32 %v3921_v50, %v3893_v45 }
 0x42b   :  { %v1552_v38 = vpop.f32.mrf.mxu0 }
 0x42c   :  { %v1553_v48 = vadd.f32 %v1552_v38, %v1395_v19 }
 0x42d   :  { %v3922_v10 = vpop.f32.mrf.mxu0 }
 0x42e   :  { %v5599_v28 = vpop.f32.mrf.mxu1  ;;  %v1564_v51 = vadd.f32 %v3922_v10, %v3894_v33 }
 0x42f   :  { %v1555_v53 = vpop.f32.mrf.mxu0 }
 0x430   :  { %v5601_v25 = vpop.f32.mrf.mxu1  ;;  %v1556_v44 = vadd.f32 %v1555_v53, %v1398_v9 }
 0x432   :  { %v5603_v34 = vpop.f32.mrf.mxu1 }
 0x434   :  { %v5605_v63 = vpop.f32.mrf.mxu1 }
 0x436   :  { %v5607_v60 = vpop.f32.mrf.mxu1 }
 0x438   :  { %v5609_v41 = vpop.f32.mrf.mxu1 }
 0x439   :  { %v3925_v61 = vpop.f32.mrf.mxu0 }
 0x43a   :  { %v5611_v31 = vpop.f32.mrf.mxu1  ;;  %v1577_v27 = vadd.f32 %v3925_v61, %v3897_v26 }
 0x43b   :  { %v1568_v30 = vpop.f32.mrf.mxu0 }
 0x43c   :  { %v5613_v22 = vpop.f32.mrf.mxu1  ;;  %v1569_v15 = vadd.f32 %v1568_v30, %v1411_v1 }
 0x43d   :  { %v3926_v35 = vpop.f32.mrf.mxu0 }
 0x43e   :  { %v3949_v62 = vpop.f32.mrf.mxu1  ;;  %v1580_v36 = vadd.f32 %v3926_v35, %v3898_v46 }
 0x43f   :  { %v2035_v5 = vadd.f32 %v3949_v62, %v1561_v58  ;;  %v1571_v59 = vpop.f32.mrf.mxu0 }
 0x440   :  { %v1970_v21 = vpop.f32.mrf.mxu1  ;;  %v1572_v7 = vadd.f32 %v1571_v59, %v1414_v43 }
 0x441   :  { %v2033_v49 = vadd.f32 %v1970_v21, %v1553_v48  ;;  %v5624_v56 = vadd.f32 %v5618_v6, %v2035_v5 }
 0x442   :  { %v3950_v11 = vpop.f32.mrf.mxu1 }
 0x443   :  { %v5621_v0 = vadd.f32 %v5618_v6, %v2033_v49  ;;  %v2036_v47 = vadd.f32 %v3950_v11, %v1564_v51  ;;  %v2126_v4 = vmul.f32 %v5624_v56, %v5624_v56  ;;  %v2085_v18 = vsel %vm297_vm1, %v5624_v56, 0.0 }
 0x444   :  { %v1973_v52 = vpop.f32.mrf.mxu1 }
 0x445   :  { %v2034_v39 = vadd.f32 %v1973_v52, %v1556_v44  ;;  %v2124_v17 = vmul.f32 %v5621_v0, %v5621_v0  ;;  %v5629_v55 = vadd.f32 %v5618_v6, %v2036_v47  ;;  %v2082_v40 = vsel %vm297_vm1, %v5621_v0, 0.0 }
 0x446   :  { %v3953_v3 = vpop.f32.mrf.mxu1  ;;  %v2143_v1 = vsel %vm297_vm1, %v2126_v4, 0.0 }
 0x447   :  { %v5632_v16 = vadd.f32 %v5618_v6, %v2034_v39  ;;  %v2140_v57 = vsel %vm297_vm1, %v2124_v17, 0.0  ;;  %v2127_v42 = vmul.f32 %v5629_v55, %v5629_v55  ;;  %v2039_v33 = vadd.f32 %v3953_v3, %v1577_v27 }
 0x448   :  { %v1986_v12 = vpop.f32.mrf.mxu1  ;;  %v2087_v46 = vsel %vm297_vm1, %v5629_v55, 0.0 }
 0x449   :  { %v2037_v20 = vadd.f32 %v1986_v12, %v1569_v15  ;;  %v2083_v23 = vsel %vm297_vm1, %v5632_v16, 0.0  ;;  %v2125_v37 = vmul.f32 %v5632_v16, %v5632_v16  ;;  %v2145_v61 = vsel %vm297_vm1, %v2127_v42, 0.0 }
 0x44a   :  { %v3954_v32 = vpop.f32.mrf.mxu1  ;;  %v2084_v24 = vadd.f32 %v2083_v23, %v2082_v40  ;;  %v5663_v58 = vadd.f32 %v5618_v6, %v2039_v33 }
 0x44b   :  { %v5643_v2 = vadd.f32 %v5618_v6, %v2037_v20  ;;  %v2141_v54 = vsel %vm297_vm1, %v2125_v37, 0.0  ;;  %v2040_v9 = vadd.f32 %v3954_v32, %v1580_v36 }
 0x44c   :  { %v1989_v8 = vpop.f32.mrf.mxu1  ;;  %v2086_v45 = vadd.f32 %v2085_v18, %v2084_v24  ;;  %v2142_v19 = vadd.f32 %v2141_v54, %v2140_v57  ;;  %v2130_v27 = vmul.f32 %v5663_v58, %v5663_v58 }
 0x44d   :  { %v3929_v26 = vpop.f32.mrf.mxu0  ;;  %v2038_v43 = vadd.f32 %v1989_v8, %v1572_v7  ;;  %v2128_v10 = vmul.f32 %v5643_v2, %v5643_v2  ;;  %v2089_v62 = vsel %vm297_vm1, %v5643_v2, 0.0  ;;  %v5666_v49 = vadd.f32 %v5618_v6, %v2040_v9 }
 0x44e   :  { %v2144_v50 = vadd.f32 %v2143_v1, %v2142_v19  ;;  %v2088_v38 = vadd.f32 %v2087_v46, %v2086_v45  ;;  %v1593_v35 = vadd.f32 %v3929_v26, %v5599_v28  ;;  %v2093_v28 = vsel %vm297_vm1, %v5663_v58, 0.0 }
 0x44f   :  { %v1584_v53 = vpop.f32.mrf.mxu0  ;;  %v5660_v48 = vadd.f32 %v5618_v6, %v2038_v43  ;;  %v2147_v52 = vsel %vm297_vm1, %v2128_v10, 0.0  ;;  %v2151_v42 = vsel %vm297_vm1, %v2130_v27, 0.0  ;;  %v2095_v19 = vsel %vm297_vm1, %v5666_v49, 0.0 }
 0x450   :  { %v2090_v30 = vadd.f32 %v2089_v62, %v2088_v38  ;;  %v2146_v21 = vadd.f32 %v2145_v61, %v2144_v50  ;;  %v1585_v47 = vadd.f32 %v1584_v53, %v5601_v25  ;;  %v2131_v25 = vmul.f32 %v5666_v49, %v5666_v49 }
 0x451   :  { %v3930_v51 = vpop.f32.mrf.mxu0  ;;  %v3957_v5 = vpop.f32.mrf.mxu1  ;;  %v2091_v11 = vsel %vm297_vm1, %v5660_v48, 0.0  ;;  %v2129_v44 = vmul.f32 %v5660_v48, %v5660_v48 }
 0x452   :  { %v2092_v39 = vadd.f32 %v2091_v11, %v2090_v30  ;;  %v2148_v59 = vadd.f32 %v2147_v52, %v2146_v21  ;;  %v2043_v17 = vadd.f32 %v3957_v5, %v1593_v35  ;;  %v1596_v4 = vadd.f32 %v3930_v51, %v5603_v34 }
 0x453   :  { %v1587_v3 = vpop.f32.mrf.mxu0  ;;  %v2002_v15 = vpop.f32.mrf.mxu1  ;;  %v2149_v20 = vsel %vm297_vm1, %v2129_v44, 0.0  ;;  %v2153_v33 = vsel %vm297_vm1, %v2131_v25, 0.0 }
 0x454   :  { %v2041_v12 = vadd.f32 %v2002_v15, %v1585_v47  ;;  %v2094_v32 = vadd.f32 %v2093_v28, %v2092_v39  ;;  %v1588_v36 = vadd.f32 %v1587_v3, %v5605_v63  ;;  %v2150_v57 = vadd.f32 %v2149_v20, %v2148_v59 }
 0x455   :  { %v3933_v40 = vpop.f32.mrf.mxu0  ;;  %v3958_v23 = vpop.f32.mrf.mxu1  ;;  %v5688_v34 = vadd.f32 %v5618_v6, %v2043_v17 }
 0x456   :  { %v5684_v37 = vadd.f32 %v5618_v6, %v2041_v12  ;;  %v2044_v7 = vadd.f32 %v3958_v23, %v1596_v4  ;;  %v2096_v26 = vadd.f32 %v2095_v19, %v2094_v32  ;;  %v1609_v1 = vadd.f32 %v3933_v40, %v5607_v60 }
 0x457   :  { %v1600_v24 = vpop.f32.mrf.mxu0  ;;  %v2005_v18 = vpop.f32.mrf.mxu1  ;;  %v2152_v38 = vadd.f32 %v2151_v42, %v2150_v57  ;;  %v2134_v10 = vmul.f32 %v5688_v34, %v5688_v34  ;;  %v2106_v5 = vsel %vm297_vm1, %v5688_v34, 0.0 }
 0x458   :  { %v2042_v54 = vadd.f32 %v2005_v18, %v1588_v36  ;;  %v2132_v63 = vmul.f32 %v5684_v37, %v5684_v37  ;;  %v1601_v9 = vadd.f32 %v1600_v24, %v5609_v41  ;;  %v5699_v46 = vadd.f32 %v5618_v6, %v2044_v7 }
 0x459   :  { %v3934_v8 = vpop.f32.mrf.mxu0  ;;  %v3961_v45 = vpop.f32.mrf.mxu1  ;;  %v2103_v53 = vsel %vm297_vm1, %v5684_v37, 0.0  ;;  %v2154_v15 = vadd.f32 %v2153_v33, %v2152_v38  ;;  %v2164_v59 = vsel %vm297_vm1, %v2134_v10, 0.0  ;;  %v2097_v7 = vrot.slane %v2096_v26, 4 }
 0x45a   :  { %v5702_v43 = vadd.f32 %v5618_v6, %v2042_v54  ;;  %v1612_v30 = vadd.f32 %v3934_v8, %v5611_v31  ;;  %v2047_v21 = vadd.f32 %v3961_v45, %v1609_v1  ;;  %v2161_v11 = vsel %vm297_vm1, %v2132_v63, 0.0 }
 0x45b   :  { %v2018_v50 = vpop.f32.mrf.mxu1  ;;  %v1603_v61 = vpop.f32.mrf.mxu0  ;;  %v2135_v47 = vmul.f32 %v5699_v46, %v5699_v46  ;;  %v2108_v27 = vsel %vm297_vm1, %v5699_v46, 0.0  ;;  %v2155_v24 = vrot.slane %v2154_v15, 4  ;;  %v2098_v1 = vadd.f32 %v2097_v7, %v2096_v26 }
 0x45c   :  { %v2045_v62 = vadd.f32 %v2018_v50, %v1601_v9  ;;  %v2104_v41 = vsel %vm297_vm1, %v5702_v43, 0.0  ;;  %v2133_v60 = vmul.f32 %v5702_v43, %v5702_v43  ;;  %v1604_v39 = vadd.f32 %v1603_v61, %v5613_v22 }
 0x45d   :  { %v3962_v51 = vpop.f32.mrf.mxu1  ;;  %v2105_v44 = vadd.f32 %v2104_v41, %v2103_v53  ;;  %v5727_v20 = vadd.f32 %v5618_v6, %v2047_v21  ;;  %v2166_v22 = vsel %vm297_vm1, %v2135_v47, 0.0  ;;  %v2156_v50 = vadd.f32 %v2155_v24, %v2154_v15  ;;  %v2081_v24 = vld [vmem:[%s6369_s5 + $0x18] sm:$0xff] }
 0x45e   :  { %v5717_v35 = vadd.f32 %v5618_v6, %v2045_v62  ;;  %v2162_v52 = vsel %vm297_vm1, %v2133_v60, 0.0  ;;  %v2048_v3 = vadd.f32 %v3962_v51, %v1612_v30  ;;  %v2099_v30 = vrot.slane %v2098_v1, 2 }
 0x45f   :  { %v2021_v31 = vpop.f32.mrf.mxu1  ;;  %v2107_v17 = vadd.f32 %v2106_v5, %v2105_v44  ;;  %v2163_v12 = vadd.f32 %v2162_v52, %v2161_v11  ;;  %v2138_v42 = vmul.f32 %v5727_v20, %v5727_v20  ;;  %v2157_v21 = vrot.slane %v2156_v50, 2 }
 0x460   :  { %v2136_v4 = vmul.f32 %v5717_v35, %v5717_v35  ;;  %v2046_v40 = vadd.f32 %v2021_v31, %v1604_v39  ;;  %v2110_v25 = vsel %vm297_vm1, %v5717_v35, 0.0  ;;  %v5735_v32 = vadd.f32 %v5618_v6, %v2048_v3 }
 0x461   :  { %v2165_v23 = vadd.f32 %v2164_v59, %v2163_v12  ;;  %v2109_v28 = vadd.f32 %v2108_v27, %v2107_v17  ;;  %v2172_v53 = vsel %vm297_vm1, %v2138_v42, 0.0  ;;  %v2100_v47 = vadd.f32 %v2099_v30, %v2098_v1  ;;  %v2078_v42 = vld [vmem:[%s6369_s5] sm:$0xff] }
 0x462   :  { %v5738_v36 = vadd.f32 %v5618_v6, %v2046_v40  ;;  %v2168_v54 = vsel %vm297_vm1, %v2136_v4, 0.0  ;;  %v2114_v6 = vsel %vm297_vm1, %v5727_v20, 0.0  ;;  %v2139_v63 = vmul.f32 %v5735_v32, %v5735_v32 }
 0x463   :  { %v2111_v18 = vadd.f32 %v2110_v25, %v2109_v28  ;;  %v2167_v57 = vadd.f32 %v2166_v22, %v2165_v23  ;;  %v2116_v61 = vsel %vm297_vm1, %v5735_v32, 0.0  ;;  %v2158_v39 = vadd.f32 %v2157_v21, %v2156_v50  ;;  %v3662_v21 = vld [vmem:[%s6330_s12] ss:$0 sm:$0xff] }
 0x464   :  { %v2112_v8 = vsel %vm297_vm1, %v5738_v36, 0.0  ;;  %v2137_v45 = vmul.f32 %v5738_v36, %v5738_v36  ;;  %v2174_v60 = vsel %vm297_vm1, %v2139_v63, 0.0  ;;  %v2101_v15 = vrot.slane %v2100_v47, 1 }
 0x465   :  { %v2169_v19 = vadd.f32 %v2168_v54, %v2167_v57  ;;  %v2113_v33 = vadd.f32 %v2112_v8, %v2111_v18  ;;  %v2159_v17 = vrot.slane %v2158_v39, 1  ;;  %v2080_v18 = vld [vmem:[%s6369_s5 + $0x10] sm:$0xff]  ;;  %v2079_v57 = vld [vmem:[%s6369_s5 + $0x8] sm:$0xff] }
 0x466   :  { %v2170_v9 = vsel %vm297_vm1, %v2137_v45, 0.0  ;;  %v2102_v40 = vadd.f32 %v2101_v15, %v2100_v47 }
 0x467   :  { %v2115_v38 = vadd.f32 %v2114_v6, %v2113_v33  ;;  %v2171_v10 = vadd.f32 %v2170_v9, %v2169_v19  ;;  %v2160_v23 = vadd.f32 %v2159_v17, %v2158_v39 }
 0x469   :  { %v2117_v62 = vadd.f32 %v2116_v61, %v2115_v38  ;;  %v2173_v41 = vadd.f32 %v2172_v53, %v2171_v10  ;;  %v4364_v38 = vld [vmem:[%s6331_s13 + $0x8] sm:$0xff]   ;;  %v4365_v10 = vld [vmem:[%s6331_s13] sm:$0xff]  }
 0x46a   :  { %v3661_v53 = vld [vmem:[%s6329_s11] ss:$0 sm:$0xff] }
 0x46b   :  { %v2118_v51 = vrot.slane %v2117_v62, 4  ;;  %v2175_v5 = vadd.f32 %v2174_v60, %v2173_v41 }
 0x46d   :  { %v2119_v11 = vadd.f32 %v2118_v51, %v2117_v62  ;;  %v2176_v44 = vrot.slane %v2175_v5, 4 }
 0x46f   :  { %v2120_v26 = vrot.slane %v2119_v11, 2  ;;  %v2177_v52 = vadd.f32 %v2176_v44, %v2175_v5 }
 0x471   :  { %v2121_v3 = vadd.f32 %v2120_v26, %v2119_v11  ;;  %v2178_v31 = vrot.slane %v2177_v52, 2 }
 0x473   :  { %v2122_v59 = vrot.slane %v2121_v3, 1  ;;  %v2179_v12 = vadd.f32 %v2178_v31, %v2177_v52 }
 0x475   :  { %v2123_v27 = vadd.f32 %v2122_v59, %v2121_v3  ;;  %v2180_v4 = vrot.slane %v2179_v12, 1 }
 0x477   :  { %v2181_v28 = vadd.f32 %v2180_v4, %v2179_v12  ;;  %v2184_v22 = vsel %vm400_vm3, %v2123_v27, %v2102_v40 }
 0x479   :  { %v2188_v25 = vsel %vm405_vm4, %v2181_v28, %v2160_v23 }
 0x47a   :  { %v2190_v7 = vsel %vm408_vm5, %v2184_v22, %v2188_v25 }
 0x47b   :  { %3972 = vmatmul.mubr.msk.f32.vlgmr.msra.gmra.mxu0 %vm297_vm1, %v2190_v7 }
 0x47c   :  { %3982 = vmatprep.mubr.msk.f32.mxu0 %vm4409_vm2, %v6347_v13  ;;  %3975 = vmatpush3.msra.mxu0 %v2081_v24 }
 0x47d   :  { %3976 = vmatprep.subr.mxu0 %v6347_v13 }
 0x47e   :  { %3977 = vmatpush3.msra.mxu0 %v2080_v18 }
 0x47f   :  { %3978 = vmatprep.subr.mxu0 %v6347_v13 }
 0x480   :  { %3979 = vmatpush3.msra.mxu0 %v2079_v57 }
 0x481   :  { %3980 = vmatprep.subr.mxu0 %v6347_v13 }
 0x482   :  { %3981 = vmatpush3.msra.mxu0 %v2078_v42 }
 0x483   :  { %3985 = vmatprep.subr.bf16.mxu0 %v4364_v38 }
 0x53b   :  { %v2260_v54 = vpop.f32.mrf.mxu0 }
 0x53c   :  { %v2264_v8 = vmul.f32 0.015625, %v2260_v54 }
 0x53d   :  { %v3973_v45 = vpop.f32.mrf.mxu0 }
 0x53e   :  { %v2265_v19 = vmul.f32 %v2264_v8, %v2264_v8 }
 0x540   :  { %v2267_v33 = vrot.slane %v2265_v19, 6 }
 0x542   :  { %v2269_v6 = vsub.f32 %v2264_v8, %v2267_v33 }
 0x544   :  { %v2270_v63 = vmax.f32 %v2269_v6, 0.0 }
 0x546   :  { %v2271_v9 = vadd.f32 1e-05, %v2270_v63 }
 0x548   :  { %4372 = vrsqrt.f32 %v2271_v9 }
 0x555   :  { %v4373_v1 = vpop.eup %4372 }
 0x556   :  { %v2273_v50 = vsel %vm408_vm5, %v2264_v8, %v4373_v1 }
 0x557   :  { %3983 = vmatmul.mubr.msk.f32.vlgmr.msra.gmra.mxu0 %vm297_vm1, %v2273_v50 }
 0x558   :  { %3986 = vmatpush3.bf16.msra.mxu0 %v4364_v38 }
 0x559   :  { %3987 = vmatprep.subr.bf16.mxu0 %v4365_v10 }
 0x55c   :  { %3988 = vmatpush3.bf16.msra.mxu0 %v4365_v10 }
 0x617   :  { %v2343_v61 = vpop.f32.mrf.mxu0 }
 0x618   :  { %v2353_v62 = vmul.f32 %v3661_v53, %v2343_v61 }
 0x619   :  { %v3984_v41 = vpop.f32.mrf.mxu0 }
 0x61a   :  { %v2355_v60 = vrot.slane %v2353_v62, 2  ;;  %v2371_v30 = vrot.slane %v2353_v62, %v4773_v14 }
 0x61c   :  { %v2357_v51 = vmul.f32 %v2355_v60, %v2343_v61  ;;  %v2372_v5 = vcombine.high %v2371_v30, %v2371_v30  ;;  %v2379_v11 = vrot.slane %v2371_v30, %v4773_v14 }
 0x61e   :  { %v2364_v44 = vsub.f32 %v3662_v21, %v2357_v51  ;;  %v2386_v47 = vrot.slane %v2372_v5, %v4773_v14  ;;  %v2387_v26 = vcombine.high %v2379_v11, %v2379_v11 }
 0x620   :  { %v2392_v52 = vrot.slane %v2387_v26, %v4781_v29  ;;  %v2422_v39 = vrot.slane %v2364_v44, %v4773_v14  ;;  %v2388_v3 = vcombine.high %v2386_v47, %v2386_v47 }
 0x622   :  { %v2423_v31 = vcombine.high %v2422_v39, %v2422_v39  ;;  %v2430_v15 = vrot.slane %v2422_v39, %v4773_v14  ;;  %v2399_v59 = vmul.f32 %v2392_v52, %v5621_v0  ;;  %v2400_v27 = vmul.f32 %v2392_v52, %v5632_v16 }
 0x623   :  { %v2401_v4 = vmul.f32 %v2392_v52, %v5624_v56  ;;  %v2402_v40 = vmul.f32 %v2392_v52, %v5629_v55  ;;  %v2403_v23 = vmul.f32 %v2392_v52, %v5643_v2  ;;  %v2404_v28 = vmul.f32 %v2392_v52, %v5660_v48 }
 0x624   :  { %v2437_v17 = vrot.slane %v2423_v31, %v4773_v14  ;;  %v2441_v12 = vrot.slane %v2430_v15, %v4781_v29  ;;  %v2396_v22 = vrot.slane %v2388_v3, %v4781_v29  ;;  %v2405_v42 = vmul.f32 %v2392_v52, %v5663_v58 }
 0x625   :  { %v2406_v48 = vmul.f32 %v2392_v52, %v5666_v49 }
 0x626   :  { %v2448_v25 = vadd.f32 %v2441_v12, %v2399_v59  ;;  %v2449_v7 = vadd.f32 %v2441_v12, %v2400_v27  ;;  %v2450_v24 = vadd.f32 %v2441_v12, %v2401_v4  ;;  %v2451_v0 = vadd.f32 %v2441_v12, %v2402_v40  ;;  %v4369_v27 = vld [vmem:[%s6335_s17] sm:$0xff]   ;;  %v5844_v4 = vld [vmem:[%s6379_s23 + $0x78] sm:$0xff]  ;;  %v5850_v40 = vld [vmem:[%s6379_s23 + $0x70] sm:$0xff] }
 0x627   :  { %v2452_v18 = vadd.f32 %v2441_v12, %v2403_v23  ;;  %v2453_v57 = vadd.f32 %v2441_v12, %v2404_v28  ;;  %v2445_v16 = vrot.slane %v2437_v17, %v4781_v29  ;;  %v2407_v33 = vmul.f32 %v2396_v22, %v5684_v37  ;;  %v4378_v17 = vld [vmem:[%s6367_s30] sm:$0xff]   ;;  %4006 = vmatpush3.msra.mxu1 %v5844_v4  ;;  %v5858_v23 = vld [vmem:[%s6379_s23 + $0x68] sm:$0xff] }
 0x628   :  { %v2464_v54 = vmax.f32 %v2448_v25, 0.0  ;;  %v2465_v56 = vmax.f32 %v2449_v7, 0.0  ;;  %v2466_v8 = vmax.f32 %v2450_v24, 0.0  ;;  %v2467_v55 = vmax.f32 %v2451_v0, 0.0  ;;  %4007 = vmatprep.subr.mxu1 %v6347_v13  ;;  %v5863_v28 = vld [vmem:[%s6379_s23 + $0x60] sm:$0xff]  ;;  %v4380_v25 = vld [vmem:[%s6367_s30 + $0x10] sm:$0xff]  }
 0x629   :  { %v2468_v45 = vmax.f32 %v2452_v18, 0.0  ;;  %v2469_v2 = vmax.f32 %v2453_v57, 0.0  ;;  %v2408_v6 = vmul.f32 %v2396_v22, %v5702_v43  ;;  %v2454_v9 = vadd.f32 %v2441_v12, %v2405_v42  ;;  %4008 = vmatpush3.msra.mxu1 %v5850_v40  ;;  %v5880_v7 = vld [vmem:[%s6379_s23 + $0x58] sm:$0xff]  ;;  %v5885_v24 = vld [vmem:[%s6379_s23 + $0x50] sm:$0xff]  ;;  %v5896_v18 = vld [vmem:[%s6379_s23 + $0x48] sm:$0xff] }
 0x62a   :  { %v2480_v19 = vpack.c.bf16 %v2465_v56, %v2464_v54  ;;  %v2481_v63 = vpack.c.bf16 %v2467_v55, %v2466_v8  ;;  %v2455_v1 = vadd.f32 %v2441_v12, %v2406_v48  ;;  %v2456_v50 = vadd.f32 %v2445_v16, %v2407_v33  ;;  %v4368_v12 = vld [vmem:[%s6335_s17 + $0x8] sm:$0xff]   ;;  %4009 = vmatprep.subr.mxu1 %v6347_v13  ;;  %v4381_v0 = vld [vmem:[%s6367_s30 + $0x18] sm:$0xff]   ;;  %v4382_v57 = vld [vmem:[%s6367_s30 + $0x20] sm:$0xff]  }
 0x62b   :  { %v2482_v58 = vpack.c.bf16 %v2469_v2, %v2468_v45  ;;  %v2457_v38 = vadd.f32 %v2445_v16, %v2408_v6  ;;  %v2470_v10 = vmax.f32 %v2454_v9, 0.0  ;;  %v2409_v37 = vmul.f32 %v2396_v22, %v5688_v34  ;;  %4010 = vmatpush3.msra.mxu1 %v5858_v23  ;;  %v5907_v42 = vld [vmem:[%s6379_s23 + $0x40] sm:$0xff]  ;;  %v5921_v54 = vld [vmem:[%s6379_s23 + $0x30] sm:$0xff]  ;;  %v4383_v56 = vld [vmem:[%s6367_s30 + $0x28] sm:$0xff]  }
 0x62c   :  { %3989 = vmatprep.mubr.msk.bf16.mxu0 %vm297_vm1, %v2480_v19  ;;  %v2471_v53 = vmax.f32 %v2455_v1, 0.0  ;;  %v2472_v49 = vmax.f32 %v2456_v50, 0.0  ;;  %v2410_v43 = vmul.f32 %v2396_v22, %v5699_v46  ;;  %v2411_v62 = vmul.f32 %v2396_v22, %v5717_v35  ;;  %4011 = vmatprep.subr.mxu1 %v6347_v13  ;;  %v5932_v8 = vld [vmem:[%s6379_s23 + $0x28] sm:$0xff]  ;;  %v4384_v55 = vld [vmem:[%s6367_s30 + $0x30] sm:$0xff]   ;;  %v5943_v45 = vld [vmem:[%s6379_s23 + $0x20] sm:$0xff] }
 0x62d   :  { %3990 = vmatmul.mubr.msk.bf16.vlgmr.msra.gmra.mxu0 %vm297_vm1, %v2481_v63  ;;  %v2473_v61 = vmax.f32 %v2457_v38, 0.0  ;;  %v2412_v41 = vmul.f32 %v2396_v22, %v5738_v36  ;;  %v2458_v30 = vadd.f32 %v2445_v16, %v2409_v37  ;;  %v2413_v46 = vmul.f32 %v2396_v22, %v5727_v20  ;;  %v4366_v20 = vld [vmem:[%s6335_s17 + $0x18] sm:$0xff]   ;;  %4012 = vmatpush3.msra.mxu1 %v5863_v28  ;;  %v5957_v48 = vld [vmem:[%s6379_s23 + $0x10] sm:$0xff]  ;;  %v5968_v33 = vld [vmem:[%s6379_s23 + $0x8] sm:$0xff] }
 0x62e   :  { %3993 = vmatprep.mubr.msk.bf16.mxu0 %vm297_vm1, %v2482_v58  ;;  %v2483_v60 = vpack.c.bf16 %v2471_v53, %v2470_v10  ;;  %v2459_v21 = vadd.f32 %v2445_v16, %v2410_v43  ;;  %v2460_v5 = vadd.f32 %v2445_v16, %v2411_v62  ;;  %v2414_v35 = vmul.f32 %v2396_v22, %v5735_v32  ;;  %v4367_v32 = vld [vmem:[%s6335_s17 + $0x10] sm:$0xff]   ;;  %v4379_v22 = vld [vmem:[%s6367_s30 + $0x8] sm:$0xff]   ;;  %v5950_v2 = vld [vmem:[%s6379_s23 + $0x18] sm:$0xff] }
 0x62f   :  { %v2484_v51 = vpack.c.bf16 %v2473_v61, %v2472_v49  ;;  %v2461_v11 = vadd.f32 %v2445_v16, %v2412_v41  ;;  %v2474_v44 = vmax.f32 %v2458_v30, 0.0  ;;  %v2462_v36 = vadd.f32 %v2445_v16, %v2413_v46  ;;  %4051 = vmatprep.subr.bf16.mxu0 %v4366_v20  ;;  %4013 = vmatprep.subr.mxu1 %v6347_v13  ;;  %v4385_v19 = vld [vmem:[%s6367_s30 + $0x38] sm:$0xff]   ;;  %v5975_v6 = vld [vmem:[%s6379_s23] sm:$0xff] }
 0x630   :  { %v2475_v47 = vmax.f32 %v2459_v21, 0.0  ;;  %v2476_v26 = vmax.f32 %v2460_v5, 0.0  ;;  %v2463_v39 = vadd.f32 %v2445_v16, %v2414_v35  ;;  %4052 = vmatpush3.bf16.msra.mxu0 %v4366_v20  ;;  %4014 = vmatpush3.msra.mxu1 %v5880_v7  ;;  %v5914_v16 = vld [vmem:[%s6379_s23 + $0x38] sm:$0xff]  ;;  %v5984_v1 = vld [vmem:[%s6332_s14] ss:$0 sm:$0xff] }
 0x631   :  { %v2477_v34 = vmax.f32 %v2461_v11, 0.0  ;;  %v2478_v31 = vmax.f32 %v2462_v36, 0.0  ;;  %4053 = vmatprep.subr.bf16.mxu0 %v4367_v32  ;;  %4015 = vmatprep.subr.mxu1 %v6347_v13 }
 0x632   :  { %v2485_v52 = vpack.c.bf16 %v2475_v47, %v2474_v44  ;;  %v2479_v15 = vmax.f32 %v2463_v39, 0.0  ;;  %4016 = vmatpush3.msra.mxu1 %v5885_v24 }
 0x633   :  { %v2486_v3 = vpack.c.bf16 %v2477_v34, %v2476_v26  ;;  %4017 = vmatprep.subr.mxu1 %v6347_v13 }
 0x634   :  { %v2487_v59 = vpack.c.bf16 %v2479_v15, %v2478_v31  ;;  %4054 = vmatpush3.bf16.msra.mxu0 %v4367_v32  ;;  %4018 = vmatpush3.msra.mxu1 %v5896_v18 }
 0x635   :  { %3994 = vmatmul.mubr.msk.bf16.gmra.mxu0 %vm297_vm1, %v2483_v60  ;;  %4055 = vmatprep.subr.bf16.mxu0 %v4368_v12 }
 0x636   :  { %3997 = vmatprep.mubr.msk.bf16.mxu0 %vm297_vm1, %v2484_v51  ;;  %4019 = vmatprep.subr.mxu1 %v6347_v13 }
 0x637   :  { %4020 = vmatpush3.msra.mxu1 %v5907_v42 }
 0x638   :  { %4056 = vmatpush3.bf16.msra.mxu0 %v4368_v12  ;;  %4021 = vmatprep.subr.mxu1 %v6347_v13 }
 0x639   :  { %4057 = vmatprep.subr.bf16.mxu0 %v4369_v27  ;;  %4022 = vmatpush3.msra.mxu1 %v5914_v16 }
 0x63a   :  { %4023 = vmatprep.subr.mxu1 %v6347_v13 }
 0x63b   :  { %4024 = vmatpush3.msra.mxu1 %v5921_v54 }
 0x63c   :  { %4058 = vmatpush3.bf16.msra.mxu0 %v4369_v27  ;;  %4025 = vmatprep.subr.mxu1 %v6347_v13 }
 0x63d   :  { %3998 = vmatmul.mubr.msk.bf16.gmra.mxu0 %vm297_vm1, %v2485_v52  ;;  %4026 = vmatpush3.msra.mxu1 %v5932_v8 }
 0x63e   :  { %4001 = vmatprep.mubr.msk.bf16.mxu0 %vm297_vm1, %v2486_v3  ;;  %4027 = vmatprep.subr.mxu1 %v6347_v13 }
 0x63f   :  { %4028 = vmatpush3.msra.mxu1 %v5943_v45 }
 0x640   :  { %4029 = vmatprep.subr.mxu1 %v6347_v13 }
 0x641   :  { %4030 = vmatpush3.msra.mxu1 %v5950_v2 }
 0x642   :  { %4031 = vmatprep.subr.mxu1 %v6347_v13 }
 0x643   :  { %4032 = vmatpush3.msra.mxu1 %v5957_v48 }
 0x644   :  { %4033 = vmatprep.subr.mxu1 %v6347_v13 }
 0x645   :  { %4002 = vmatmul.mubr.msk.bf16.gmra.mxu0 %vm297_vm1, %v2487_v59  ;;  %4034 = vmatpush3.msra.mxu1 %v5968_v33 }
 0x646   :  { %4059 = vmatprep.mubr.msk.bf16.mxu0 %vm165_vm0, %v4378_v17  ;;  %4035 = vmatprep.subr.mxu1 %v6347_v13 }
 0x647   :  { %4036 = vmatpush3.msra.mxu1 %v5975_v6 }
 0x648   :  { %4040 = vmatprep.subr.mxu1 %v6347_v13 }
 0x64d   :  { %4060 = vmatmul.mubr.msk.bf16.vlgmr.msra.gmra.mxu0 %vm165_vm0, %v4379_v22 }
 0x64e   :  { %4063 = vmatprep.mubr.msk.bf16.mxu0 %vm165_vm0, %v4380_v25 }
 0x655   :  { %4064 = vmatmul.mubr.msk.bf16.gmra.mxu0 %vm165_vm0, %v4381_v0 }
 0x656   :  { %4067 = vmatprep.mubr.msk.bf16.mxu0 %vm165_vm0, %v4382_v57 }
 0x65d   :  { %4068 = vmatmul.mubr.msk.bf16.gmra.mxu0 %vm165_vm0, %v4383_v56 }
 0x65e   :  { %4071 = vmatprep.mubr.msk.bf16.mxu0 %vm165_vm0, %v4384_v55 }
 0x665   :  { %4072 = vmatmul.mubr.msk.bf16.gmra.mxu0 %vm165_vm0, %v4385_v19 }
 0x6ed   :  { %v3991_v63 = vpop.f32.mrf.mxu0 }
 0x6ee   :  { %v5990_v10 = vadd.f32 %v3991_v63, %v5984_v1 }
 0x6ef   :  { %v2569_v9 = vpop.f32.mrf.mxu0 }
 0x6f0   :  { %v5987_v50 = vadd.f32 %v5984_v1, %v2569_v9  ;;  %v2682_v60 = vmul.f32 %v5990_v10, %v5990_v10 }
 0x6f1   :  { %v3992_v58 = vpop.f32.mrf.mxu0 }
 0x6f2   :  { %v2680_v61 = vmul.f32 %v5987_v50, %v5987_v50  ;;  %v5998_v37 = vadd.f32 %v3992_v58, %v5984_v1 }
 0x6f3   :  { %v2572_v38 = vpop.f32.mrf.mxu0 }
 0x6f4   :  { %v5993_v53 = vadd.f32 %v5984_v1, %v2572_v38  ;;  %v2683_v11 = vmul.f32 %v5998_v37, %v5998_v37 }
 0x6f5   :  { %v3995_v49 = vpop.f32.mrf.mxu0 }
 0x6f6   :  { %v2654_v43 = vadd.f32 %v5993_v53, %v5987_v50  ;;  %v2681_v62 = vmul.f32 %v5993_v53, %v5993_v53  ;;  %v6020_v36 = vadd.f32 %v3995_v49, %v5984_v1 }
 0x6f7   :  { %v2585_v41 = vpop.f32.mrf.mxu0 }
 0x6f8   :  { %v2655_v30 = vadd.f32 %v2654_v43, %v5990_v10  ;;  %v2696_v21 = vadd.f32 %v2681_v62, %v2680_v61  ;;  %v6008_v51 = vadd.f32 %v5984_v1, %v2585_v41  ;;  %v2686_v20 = vmul.f32 %v6020_v36, %v6020_v36 }
 0x6f9   :  { %v3996_v5 = vpop.f32.mrf.mxu0 }
 0x6fa   :  { %v2697_v44 = vadd.f32 %v2696_v21, %v2682_v60  ;;  %v2656_v47 = vadd.f32 %v2655_v30, %v5998_v37  ;;  %v2684_v46 = vmul.f32 %v6008_v51, %v6008_v51  ;;  %v6028_v32 = vadd.f32 %v3996_v5, %v5984_v1 }
 0x6fb   :  { %v2588_v26 = vpop.f32.mrf.mxu0 }
 0x6fc   :  { %v2657_v34 = vadd.f32 %v2656_v47, %v6008_v51  ;;  %v2698_v35 = vadd.f32 %v2697_v44, %v2683_v11  ;;  %v6017_v52 = vadd.f32 %v5984_v1, %v2588_v26  ;;  %v2687_v55 = vmul.f32 %v6028_v32, %v6028_v32 }
 0x6fd   :  { %v3999_v39 = vpop.f32.mrf.mxu0 }
 0x6fe   :  { %v2699_v3 = vadd.f32 %v2698_v35, %v2684_v46  ;;  %v2685_v31 = vmul.f32 %v6017_v52, %v6017_v52  ;;  %v2658_v15 = vadd.f32 %v2657_v34, %v6017_v52  ;;  %v6035_v57 = vadd.f32 %v3999_v39, %v5984_v1 }
 0x6ff   :  { %v2601_v59 = vpop.f32.mrf.mxu0 }
 0x700   :  { %v2700_v17 = vadd.f32 %v2699_v3, %v2685_v31  ;;  %v6031_v27 = vadd.f32 %v5984_v1, %v2601_v59  ;;  %v2659_v22 = vadd.f32 %v2658_v15, %v6020_v36  ;;  %6381 = vst [vmem:[#allocation7_spill] sm:$0xff] %v6035_v57  ;;  %v2690_v62 = vmul.f32 %v6035_v57, %v6035_v57 }
 0x701   :  { %v4000_v12 = vpop.f32.mrf.mxu0 }
 0x702   :  { %6380 = vst [vmem:[#allocation6_spill] sm:$0xff] %v6031_v27  ;;  %v2701_v25 = vadd.f32 %v2700_v17, %v2686_v20  ;;  %v2688_v63 = vmul.f32 %v6031_v27, %v6031_v27  ;;  %v6045_v9 = vadd.f32 %v4000_v12, %v5984_v1  ;;  %v2660_v49 = vadd.f32 %v2659_v22, %v6028_v32 }
 0x703   :  { %v2604_v0 = vpop.f32.mrf.mxu0 }
 0x704   :  { %v6038_v56 = vadd.f32 %v5984_v1, %v2604_v0  ;;  %6383 = vst [vmem:[#allocation9_spill] sm:$0xff] %v6045_v9  ;;  %v2702_v61 = vadd.f32 %v2701_v25, %v2687_v55  ;;  %v2691_v5 = vmul.f32 %v6045_v9, %v6045_v9  ;;  %v2661_v47 = vrot.slane %v2660_v49, 4 }
 0x705   :  { %v4003_v19 = vpop.f32.mrf.mxu0 }
 0x706   :  { %6382 = vst [vmem:[#allocation8_spill] sm:$0xff] %v6038_v56  ;;  %v2667_v58 = vadd.f32 %v6038_v56, %v6031_v27  ;;  %v2689_v38 = vmul.f32 %v6038_v56, %v6038_v56  ;;  %v2703_v26 = vrot.slane %v2702_v61, 4  ;;  %v6062_v34 = vadd.f32 %v4003_v19, %v5984_v1 }
 0x707   :  { %v2617_v43 = vpop.f32.mrf.mxu0  ;;  %v2662_v12 = vadd.f32 %v2661_v47, %v2660_v49 }
 0x708   :  { %v2668_v41 = vadd.f32 %v2667_v58, %v6035_v57  ;;  %v2709_v60 = vadd.f32 %v2689_v38, %v2688_v63  ;;  %v6056_v30 = vadd.f32 %v5984_v1, %v2617_v43  ;;  %6385 = vst [vmem:[#allocation11_spill] sm:$0xff] %v6062_v34  ;;  %v2704_v22 = vadd.f32 %v2703_v26, %v2702_v61 }
 0x709   :  { %v4004_v21 = vpop.f32.mrf.mxu0  ;;  %v2694_v25 = vmul.f32 %v6062_v34, %v6062_v34  ;;  %v2663_v58 = vrot.slane %v2662_v12, 2 }
 0x70a   :  { %6384 = vst [vmem:[#allocation10_spill] sm:$0xff] %v6056_v30  ;;  %v2710_v11 = vadd.f32 %v2709_v60, %v2690_v62  ;;  %v2669_v44 = vadd.f32 %v2668_v41, %v6045_v9  ;;  %v2692_v39 = vmul.f32 %v6056_v30, %v6056_v30  ;;  %v6071_v59 = vadd.f32 %v4004_v21, %v5984_v1 }
 0x70b   :  { %v2620_v46 = vpop.f32.mrf.mxu0  ;;  %v2705_v38 = vrot.slane %v2704_v22, 2  ;;  %v2664_v49 = vadd.f32 %v2663_v58, %v2662_v12 }
 0x70c   :  { %v2670_v35 = vadd.f32 %v2669_v44, %v6056_v30  ;;  %v2711_v3 = vadd.f32 %v2710_v11, %v2691_v5  ;;  %v6068_v31 = vadd.f32 %v5984_v1, %v2620_v46  ;;  %6387 = vst [vmem:[#allocation13_spill] sm:$0xff] %v6071_v59  ;;  %v2695_v19 = vmul.f32 %v6071_v59, %v6071_v59 }
 0x70d   :  { %v2706_v5 = vadd.f32 %v2705_v38, %v2704_v22  ;;  %v2665_v47 = vrot.slane %v2664_v49, 1  ;;  %v6090_v22 = vld [vmem:[%s6388_s9 + $0x18] sm:$0xff] }
 0x70e   :  { %6386 = vst [vmem:[#allocation12_spill] sm:$0xff] %v6068_v31  ;;  %v2712_v15 = vadd.f32 %v2711_v3, %v2692_v39  ;;  %v2671_v17 = vadd.f32 %v2670_v35, %v6068_v31  ;;  %v2693_v20 = vmul.f32 %v6068_v31, %v6068_v31 }
 0x70f   :  { %v2707_v46 = vrot.slane %v2706_v5, 1 }
 0x710   :  { %v2672_v0 = vadd.f32 %v2671_v17, %v6062_v34  ;;  %v2713_v55 = vadd.f32 %v2712_v15, %v2693_v20  ;;  %v2666_v15 = vadd.f32 %v2665_v47, %v2664_v49 }
 0x711   :  { %v2708_v17 = vadd.f32 %v2707_v46, %v2706_v5 }
 0x712   :  { %v2673_v63 = vadd.f32 %v2672_v0, %v6071_v59  ;;  %v2714_v1 = vadd.f32 %v2713_v55, %v2694_v25  ;;  %v6095_v55 = vld [vmem:[%s6388_s9 + $0x10] sm:$0xff] }
 0x714   :  { %v2674_v43 = vrot.slane %v2673_v63, 4  ;;  %v2715_v62 = vadd.f32 %v2714_v1, %v2695_v19  ;;  %v6102_v19 = vld [vmem:[%s6388_s9 + $0x8] sm:$0xff]  ;;  %v4061_v1 = vpop.f32.mrf.mxu0 }
 0x716   :  { %v2675_v41 = vadd.f32 %v2674_v43, %v2673_v63  ;;  %v2716_v60 = vrot.slane %v2715_v62, 4  ;;  %v6109_v63 = vld [vmem:[%s6388_s9] sm:$0xff]  ;;  %v3075_v58 = vpop.f32.mrf.mxu0 }
 0x718   :  { %v2676_v61 = vrot.slane %v2675_v41, 2  ;;  %v2717_v21 = vadd.f32 %v2716_v60, %v2715_v62  ;;  %v4062_v38 = vpop.f32.mrf.mxu0 }
 0x71a   :  { %v2677_v11 = vadd.f32 %v2676_v61, %v2675_v41  ;;  %v2718_v44 = vrot.slane %v2717_v21, 2  ;;  %v3078_v43 = vpop.f32.mrf.mxu0 }
 0x71c   :  { %v2678_v26 = vrot.slane %v2677_v11, 1  ;;  %v2719_v35 = vadd.f32 %v2718_v44, %v2717_v21  ;;  %v4065_v62 = vpop.f32.mrf.mxu0 }
 0x71e   :  { %v2679_v39 = vadd.f32 %v2678_v26, %v2677_v11  ;;  %v2720_v3 = vrot.slane %v2719_v35, 1  ;;  %v3091_v41 = vpop.f32.mrf.mxu0  ;;  %v3677_v11 = vld [vmem:[%s6336_s18] ss:$0 sm:$0xff] }
 0x71f   :  { %v6120_v47 = vadd.f32 %v3677_v11, %v3075_v58  ;;  %v6122_v26 = vadd.f32 %v3677_v11, %v3078_v43 }
 0x720   :  { %v2721_v20 = vadd.f32 %v2720_v3, %v2719_v35  ;;  %v2724_v25 = vsel %vm400_vm3, %v2679_v39, %v2666_v15  ;;  %v6115_v60 = vpop.f32.mrf.mxu0  ;;  %v6128_v3 = vadd.f32 %v4061_v1, %v3677_v11 }
 0x721   :  { %6389 = vst [vmem:[#allocation14_spill] sm:$0xff] %v6120_v47  ;;  %6390 = vst [vmem:[#allocation15_spill] sm:$0xff] %v6122_v26  ;;  %v3166_v15 = vmul.f32 %v6120_v47, %v6120_v47  ;;  %v3140_v1 = vadd.f32 %v6122_v26, %v6120_v47  ;;  %v6155_v47 = vadd.f32 %v3677_v11, %v3091_v41 }
 0x722   :  { %v2728_v0 = vsel %vm405_vm4, %v2721_v20, %v2708_v17  ;;  %v3094_v49 = vpop.f32.mrf.mxu0  ;;  %v3167_v17 = vmul.f32 %v6122_v26, %v6122_v26 }
 0x723   :  { %v2730_v12 = vsel %vm408_vm5, %v2724_v25, %v2728_v0 }
 0x724   :  { %4038 = vmatmul.mubr.f32.vlgmr.msra.gmra.mxu1 %v2730_v12  ;;  %v4069_v61 = vpop.f32.mrf.mxu0 }
 0x725   :  { %4048 = vmatprep.mubr.msk.f32.mxu1 %vm4409_vm2, %v6347_v13  ;;  %4041 = vmatpush3.msra.mxu1 %v6090_v22  ;;  %v6134_v20 = vadd.f32 %v4069_v61, %v3677_v11  ;;  %v3182_v61 = vadd.f32 %v3167_v17, %v3166_v15 }
 0x726   :  { %4042 = vmatprep.subr.mxu1 %v6347_v13  ;;  %v3107_v21 = vpop.f32.mrf.mxu0 }
 0x727   :  { %4043 = vmatpush3.msra.mxu1 %v6095_v55  ;;  %v6124_v46 = vadd.f32 %v3677_v11, %v3107_v21  ;;  %v3176_v34 = vmul.f32 %v6134_v20, %v6134_v20 }
 0x728   :  { %4044 = vmatprep.subr.mxu1 %v6347_v13  ;;  %v4070_v5 = vpop.f32.mrf.mxu0 }
 0x729   :  { %4045 = vmatpush3.msra.mxu1 %v6102_v19  ;;  %v3174_v25 = vmul.f32 %v6124_v46, %v6124_v46  ;;  %v6148_v31 = vadd.f32 %v4070_v5, %v3677_v11 }
 0x72a   :  { %4046 = vmatprep.subr.mxu1 %v6347_v13  ;;  %v3110_v44 = vpop.f32.mrf.mxu0 }
 0x72b   :  { %4047 = vmatpush3.msra.mxu1 %v6109_v63  ;;  %v6126_v35 = vadd.f32 %v3677_v11, %v3110_v44  ;;  %v3168_v44 = vmul.f32 %v6128_v3, %v6128_v3  ;;  %v3177_v17 = vmul.f32 %v6148_v31, %v6148_v31 }
 0x72c   :  { %4075 = vmatprep.subr.mxu1 %v6347_v13  ;;  %v4073_v39 = vpop.f32.mrf.mxu0  ;;  %v6144_v13 = vadd.f32 %v4062_v38, %v3677_v11 }
 0x72d   :  { %6391 = vst [vmem:[#allocation16_spill] sm:$0xff] %v6126_v35  ;;  %v3175_v0 = vmul.f32 %v6126_v35, %v6126_v35  ;;  %v3153_v30 = vadd.f32 %v6126_v35, %v6124_v46  ;;  %v3183_v38 = vadd.f32 %v3182_v61, %v3168_v44  ;;  %v6165_v44 = vadd.f32 %v3677_v11, %v3094_v49 }
 0x72e   :  { %v3123_v58 = vpop.f32.mrf.mxu0  ;;  %v3169_v26 = vmul.f32 %v6144_v13, %v6144_v13  ;;  %v6177_v49 = vadd.f32 %v4073_v39, %v3677_v11 }
 0x72f   :  { %v3154_v5 = vadd.f32 %v3153_v30, %v6134_v20  ;;  %v6160_v27 = vadd.f32 %v3677_v11, %v3123_v58  ;;  %v6172_v58 = vadd.f32 %v4065_v62, %v3677_v11  ;;  %v6185_v62 = vadd.f32 %v6115_v60, %v3677_v11 }
 0x730   :  { %v4074_v9 = vpop.f32.mrf.mxu0  ;;  %v3184_v35 = vadd.f32 %v3183_v38, %v3169_v26  ;;  %v3171_v26 = vmul.f32 %v6165_v44, %v6165_v44 }
 0x731   :  { %v3178_v61 = vmul.f32 %v6160_v27, %v6160_v27  ;;  %v6190_v39 = vadd.f32 %v4074_v9, %v3677_v11 }
 0x733   :  { %v3181_v60 = vmul.f32 %v6190_v39, %v6190_v39 }
 0x7e4   :  { %v2797_v12 = vpop.f32.mrf.mxu1 }
 0x7e5   :  { %v2802_v43 = vmul.f32 0.00390625, %v2797_v12  ;;  %v3195_v12 = vadd.f32 %v3175_v0, %v3174_v25  ;;  %v3126_v0 = vpop.f32.mrf.mxu0 }
 0x7e6   :  { %v4039_v21 = vpop.f32.mrf.mxu1 }
 0x7e7   :  { %v2803_v59 = vmul.f32 %v2802_v43, %v2802_v43  ;;  %v3141_v21 = vadd.f32 %v3140_v1, %v6128_v3  ;;  %v3196_v56 = vadd.f32 %v3195_v12, %v3176_v34  ;;  %v3170_v1 = vmul.f32 %v6155_v47, %v6155_v47 }
 0x7e8   :  { %v6170_v34 = vadd.f32 %v3677_v11, %v3126_v0 }
 0x7e9   :  { %v2805_v57 = vrot.slane %v2803_v59, 6  ;;  %v3142_v59 = vadd.f32 %v3141_v21, %v6144_v13  ;;  %v3197_v30 = vadd.f32 %v3196_v56, %v3177_v17  ;;  %v3185_v21 = vadd.f32 %v3184_v35, %v3170_v1 }
 0x7ea   :  { %v3172_v56 = vmul.f32 %v6172_v58, %v6172_v58  ;;  %v3173_v1 = vmul.f32 %v6185_v62, %v6185_v62 }
 0x7eb   :  { %v2807_v15 = vsub.f32 %v2802_v43, %v2805_v57  ;;  %v3155_v57 = vadd.f32 %v3154_v5, %v6148_v31  ;;  %v3143_v12 = vadd.f32 %v3142_v59, %v6155_v47  ;;  %v3179_v5 = vmul.f32 %v6170_v34, %v6170_v34 }
 0x7ec   :  { %v3186_v35 = vadd.f32 %v3185_v21, %v3171_v26 }
 0x7ed   :  { %v2808_v25 = vmax.f32 %v2807_v15, 0.0  ;;  %v3156_v38 = vadd.f32 %v3155_v57, %v6160_v27  ;;  %v3198_v15 = vadd.f32 %v3197_v30, %v3178_v61  ;;  %v3144_v17 = vadd.f32 %v3143_v12, %v6165_v44 }
 0x7ee   :  { %v3187_v57 = vadd.f32 %v3186_v35, %v3172_v56 }
 0x7ef   :  { %v2809_v41 = vadd.f32 1e-05, %v2808_v25  ;;  %v3180_v25 = vmul.f32 %v6177_v49, %v6177_v49  ;;  %v3157_v0 = vadd.f32 %v3156_v38, %v6170_v34  ;;  %v3199_v59 = vadd.f32 %v3198_v15, %v3179_v5 }
 0x7f0   :  { %v3188_v11 = vadd.f32 %v3187_v57, %v3173_v1  ;;  %v6392_v15 = vmov 0.0  }
 0x7f1   :  { %4374 = vrsqrt.f32 %v2809_v41  ;;  %v3145_v41 = vadd.f32 %v3144_v17, %v6172_v58  ;;  %v3158_v61 = vadd.f32 %v3157_v0, %v6177_v49  ;;  %v3200_v30 = vadd.f32 %v3199_v59, %v3180_v25 }
 0x7f2   :  { %v3189_v56 = vrot.slane %v3188_v11, 4 }
 0x7f3   :  { %v3146_v9 = vadd.f32 %v3145_v41, %v6185_v62  ;;  %v3159_v26 = vadd.f32 %v3158_v61, %v6190_v39  ;;  %v3201_v38 = vadd.f32 %v3200_v30, %v3181_v60 }
 0x7f4   :  { %v3190_v35 = vadd.f32 %v3189_v56, %v3188_v11 }
 0x7f5   :  { %v3147_v5 = vrot.slane %v3146_v9, 4  ;;  %v3202_v17 = vrot.slane %v3201_v38, 4 }
 0x7f7   :  { %v3203_v0 = vadd.f32 %v3202_v17, %v3201_v38  ;;  %v3676_v17 = vld [vmem:[%s6334_s16] ss:$0 sm:$0xff] }
 0x7f9   :  { %v3204_v1 = vrot.slane %v3203_v0, 2 }
 0x7fb   :  { %v3205_v57 = vadd.f32 %v3204_v1, %v3203_v0 }
 0x7fd   :  { %v3206_v61 = vrot.slane %v3205_v57, 1 }
 0x7fe   :  { %v4375_v12 = vpop.eup %4374 }
 0x7ff   :  { %v2811_v21 = vsel %vm408_vm5, %v2802_v43, %v4375_v12  ;;  %v3160_v43 = vrot.slane %v3159_v26, 4  ;;  %v3207_v12 = vadd.f32 %v3206_v61, %v3205_v57 }
 0x800   :  { %4049 = vmatmul.mubr.msk.f32.vlgmr.msra.gmra.mxu1 %vm297_vm1, %v2811_v21 }
 0x801   :  { %4076 = vmatpush3.msra.mxu1 %v5844_v4  ;;  %4107 = vmatprep.mubr.msk.f32.mxu1 %vm4409_vm2, %v6392_v15  ;;  %v3148_v4 = vadd.f32 %v3147_v5, %v3146_v9  ;;  %v3161_v25 = vadd.f32 %v3160_v43, %v3159_v26 }
 0x802   :  { %4077 = vmatprep.subr.mxu1 %v6392_v15 }
 0x803   :  { %4078 = vmatpush3.msra.mxu1 %v5850_v40  ;;  %v3149_v40 = vrot.slane %v3148_v4, 2  ;;  %v3162_v59 = vrot.slane %v3161_v25, 2 }
 0x804   :  { %4079 = vmatprep.subr.mxu1 %v6392_v15 }
 0x805   :  { %4080 = vmatpush3.msra.mxu1 %v5858_v23  ;;  %v3191_v23 = vrot.slane %v3190_v35, 2 }
 0x806   :  { %4081 = vmatprep.subr.mxu1 %v6392_v15 }
 0x807   :  { %4082 = vmatpush3.msra.mxu1 %v5863_v28  ;;  %v3150_v28 = vadd.f32 %v3149_v40, %v3148_v4  ;;  %v3192_v41 = vadd.f32 %v3191_v23, %v3190_v35 }
 0x808   :  { %4083 = vmatprep.subr.mxu1 %v6392_v15 }
 0x809   :  { %4084 = vmatpush3.msra.mxu1 %v5880_v7  ;;  %v3163_v7 = vadd.f32 %v3162_v59, %v3161_v25  ;;  %v3193_v60 = vrot.slane %v3192_v41, 1 }
 0x80a   :  { %4085 = vmatprep.subr.mxu1 %v6392_v15 }
 0x80b   :  { %4086 = vmatpush3.msra.mxu1 %v5885_v24  ;;  %v3151_v24 = vrot.slane %v3150_v28, 1  ;;  %v3194_v30 = vadd.f32 %v3193_v60, %v3192_v41 }
 0x80c   :  { %4087 = vmatprep.subr.mxu1 %v6392_v15 }
 0x80d   :  { %4088 = vmatpush3.msra.mxu1 %v5896_v18  ;;  %v3164_v18 = vrot.slane %v3163_v7, 1 }
 0x80e   :  { %4089 = vmatprep.subr.mxu1 %v6392_v15 }
 0x80f   :  { %4090 = vmatpush3.msra.mxu1 %v5907_v42  ;;  %v3152_v42 = vadd.f32 %v3151_v24, %v3150_v28  ;;  %v3691_v28 = vld [vmem:[%s6337_s19] ss:$0 sm:$0xff] }
 0x810   :  { %4091 = vmatprep.subr.mxu1 %v6392_v15 }
 0x811   :  { %4092 = vmatpush3.msra.mxu1 %v5914_v16  ;;  %v3165_v16 = vadd.f32 %v3164_v18, %v3163_v7 }
 0x812   :  { %4093 = vmatprep.subr.mxu1 %v6392_v15 }
 0x813   :  { %4094 = vmatpush3.msra.mxu1 %v5921_v54  ;;  %v3210_v54 = vsel %vm400_vm3, %v3165_v16, %v3152_v42 }
 0x814   :  { %4095 = vmatprep.subr.mxu1 %v6392_v15 }
 0x815   :  { %4096 = vmatpush3.msra.mxu1 %v5932_v8  ;;  %v3214_v8 = vsel %vm405_vm4, %v3207_v12, %v3194_v30 }
 0x816   :  { %4097 = vmatprep.subr.mxu1 %v6392_v15 }
 0x817   :  { %4098 = vmatpush3.msra.mxu1 %v5943_v45  ;;  %v3216_v45 = vsel %vm408_vm5, %v3210_v54, %v3214_v8 }
 0x818   :  { %4099 = vmatprep.subr.mxu1 %v6392_v15 }
 0x819   :  { %4100 = vmatpush3.msra.mxu1 %v5950_v2 }
 0x81a   :  { %4101 = vmatprep.subr.mxu1 %v6392_v15 }
 0x81b   :  { %4102 = vmatpush3.msra.mxu1 %v5957_v48 }
 0x81c   :  { %4103 = vmatprep.subr.mxu1 %v6392_v15 }
 0x81d   :  { %4104 = vmatpush3.msra.mxu1 %v5968_v33 }
 0x81e   :  { %4105 = vmatprep.subr.mxu1 %v6392_v15 }
 0x81f   :  { %4106 = vmatpush3.msra.mxu1 %v5975_v6 }
 0x820   :  { %4108 = vmatmul.mubr.f32.vlgmr.msra.gmra.mxu1 %v3216_v45  ;;  %4110 = vmatprep.subr.mxu1 %v6392_v15 }
 0x821   :  { %4111 = vmatpush3.msra.mxu1 %v6090_v22  ;;  %4118 = vmatprep.mubr.msk.f32.mxu1 %vm4409_vm2, %v6392_v15 }
 0x822   :  { %4112 = vmatprep.subr.mxu1 %v6392_v15 }
 0x823   :  { %4113 = vmatpush3.msra.mxu1 %v6095_v55 }
 0x824   :  { %4114 = vmatprep.subr.mxu1 %v6392_v15 }
 0x825   :  { %4115 = vmatpush3.msra.mxu1 %v6102_v19  ;;  %v3675_v19 = vld [vmem:[%s6333_s15] ss:$0 sm:$0xff] }
 0x826   :  { %4116 = vmatprep.subr.mxu1 %v6392_v15 }
 0x827   :  { %4117 = vmatpush3.msra.mxu1 %v6109_v63 }
 0x8c0   :  { %v2881_v2 = vpop.f32.mrf.mxu1 }
 0x8c1   :  { %v2891_v63 = vmul.f32 %v3675_v19, %v2881_v2  ;;  %v6397_v19 = vld [vmem:[#allocation10_spill] sm:$0xff] }
 0x8c2   :  { %v4050_v48 = vpop.f32.mrf.mxu1 }
 0x8c3   :  { %v2893_v15 = vrot.slane %v2891_v63, 2  ;;  %v2909_v56 = vrot.slane %v2891_v63, %v4773_v14 }
 0x8c5   :  { %v2895_v43 = vmul.f32 %v2893_v15, %v2881_v2  ;;  %v2910_v4 = vcombine.high %v2909_v56, %v2909_v56  ;;  %v2917_v35 = vrot.slane %v2909_v56, %v4773_v14  ;;  %v6398_v15 = vld [vmem:[#allocation12_spill] sm:$0xff] }
 0x8c7   :  { %v2902_v25 = vsub.f32 %v3676_v17, %v2895_v43  ;;  %v2924_v0 = vrot.slane %v2910_v4, %v4773_v14  ;;  %v2925_v40 = vcombine.high %v2917_v35, %v2917_v35  ;;  %v6399_v43 = vld [vmem:[#allocation11_spill] sm:$0xff]  ;;  %v6400_v4 = vld [vmem:[#allocation13_spill] sm:$0xff] }
 0x8c9   :  { %v2960_v59 = vrot.slane %v2902_v25, %v4773_v14  ;;  %v2926_v23 = vcombine.high %v2924_v0, %v2924_v0  ;;  %v2930_v1 = vrot.slane %v2925_v40, %v4781_v29 }
 0x8cb   :  { %v2961_v7 = vcombine.high %v2960_v59, %v2960_v59  ;;  %v2968_v57 = vrot.slane %v2960_v59, %v4773_v14  ;;  %v2934_v18 = vrot.slane %v2926_v23, %v4781_v29  ;;  %v2937_v60 = vmul.f32 %v2930_v1, %v5987_v50 }
 0x8cc   :  { %v2938_v61 = vmul.f32 %v2930_v1, %v5993_v53  ;;  %v2939_v42 = vmul.f32 %v2930_v1, %v5990_v10  ;;  %v2940_v30 = vmul.f32 %v2930_v1, %v5998_v37  ;;  %v2941_v45 = vmul.f32 %v2930_v1, %v6008_v51  ;;  %v3692_v10 = vld [vmem:[%s6338_s20] ss:$0 sm:$0xff]  ;;  %s4413_s20 = smov [#allocation3]  }
 0x8cd   :  { %v2975_v12 = vrot.slane %v2961_v7, %v4773_v14  ;;  %v2942_v2 = vmul.f32 %v2930_v1, %v6017_v52  ;;  %v2943_v48 = vmul.f32 %v2930_v1, %v6020_v36  ;;  %v2944_v50 = vmul.f32 %v2930_v1, %v6028_v32  ;;  %s3540_s24 = sshll.u32 %s4413_s20, 4  ;;  %s3541_s24 = int_to_ptr.vmem [resolvable:$true] %s3540_s24 }
 0x8ce   :  { %v2979_v53 = vrot.slane %v2968_v57, %v4781_v29  ;;  %v2949_v63 = vmul.f32 %v2934_v18, %v6397_v19  ;;  %v2950_v56 = vmul.f32 %v2934_v18, %v6398_v15  ;;  %v2951_v17 = vmul.f32 %v2934_v18, %v6399_v43  ;;  %s4386_s0 = scalar_lea.vmem %s3541_s24, 2048  ;;  %p4391_p1 = scmp.lt.s32.totalorder %s3541_s24, %s3541_s24 }
 0x8cf   :  { %v2983_v32 = vrot.slane %v2975_v12, %v4781_v29  ;;  %v2952_v35 = vmul.f32 %v2934_v18, %v6400_v4  ;;  %p4387_p0 = scmp.ne.s32.totalorder %s3541_s24, %s4386_s0  ;;  %p4392_p2 = scmp.lt.s32.totalorder %s4386_s0, %s4386_s0 }
 0x8d0   :  { %v2986_v25 = vadd.f32 %v2979_v53, %v2937_v60  ;;  %v2987_v0 = vadd.f32 %v2979_v53, %v2938_v61  ;;  %v2988_v40 = vadd.f32 %v2979_v53, %v2939_v42  ;;  %v2989_v23 = vadd.f32 %v2979_v53, %v2940_v30 }
 0x8d1   :  { %v2990_v1 = vadd.f32 %v2979_v53, %v2941_v45  ;;  %v2993_v57 = vadd.f32 %v2979_v53, %v2944_v50  ;;  %v2999_v60 = vadd.f32 %v2983_v32, %v2950_v56  ;;  %v3000_v61 = vadd.f32 %v2983_v32, %v2951_v17  ;;  %v6402_v45 = vld [vmem:[#allocation15_spill] sm:$0xff]  ;;  %p4393_p3 = por %p4392_p2, %p4391_p1 }
 0x8d2   :  { %v3001_v42 = vadd.f32 %v2983_v32, %v2952_v35 }
 0x8d3   :  { %p4394_p4 = pnand %p4393_p3, %p4387_p0 }
 0x8e0   :  { %v3283_v33 = vpop.f32.mrf.mxu1 }
 0x8e1   :  { %v3287_v6 = vmul.f32 0.00390625, %v3283_v33 }
 0x8e2   :  { %v4109_v22 = vpop.f32.mrf.mxu1 }
 0x8e3   :  { %v3288_v21 = vmul.f32 %v3287_v6, %v3287_v6  ;;  %v6393_v22 = vld [vmem:[#allocation6_spill] sm:$0xff] }
 0x8e5   :  { %v3290_v9 = vrot.slane %v3288_v21, 6  ;;  %v2945_v21 = vmul.f32 %v2934_v18, %v6393_v22 }
 0x8e7   :  { %v3292_v11 = vsub.f32 %v3287_v6, %v3290_v9  ;;  %v6394_v9 = vld [vmem:[#allocation8_spill] sm:$0xff] }
 0x8e8   :  { %v2946_v51 = vmul.f32 %v2934_v18, %v6394_v9 }
 0x8e9   :  { %v3293_v26 = vmax.f32 %v3292_v11, 0.0  ;;  %v6395_v11 = vld [vmem:[#allocation7_spill] sm:$0xff] }
 0x8ea   :  { %v2947_v52 = vmul.f32 %v2934_v18, %v6395_v11  ;;  %v2995_v12 = vadd.f32 %v2983_v32, %v2946_v51  ;;  %v6403_v11 = vld [vmem:[#allocation16_spill] sm:$0xff] }
 0x8eb   :  { %v3294_v38 = vadd.f32 1e-05, %v3293_v26  ;;  %v6396_v26 = vld [vmem:[#allocation9_spill] sm:$0xff] }
 0x8ec   :  { %v2948_v36 = vmul.f32 %v2934_v18, %v6396_v26  ;;  %v2998_v18 = vadd.f32 %v2983_v32, %v2949_v63 }
 0x8ed   :  { %4376 = vrsqrt.f32 %v3294_v38 }
 0x8fa   :  { %v4377_v55 = vpop.eup %4376 }
 0x8fb   :  { %v3296_v5 = vsel %vm408_vm5, %v3287_v6, %v4377_v55 }
 0x8fc   :  { %4119 = vmatmul.mubr.msk.f32.vlgmr.msra.gmra.mxu1 %vm297_vm1, %v3296_v5 }
 0x9bc   :  { %v3366_v41 = vpop.f32.mrf.mxu1 }
 0x9bd   :  { %v3376_v24 = vmul.f32 %v3691_v28, %v3366_v41  ;;  %v2991_v28 = vadd.f32 %v2979_v53, %v2942_v2 }
 0x9be   :  { %v4120_v16 = vpop.f32.mrf.mxu1 }
 0x9bf   :  { %v3378_v54 = vrot.slane %v3376_v24, 2  ;;  %v3394_v8 = vrot.slane %v3376_v24, %v4773_v14  ;;  %v2994_v24 = vadd.f32 %v2983_v32, %v2945_v21 }
 0x9c1   :  { %v3380_v37 = vmul.f32 %v3378_v54, %v3366_v41  ;;  %v3395_v33 = vcombine.high %v3394_v8, %v3394_v8  ;;  %v3402_v6 = vrot.slane %v3394_v8, %v4773_v14  ;;  %v2992_v41 = vadd.f32 %v2979_v53, %v2943_v48 }
 0x9c2   :  { %v2996_v54 = vadd.f32 %v2983_v32, %v2947_v52  ;;  %v2997_v8 = vadd.f32 %v2983_v32, %v2948_v36 }
 0x9c3   :  { %v3387_v38 = vsub.f32 %v3692_v10, %v3380_v37  ;;  %v3409_v55 = vrot.slane %v3395_v33, %v4773_v14  ;;  %v3410_v5 = vcombine.high %v3402_v6, %v3402_v6  ;;  %v6401_v37 = vld [vmem:[#allocation14_spill] sm:$0xff] }
 0x9c5   :  { %v3411_v59 = vcombine.high %v3409_v55, %v3409_v55  ;;  %v3415_v7 = vrot.slane %v3410_v5, %v4781_v29  ;;  %v3445_v16 = vrot.slane %v3387_v38, %v4773_v14 }
 0x9c7   :  { %v3419_v10 = vrot.slane %v3411_v59, %v4781_v29  ;;  %v3422_v30 = vmul.f32 %v3415_v7, %v6401_v37  ;;  %v3423_v2 = vmul.f32 %v3415_v7, %v6402_v45  ;;  %v3424_v33 = vmul.f32 %v3415_v7, %v6128_v3 }
 0x9c8   :  { %v3425_v48 = vmul.f32 %v3415_v7, %v6144_v13  ;;  %v3426_v50 = vmul.f32 %v3415_v7, %v6155_v47  ;;  %v3427_v53 = vmul.f32 %v3415_v7, %v6165_v44  ;;  %v3446_v6 = vcombine.high %v3445_v16, %v3445_v16 }
 0x9c9   :  { %v3453_v22 = vrot.slane %v3445_v16, %v4773_v14  ;;  %v3428_v21 = vmul.f32 %v3415_v7, %v6172_v58  ;;  %v3429_v9 = vmul.f32 %v3415_v7, %v6185_v62  ;;  %v3430_v51 = vmul.f32 %v3419_v10, %v6124_v46 }
 0x9ca   :  { %v3431_v52 = vmul.f32 %v3419_v10, %v6403_v11  ;;  %v3432_v26 = vmul.f32 %v3419_v10, %v6134_v20  ;;  %v3433_v3 = vmul.f32 %v3419_v10, %v6148_v31  ;;  %v3460_v13 = vrot.slane %v3446_v6, %v4773_v14 }
 0x9cb   :  { %v3464_v47 = vrot.slane %v3453_v22, %v4781_v29  ;;  %v3434_v44 = vmul.f32 %v3419_v10, %v6160_v27  ;;  %v3435_v36 = vmul.f32 %v3419_v10, %v6170_v34  ;;  %v3436_v58 = vmul.f32 %v3419_v10, %v6177_v49 }
 0x9cc   :  { %v3437_v62 = vmul.f32 %v3419_v10, %v6190_v39  ;;  %v3468_v46 = vrot.slane %v3460_v13, %v4781_v29 }
 0x9cd   :  { %v3471_v32 = vadd.f32 %v3464_v47, %v3422_v30  ;;  %v3472_v38 = vadd.f32 %v3464_v47, %v3423_v2  ;;  %v3473_v55 = vadd.f32 %v3464_v47, %v3424_v33  ;;  %v3474_v20 = vadd.f32 %v3464_v47, %v3425_v48 }
 0x9ce   :  { %v3475_v5 = vadd.f32 %v3464_v47, %v3426_v50  ;;  %v3476_v31 = vadd.f32 %v3464_v47, %v3427_v53  ;;  %v3477_v19 = vadd.f32 %v3464_v47, %v3428_v21  ;;  %v3478_v14 = vadd.f32 %v3464_v47, %v3429_v9 }
 0x9cf   :  { %v3479_v63 = vadd.f32 %v3468_v46, %v3430_v51  ;;  %v3480_v15 = vadd.f32 %v3468_v46, %v3431_v52  ;;  %v3481_v56 = vadd.f32 %v3468_v46, %v3432_v26  ;;  %v3482_v27 = vadd.f32 %v3468_v46, %v3433_v3 }
 0x9d0   :  { %v3483_v43 = vadd.f32 %v3468_v46, %v3434_v44  ;;  %v3484_v34 = vadd.f32 %v3468_v46, %v3435_v36  ;;  %v3485_v17 = vadd.f32 %v3468_v46, %v3436_v58  ;;  %v3486_v49 = vadd.f32 %v3468_v46, %v3437_v62 }
 0x9d1   :  { %v3487_v4 = vadd.f32 %v3471_v32, %v2986_v25  ;;  %v3488_v39 = vadd.f32 %v3472_v38, %v2987_v0  ;;  %v3489_v35 = vadd.f32 %v3473_v55, %v2988_v40  ;;  %v3490_v29 = vadd.f32 %v3474_v20, %v2989_v23 }
 0x9d2   :  { %v3491_v59 = vadd.f32 %v3475_v5, %v2990_v1  ;;  %v3492_v7 = vadd.f32 %v3476_v31, %v2991_v28  ;;  %v3493_v16 = vadd.f32 %v3477_v19, %v2992_v41  ;;  %v3494_v10 = vadd.f32 %v3478_v14, %v2993_v57 }
 0x9d3   :  { %v3495_v37 = vadd.f32 %v3479_v63, %v2994_v24  ;;  %v3496_v30 = vadd.f32 %v3480_v15, %v2995_v12  ;;  %v3497_v45 = vadd.f32 %v3481_v56, %v2996_v54  ;;  %v3498_v2 = vadd.f32 %v3482_v27, %v2997_v8 }
 0x9d4   :  { %v3499_v33 = vadd.f32 %v3483_v43, %v2998_v18  ;;  %v3500_v48 = vadd.f32 %v3484_v34, %v2999_v60  ;;  %v3501_v50 = vadd.f32 %v3485_v17, %v3000_v61  ;;  %v3502_v53 = vadd.f32 %v3486_v49, %v3001_v42 }
 0x9d5   :  { %v3503_v6 = vmax.f32 %v3487_v4, 0.0  ;;  %v3504_v22 = vmax.f32 %v3488_v39, 0.0  ;;  %v3505_v21 = vmax.f32 %v3489_v35, 0.0  ;;  %v3506_v9 = vmax.f32 %v3490_v29, 0.0 }
 0x9d6   :  { %v3507_v25 = vmax.f32 %v3491_v59, 0.0  ;;  %v3508_v0 = vmax.f32 %v3492_v7, 0.0  ;;  %v3509_v40 = vmax.f32 %v3493_v16, 0.0  ;;  %v3510_v23 = vmax.f32 %v3494_v10, 0.0 }
 0x9d7   :  { %v3511_v1 = vmax.f32 %v3495_v37, 0.0  ;;  %v3512_v28 = vmax.f32 %v3496_v30, 0.0  ;;  %v3513_v41 = vmax.f32 %v3497_v45, 0.0  ;;  %3519 = vst [vmem:[#allocation3] sm:$0xff] %v3503_v6  ;;  %3520 = vst [vmem:[#allocation3 + $0x8] sm:$0xff] %v3504_v22  ;;  %v3514_v57 = vmax.f32 %v3498_v2, 0.0 }
 0x9d8   :  { %3521 = vst [vmem:[#allocation3 + $0x10] sm:$0xff] %v3505_v21  ;;  %v3515_v24 = vmax.f32 %v3499_v33, 0.0  ;;  %v3516_v12 = vmax.f32 %v3500_v48, 0.0  ;;  %v3517_v54 = vmax.f32 %v3501_v50, 0.0  ;;  %3522 = vst [vmem:[#allocation3 + $0x18] sm:$0xff] %v3506_v9  ;;  %v3518_v8 = vmax.f32 %v3502_v53, 0.0 }
 0x9d9   :  { %3523 = vst [vmem:[#allocation3 + $0x20] sm:$0xff] %v3507_v25  ;;  %3524 = vst [vmem:[#allocation3 + $0x28] sm:$0xff] %v3508_v0 }
 0x9da   :  { %3525 = vst [vmem:[#allocation3 + $0x30] sm:$0xff] %v3509_v40  ;;  %3526 = vst [vmem:[#allocation3 + $0x38] sm:$0xff] %v3510_v23 }
 0x9db   :  { %3527 = vst [vmem:[#allocation3 + $0x40] sm:$0xff] %v3511_v1  ;;  %3528 = vst [vmem:[#allocation3 + $0x48] sm:$0xff] %v3512_v28 }
 0x9dc   :  { %3529 = vst [vmem:[#allocation3 + $0x50] sm:$0xff] %v3513_v41  ;;  %3530 = vst [vmem:[#allocation3 + $0x58] sm:$0xff] %v3514_v57 }
 0x9dd   :  { %3531 = vst [vmem:[#allocation3 + $0x60] sm:$0xff] %v3515_v24  ;;  %3532 = vst [vmem:[#allocation3 + $0x68] sm:$0xff] %v3516_v12 }
 0x9de   :  { %3533 = vst [vmem:[#allocation3 + $0x70] sm:$0xff] %v3517_v54  ;;  %3534 = vst [vmem:[#allocation3 + $0x78] sm:$0xff] %v3518_v8 }
 0x9df   :  { %4397 = shalt.err (!%p4394_p4)
}
 0x9e0   :  { %s4414_s10 = smov 128   ;;  %s4415_s6 = smov 8  }
 0x9e1   :  { %3546 = dma.vmem_to_hbm [thread:$0]  %s3541_s24, 2048, %s6339_s21, [#allocation4], %s4414_s10, %s4414_s10, %s4415_s6  }
 0x9e2   :  { %4406 = dma.done.wait [#allocation4], 2048  }
 0x9e3   :  { %4407 = vsyncadd [#allocation4], 4294965248 }
 0x9e4   :  { %3550 = vsyncpa [#allocation4], 1 }

</bundles_post_ra>
